<compile_context>
chip_gen: v7x
topology: tpu7x:2x2x1
jax: 0.10.0
libtpu: 0.0.40
codegen_flags: <defaults>
</compile_context>

<pallas_src>
import jax
import jax.numpy as jnp
import numpy as np
from jax.experimental import pallas as pl
from jax.experimental.pallas import tpu as pltpu  # noqa: F401  (kept for TPU-specific knobs)

# ---------------------------------------------------------------------------
# Model hyper-parameters (small, consistent with the module's __init__).
# ---------------------------------------------------------------------------
B = 2                 # batch
N_IN = 8              # input sequence length (before token_0 is added)
N = N_IN + 1          # valid sequence length after token_0 is added (9)
N_PAD = 16            # sublane-aligned padded sequence length (multiple of 8)
R = B * N_PAD         # padded rows processed by the fused kernel (32)
D = 32                # token_dim
HEADS = 4
DH = 16               # dim_head
INNER = HEADS * DH    # 64
MLP = 64              # mlp_dim
DEPTH = 2
SCALE = DH ** -0.5
EPS = 1e-5            # nn.LayerNorm default eps
NEG_BIG = -1e30       # additive mask value (every row keeps >= 1 valid column)
TOKEN_POS = N_IN      # token_0 lives at the tile-aligned slot 8 of each batch block

# bf16 matmul operands help v6e/v7x when the MXU is the bottleneck; at this size it
# is not, so default to f32 (exact parity).  Flip to jnp.bfloat16 for larger shapes.
MATMUL_DTYPE = jnp.float32

# TODO(synk): nn.Dropout (emb / attention / MLP dropout) is identity at inference
#             time and is intentionally omitted.
# TODO(synk): nn.GELU() defaults to the exact erf form; the tanh approximation is
#             used here (review-sanctioned, EUP-friendly, no guaranteed Mosaic erf
#             lowering).  The pure-JAX reference uses the same form.
# TODO(synk): TransformerModule's intermediate dict / return_intermediate outputs
#             are not returned; only the final pooled output is produced.


# ---------------------------------------------------------------------------
# Shared math helpers (plain jnp: usable both inside the kernel and in the ref)
# ---------------------------------------------------------------------------
def _layernorm(x, g, b):
    mu = jnp.mean(x, axis=-1, keepdims=True)
    var = jnp.mean((x - mu) ** 2, axis=-1, keepdims=True)
    return (x - mu) * jax.lax.rsqrt(var + EPS) * g + b


def _gelu_tanh(x):
    # 0.5 * x * (1 + tanh(sqrt(2/pi) * (x + 0.044715 x^3)))
    return 0.5 * x * (1.0 + jnp.tanh(0.7978845608028654 * (x + 0.044715 * (x * x * x))))


def _mm(a, b):
    return jnp.dot(a.astype(MATMUL_DTYPE), b.astype(MATMUL_DTYPE),
                   preferred_element_type=jnp.float32)


# ---------------------------------------------------------------------------
# Single fused kernel: whole forward pass, one invocation (no grid)
# ---------------------------------------------------------------------------
def transformer_kernel(x_ref, tok_ref, mask_ref,
                       ln1g_ref, ln1b_ref, wq_ref, wkt_ref, wv_ref, wouth_ref,
                       bout_ref, ln2g_ref, ln2b_ref, w1_ref, b1_ref, w2_ref,
                       b2_ref, lnfg_ref, lnfb_ref, o_ref):
    """Activation layout: x is a (R, D) = (B*N_PAD, D) f32 slab.

    Rows of batch block b (all piece boundaries are 8-sublane aligned):
      [b*16 + 0 .. b*16 + 7]   : the 8 input tokens of batch b
      [b*16 + 8]  (TOKEN_POS)  : the learned token_0 (== "position 0" of the module;
                                 attention is permutation-equivariant, so placement
                                 at the aligned slot 8 is mathematically identical)
      [b*16 + 9 .. b*16 + 15]  : zero padding, masked out of every softmax row
    """
    tok = tok_ref[...]                                    # (1, D)
    pad = jnp.zeros((N_PAD - N, D), jnp.float32)          # (7, D)
    pieces = []
    for b in range(B):                                    # all pieces tile-aligned
        pieces += [x_ref[b], tok, pad]
    x = jnp.concatenate(pieces, axis=0)                   # (R, D)

    mask = mask_ref[...]                                  # (R, R) additive 0 / NEG_BIG

    for l in range(DEPTH):                                # unrolled (DEPTH = 2)
        # ---------------- Residual(PreNorm(Attention)) ----------------
        xn = _layernorm(x, ln1g_ref[l:l + 1, :], ln1b_ref[l:l + 1, :])     # (R, D)

        # K^T for ALL heads with one contraction per layer (pre-transposed K weights):
        # kt_all[h*DH + e, r] = K_h[r, e]  -> sublane-aligned (DH, R) head blocks.
        kt_all = jax.lax.dot_general(
            wkt_ref[l].astype(MATMUL_DTYPE), xn.astype(MATMUL_DTYPE),
            (((1,), (1,)), ((), ())),
            preferred_element_type=jnp.float32)                            # (INNER, R)

        x = x + bout_ref[l:l + 1, :]                      # to_out bias (part of residual add)
        for h in range(HEADS):
            q_h = _mm(xn, wq_ref[l, h])                   # (R, DH)   no lane slicing
            v_h = _mm(xn, wv_ref[l, h])                   # (R, DH)
            kt_h = kt_all[h * DH:(h + 1) * DH, :]         # (DH, R)   sublane slice (free)
            s = _mm(q_h, kt_h) * SCALE + mask             # (R, R)    plain MXU matmul
            s = s - jnp.max(s, axis=-1, keepdims=True)
            p = jnp.exp(s)                                # masked cols underflow to exactly 0
            p = p / jnp.sum(p, axis=-1, keepdims=True)    # exact softmax normalization
            o_h = _mm(p, v_h)                             # (R, DH)
            x = x + _mm(o_h, wouth_ref[l, h])             # per-head out-proj accumulate
                                                          # -> no lane-axis head concat

        # ---------------- Residual(PreNorm(FeedForward)) ----------------
        xn = _layernorm(x, ln2g_ref[l:l + 1, :], ln2b_ref[l:l + 1, :])
        h1 = _mm(xn, w1_ref[l]) + b1_ref[l:l + 1, :]      # (R, MLP)
        h1 = _gelu_tanh(h1)
        x = x + _mm(h1, w2_ref[l]) + b2_ref[l:l + 1, :]

    # ---------------- pool == 'token_0', then final LayerNorm ----------------
    pooled = jnp.concatenate(
        [x[b * N_PAD + TOKEN_POS: b * N_PAD + TOKEN_POS + 1] for b in range(B)],
        axis=0)                                           # (B, D), tile-aligned row reads
    o_ref[...] = _layernorm(pooled, lnfg_ref[...], lnfb_ref[...]).astype(o_ref.dtype)


# ---------------------------------------------------------------------------
# Wrapper: single pallas_call, no grid / BlockSpecs (full arrays in VMEM)
# ---------------------------------------------------------------------------
def _build_mask_bias(batch, n_valid, n_pad):
    """Additive attention bias (R, R): 0 where key column j is a valid row of the
    query's batch block, NEG_BIG otherwise.  Built host-side with numpy."""
    r = batch * n_pad
    pos = np.arange(r)
    blk = pos // n_pad
    valid = (pos % n_pad) < n_valid
    allowed = (blk[:, None] == blk[None, :]) & valid[None, :]
    return jnp.asarray(np.where(allowed, 0.0, NEG_BIG).astype(np.float32))


def transformer_forward(x, kparams, pos_embedding=None):
    if pos_embedding is not None:
        x = x + pos_embedding                  # module adds pos_embedding before token_0
    b, n_in, d = x.shape
    assert (b, n_in, d) == (B, N_IN, D), (b, n_in, d)
    mask = _build_mask_bias(b, N, N_PAD)
    return pl.pallas_call(
        transformer_kernel,
        out_shape=jax.ShapeDtypeStruct((b, d), x.dtype),
        # No grid / grid_spec: single invocation; default specs place every operand
        # as a full array in VMEM (~0.5 MiB total), so there is nothing to pipeline.
    )(x, kparams["token_0"], mask,
      kparams["ln1_g"], kparams["ln1_b"],
      kparams["wq"], kparams["wkt"], kparams["wv"], kparams["wout_h"], kparams["bout"],
      kparams["ln2_g"], kparams["ln2_b"],
      kparams["w1"], kparams["b1"], kparams["w2"], kparams["b2"],
      kparams["ln_g"], kparams["ln_b"])


# ---------------------------------------------------------------------------
# Parameters: PyTorch-style layout (fused to_qkv / to_out), plus a one-time
# re-layout into the kernel's head-major / pre-transposed-K format.
# ---------------------------------------------------------------------------
def init_params(key):
    key, k_tok = jax.random.split(key)
    params = {"token_0": jax.random.normal(k_tok, (1, D), jnp.float32)}
    wqkv, wout, bout, w1, b1, w2, b2 = [], [], [], [], [], [], []
    l1g, l1b, l2g, l2b = [], [], [], []
    for _ in range(DEPTH):
        key, k1, k2, k3, k4, k5, k6, k7, k8 = jax.random.split(key, 9)
        wqkv.append(0.02 * jax.random.normal(k1, (D, 3 * INNER), jnp.float32))
        wout.append(0.02 * jax.random.normal(k2, (INNER, D), jnp.float32))
        bout.append(0.02 * jax.random.normal(k3, (D,), jnp.float32))
        w1.append(0.02 * jax.random.normal(k4, (D, MLP), jnp.float32))
        b1.append(0.02 * jax.random.normal(k5, (MLP,), jnp.float32))
        w2.append(0.02 * jax.random.normal(k6, (MLP, D), jnp.float32))
        b2.append(0.02 * jax.random.normal(k7, (D,), jnp.float32))
        g = jax.random.split(k8, 4)
        l1g.append(1.0 + 0.1 * jax.random.normal(g[0], (D,), jnp.float32))
        l1b.append(0.1 * jax.random.normal(g[1], (D,), jnp.float32))
        l2g.append(1.0 + 0.1 * jax.random.normal(g[2], (D,), jnp.float32))
        l2b.append(0.1 * jax.random.normal(g[3], (D,), jnp.float32))
    key, kg, kb = jax.random.split(key, 3)
    params.update(
        ln1_g=jnp.stack(l1g), ln1_b=jnp.stack(l1b),
        wqkv=jnp.stack(wqkv), wout=jnp.stack(wout), bout=jnp.stack(bout),
        ln2_g=jnp.stack(l2g), ln2_b=jnp.stack(l2b),
        w1=jnp.stack(w1), b1=jnp.stack(b1), w2=jnp.stack(w2), b2=jnp.stack(b2),
        ln_g=1.0 + 0.1 * jax.random.normal(kg, (1, D), jnp.float32),
        ln_b=0.1 * jax.random.normal(kb, (1, D), jnp.float32),
    )
    return params


def prepare_kernel_params(params):
    """One-time host-side re-layout (layout plumbing, not compute):
       fused wqkv (D, 3*INNER) -> per-head wq/wv (HEADS, D, DH) + transposed K (INNER, D)
       to_out weight (INNER, D) -> per-head (HEADS, DH, D)."""
    wq, wkt, wv, wo = [], [], [], []
    for l in range(DEPTH):
        qkv = params["wqkv"][l]                              # cols = [ q | k | v ]
        q, k, v = qkv[:, :INNER], qkv[:, INNER:2 * INNER], qkv[:, 2 * INNER:]
        wq.append(q.reshape(D, HEADS, DH).transpose(1, 0, 2))    # (H, D, DH)
        wv.append(v.reshape(D, HEADS, DH).transpose(1, 0, 2))    # (H, D, DH)
        wkt.append(k.T)                                          # (INNER, D)
        wo.append(params["wout"][l].reshape(HEADS, DH, D))       # (H, DH, D)
    kp = dict(params)
    kp.update(wq=jnp.stack(wq), wkt=jnp.stack(wkt), wv=jnp.stack(wv),
              wout_h=jnp.stack(wo))
    return kp


# ---------------------------------------------------------------------------
# Pure-JAX reference (mirrors the PyTorch module; token_0 prepended at pos 0)
# ---------------------------------------------------------------------------
def reference_forward(x, params):
    b = x.shape[0]
    tok = jnp.broadcast_to(params["token_0"][None, :, :], (b, 1, D))
    x = jnp.concatenate([tok, x], axis=1)                    # (B, N, D)
    n = x.shape[1]
    for l in range(DEPTH):
        xn = _layernorm(x, params["ln1_g"][l], params["ln1_b"][l])
        qkv = xn @ params["wqkv"][l]
        q, k, v = jnp.split(qkv, 3, axis=-1)

        def heads(t):
            return t.reshape(b, n, HEADS, DH).transpose(0, 2, 1, 3)

        q, k, v = heads(q), heads(k), heads(v)
        dots = jnp.einsum("bhid,bhjd->bhij", q, k) * SCALE
        attn = jax.nn.softmax(dots, axis=-1)
        oh = jnp.einsum("bhij,bhjd->bhid", attn, v)
        oh = oh.transpose(0, 2, 1, 3).reshape(b, n, INNER)
        x = oh @ params["wout"][l] + params["bout"][l] + x

        xn = _layernorm(x, params["ln2_g"][l], params["ln2_b"][l])
        h = xn @ params["w1"][l] + params["b1"][l]
        h = _gelu_tanh(h)
        x = h @ params["w2"][l] + params["b2"][l] + x
    x = x[:, 0]                                              # pool == 'token_0'
    return _layernorm(x, params["ln_g"][0], params["ln_b"][0])


# ---------------------------------------------------------------------------
if __name__ == "__main__":
    key = jax.random.PRNGKey(0)
    key, k_x = jax.random.split(key)
    params = init_params(key)
    x = jax.random.normal(k_x, (B, N_IN, D), jnp.float32)

    kparams = prepare_kernel_params(params)
    out = jax.block_until_ready(transformer_forward(x, kparams))
    ref = jax.block_until_ready(reference_forward(x, params))

    assert out.shape == (B, D), out.shape
    # All math is f32 with exact softmax division -> only rounding-level deviation
    # (summation order / padded-zero columns) vs. the reference.
    np.testing.assert_allclose(np.asarray(out), np.asarray(ref), atol=1e-4, rtol=1e-4)

    print("KERNEL_OK")
</pallas_src>

<mosaic_0001>
module attributes {stable_mosaic.version = 11 : i64} {
  func.func @transformer_kernel(%arg0: memref<2x8x32xf32, #tpu.memory_space<vmem>>, %arg1: memref<1x32xf32, #tpu.memory_space<vmem>>, %arg2: memref<32x32xf32, #tpu.memory_space<vmem>>, %arg3: memref<2x32xf32, #tpu.memory_space<vmem>>, %arg4: memref<2x32xf32, #tpu.memory_space<vmem>>, %arg5: memref<2x4x32x16xf32, #tpu.memory_space<vmem>>, %arg6: memref<2x64x32xf32, #tpu.memory_space<vmem>>, %arg7: memref<2x4x32x16xf32, #tpu.memory_space<vmem>>, %arg8: memref<2x4x16x32xf32, #tpu.memory_space<vmem>>, %arg9: memref<2x32xf32, #tpu.memory_space<vmem>>, %arg10: memref<2x32xf32, #tpu.memory_space<vmem>>, %arg11: memref<2x32xf32, #tpu.memory_space<vmem>>, %arg12: memref<2x32x64xf32, #tpu.memory_space<vmem>>, %arg13: memref<2x64xf32, #tpu.memory_space<vmem>>, %arg14: memref<2x64x32xf32, #tpu.memory_space<vmem>>, %arg15: memref<2x32xf32, #tpu.memory_space<vmem>>, %arg16: memref<1x32xf32, #tpu.memory_space<vmem>>, %arg17: memref<1x32xf32, #tpu.memory_space<vmem>>, %arg18: memref<2x32xf32, #tpu.memory_space<vmem>>) attributes {dimension_semantics = [], scalar_prefetch = 0 : i64, scratch_operands = 0 : i64, tpu.core_type = #tpu.core_type<tc>} {
    %c0 = arith.constant 0 : index
    %c0_0 = arith.constant 0 : index
    %0 = vector.load %arg1[%c0, %c0_0] : memref<1x32xf32, #tpu.memory_space<vmem>>, vector<1x32xf32>
    %cst = arith.constant 0.000000e+00 : f32
    %1 = vector.broadcast %cst : f32 to vector<7x32xf32>
    %c0_1 = arith.constant 0 : index
    %c0_2 = arith.constant 0 : index
    %c0_3 = arith.constant 0 : index
    %2 = vector.load %arg0[%c0_1, %c0_2, %c0_3] : memref<2x8x32xf32, #tpu.memory_space<vmem>>, vector<1x8x32xf32>
    %3 = vector.shape_cast %2 : vector<1x8x32xf32> to vector<8x32xf32>
    %c1 = arith.constant 1 : index
    %c0_4 = arith.constant 0 : index
    %c0_5 = arith.constant 0 : index
    %4 = vector.load %arg0[%c1, %c0_4, %c0_5] : memref<2x8x32xf32, #tpu.memory_space<vmem>>, vector<1x8x32xf32>
    %5 = vector.shape_cast %4 : vector<1x8x32xf32> to vector<8x32xf32>
    %6 = tpu.concatenate %3, %0, %1, %5, %0, %1 in 0 : vector<8x32xf32>, vector<1x32xf32>, vector<7x32xf32>, vector<8x32xf32>, vector<1x32xf32>, vector<7x32xf32> -> vector<32x32xf32>
    %c0_6 = arith.constant 0 : index
    %c0_7 = arith.constant 0 : index
    %7 = vector.load %arg2[%c0_6, %c0_7] : memref<32x32xf32, #tpu.memory_space<vmem>>, vector<32x32xf32>
    %c0_8 = arith.constant 0 : index
    %c0_9 = arith.constant 0 : index
    %8 = vector.load %arg3[%c0_8, %c0_9] : memref<2x32xf32, #tpu.memory_space<vmem>>, vector<1x32xf32>
    %c0_10 = arith.constant 0 : index
    %c0_11 = arith.constant 0 : index
    %9 = vector.load %arg4[%c0_10, %c0_11] : memref<2x32xf32, #tpu.memory_space<vmem>>, vector<1x32xf32>
    %cst_12 = arith.constant dense<0.000000e+00> : vector<32xf32>
    %10 = vector.multi_reduction <add>, %6, %cst_12 [1] : vector<32x32xf32> to vector<32xf32>
    %11 = vector.shape_cast %10 : vector<32xf32> to vector<32x1xf32>
    %cst_13 = arith.constant 3.200000e+01 : f32
    %12 = vector.broadcast %cst_13 : f32 to vector<32x1xf32>
    %13 = arith.divf %11, %12 : vector<32x1xf32>
    %14 = vector.broadcast %13 : vector<32x1xf32> to vector<32x32xf32>
    %15 = arith.subf %6, %14 : vector<32x32xf32>
    %16 = arith.mulf %15, %15 : vector<32x32xf32>
    %cst_14 = arith.constant dense<0.000000e+00> : vector<32xf32>
    %17 = vector.multi_reduction <add>, %16, %cst_14 [1] : vector<32x32xf32> to vector<32xf32>
    %18 = vector.shape_cast %17 : vector<32xf32> to vector<32x1xf32>
    %cst_15 = arith.constant 3.200000e+01 : f32
    %19 = vector.broadcast %cst_15 : f32 to vector<32x1xf32>
    %20 = arith.divf %18, %19 : vector<32x1xf32>
    %21 = vector.broadcast %13 : vector<32x1xf32> to vector<32x32xf32>
    %22 = arith.subf %6, %21 : vector<32x32xf32>
    %cst_16 = arith.constant 9.99999974E-6 : f32
    %23 = vector.broadcast %cst_16 : f32 to vector<32x1xf32>
    %24 = arith.addf %20, %23 : vector<32x1xf32>
    %25 = math.rsqrt %24 : vector<32x1xf32>
    %26 = vector.broadcast %25 : vector<32x1xf32> to vector<32x32xf32>
    %27 = arith.mulf %22, %26 : vector<32x32xf32>
    %28 = vector.broadcast %8 : vector<1x32xf32> to vector<32x32xf32>
    %29 = arith.mulf %27, %28 : vector<32x32xf32>
    %30 = vector.broadcast %9 : vector<1x32xf32> to vector<32x32xf32>
    %31 = arith.addf %29, %30 : vector<32x32xf32>
    %c0_17 = arith.constant 0 : index
    %c0_18 = arith.constant 0 : index
    %c0_19 = arith.constant 0 : index
    %32 = vector.load %arg6[%c0_17, %c0_18, %c0_19] : memref<2x64x32xf32, #tpu.memory_space<vmem>>, vector<1x64x32xf32>
    %33 = vector.shape_cast %32 : vector<1x64x32xf32> to vector<64x32xf32>
    %cst_20 = arith.constant dense<0.000000e+00> : vector<64x32xf32>
    %34 = tpu.matmul %33, %31, %cst_20 {dimension_numbers = #tpu.dot_dimension_numbers<[1], [1], [0], [0], [0, 0, 1, 0], [], []>} : vector<64x32xf32>, vector<32x32xf32>, vector<64x32xf32> -> vector<64x32xf32>
    %c0_21 = arith.constant 0 : index
    %c0_22 = arith.constant 0 : index
    %35 = vector.load %arg9[%c0_21, %c0_22] : memref<2x32xf32, #tpu.memory_space<vmem>>, vector<1x32xf32>
    %36 = vector.broadcast %35 : vector<1x32xf32> to vector<32x32xf32>
    %37 = arith.addf %6, %36 : vector<32x32xf32>
    %c0_23 = arith.constant 0 : index
    %c0_24 = arith.constant 0 : index
    %c0_25 = arith.constant 0 : index
    %c0_26 = arith.constant 0 : index
    %38 = vector.load %arg5[%c0_23, %c0_24, %c0_25, %c0_26] : memref<2x4x32x16xf32, #tpu.memory_space<vmem>>, vector<1x1x32x16xf32>
    %39 = vector.shape_cast %38 : vector<1x1x32x16xf32> to vector<32x16xf32>
    %cst_27 = arith.constant dense<0.000000e+00> : vector<32x16xf32>
    %40 = tpu.matmul %31, %39, %cst_27 {dimension_numbers = #tpu.dot_dimension_numbers<[1], [0], [0], [1], [0, 0, 1, 1], [], []>} : vector<32x32xf32>, vector<32x16xf32>, vector<32x16xf32> -> vector<32x16xf32>
    %c0_28 = arith.constant 0 : index
    %c0_29 = arith.constant 0 : index
    %c0_30 = arith.constant 0 : index
    %c0_31 = arith.constant 0 : index
    %41 = vector.load %arg7[%c0_28, %c0_29, %c0_30, %c0_31] : memref<2x4x32x16xf32, #tpu.memory_space<vmem>>, vector<1x1x32x16xf32>
    %42 = vector.shape_cast %41 : vector<1x1x32x16xf32> to vector<32x16xf32>
    %cst_32 = arith.constant dense<0.000000e+00> : vector<32x16xf32>
    %43 = tpu.matmul %31, %42, %cst_32 {dimension_numbers = #tpu.dot_dimension_numbers<[1], [0], [0], [1], [0, 0, 1, 1], [], []>} : vector<32x32xf32>, vector<32x16xf32>, vector<32x16xf32> -> vector<32x16xf32>
    %44 = vector.extract_strided_slice %34 {offsets = [0, 0], sizes = [16, 32], strides = [1, 1]} : vector<64x32xf32> to vector<16x32xf32>
    %cst_33 = arith.constant dense<0.000000e+00> : vector<32x32xf32>
    %45 = tpu.matmul %40, %44, %cst_33 {dimension_numbers = #tpu.dot_dimension_numbers<[1], [0], [0], [1], [0, 0, 1, 1], [], []>} : vector<32x16xf32>, vector<16x32xf32>, vector<32x32xf32> -> vector<32x32xf32>
    %cst_34 = arith.constant 2.500000e-01 : f32
    %46 = vector.broadcast %cst_34 : f32 to vector<32x32xf32>
    %47 = arith.mulf %45, %46 : vector<32x32xf32>
    %48 = arith.addf %47, %7 : vector<32x32xf32>
    %cst_35 = arith.constant dense<0xFF800000> : vector<32xf32>
    %49 = vector.multi_reduction <maximumf>, %48, %cst_35 [1] : vector<32x32xf32> to vector<32xf32>
    %50 = vector.shape_cast %49 : vector<32xf32> to vector<32x1xf32>
    %51 = vector.broadcast %50 : vector<32x1xf32> to vector<32x32xf32>
    %52 = arith.subf %48, %51 : vector<32x32xf32>
    %53 = math.exp %52 : vector<32x32xf32>
    %cst_36 = arith.constant dense<0.000000e+00> : vector<32xf32>
    %54 = vector.multi_reduction <add>, %53, %cst_36 [1] : vector<32x32xf32> to vector<32xf32>
    %55 = vector.shape_cast %54 : vector<32xf32> to vector<32x1xf32>
    %56 = vector.broadcast %55 : vector<32x1xf32> to vector<32x32xf32>
    %57 = arith.divf %53, %56 : vector<32x32xf32>
    %cst_37 = arith.constant dense<0.000000e+00> : vector<32x16xf32>
    %58 = tpu.matmul %57, %43, %cst_37 {dimension_numbers = #tpu.dot_dimension_numbers<[1], [0], [0], [1], [0, 0, 1, 1], [], []>} : vector<32x32xf32>, vector<32x16xf32>, vector<32x16xf32> -> vector<32x16xf32>
    %c0_38 = arith.constant 0 : index
    %c0_39 = arith.constant 0 : index
    %c0_40 = arith.constant 0 : index
    %c0_41 = arith.constant 0 : index
    %59 = vector.load %arg8[%c0_38, %c0_39, %c0_40, %c0_41] : memref<2x4x16x32xf32, #tpu.memory_space<vmem>>, vector<1x1x16x32xf32>
    %60 = vector.shape_cast %59 : vector<1x1x16x32xf32> to vector<16x32xf32>
    %cst_42 = arith.constant dense<0.000000e+00> : vector<32x32xf32>
    %61 = tpu.matmul %58, %60, %cst_42 {dimension_numbers = #tpu.dot_dimension_numbers<[1], [0], [0], [1], [0, 0, 1, 1], [], []>} : vector<32x16xf32>, vector<16x32xf32>, vector<32x32xf32> -> vector<32x32xf32>
    %62 = arith.addf %37, %61 : vector<32x32xf32>
    %c0_43 = arith.constant 0 : index
    %c1_44 = arith.constant 1 : index
    %c0_45 = arith.constant 0 : index
    %c0_46 = arith.constant 0 : index
    %63 = vector.load %arg5[%c0_43, %c1_44, %c0_45, %c0_46] : memref<2x4x32x16xf32, #tpu.memory_space<vmem>>, vector<1x1x32x16xf32>
    %64 = vector.shape_cast %63 : vector<1x1x32x16xf32> to vector<32x16xf32>
    %cst_47 = arith.constant dense<0.000000e+00> : vector<32x16xf32>
    %65 = tpu.matmul %31, %64, %cst_47 {dimension_numbers = #tpu.dot_dimension_numbers<[1], [0], [0], [1], [0, 0, 1, 1], [], []>} : vector<32x32xf32>, vector<32x16xf32>, vector<32x16xf32> -> vector<32x16xf32>
    %c0_48 = arith.constant 0 : index
    %c1_49 = arith.constant 1 : index
    %c0_50 = arith.constant 0 : index
    %c0_51 = arith.constant 0 : index
    %66 = vector.load %arg7[%c0_48, %c1_49, %c0_50, %c0_51] : memref<2x4x32x16xf32, #tpu.memory_space<vmem>>, vector<1x1x32x16xf32>
    %67 = vector.shape_cast %66 : vector<1x1x32x16xf32> to vector<32x16xf32>
    %cst_52 = arith.constant dense<0.000000e+00> : vector<32x16xf32>
    %68 = tpu.matmul %31, %67, %cst_52 {dimension_numbers = #tpu.dot_dimension_numbers<[1], [0], [0], [1], [0, 0, 1, 1], [], []>} : vector<32x32xf32>, vector<32x16xf32>, vector<32x16xf32> -> vector<32x16xf32>
    %69 = vector.extract_strided_slice %34 {offsets = [16, 0], sizes = [16, 32], strides = [1, 1]} : vector<64x32xf32> to vector<16x32xf32>
    %cst_53 = arith.constant dense<0.000000e+00> : vector<32x32xf32>
    %70 = tpu.matmul %65, %69, %cst_53 {dimension_numbers = #tpu.dot_dimension_numbers<[1], [0], [0], [1], [0, 0, 1, 1], [], []>} : vector<32x16xf32>, vector<16x32xf32>, vector<32x32xf32> -> vector<32x32xf32>
    %cst_54 = arith.constant 2.500000e-01 : f32
    %71 = vector.broadcast %cst_54 : f32 to vector<32x32xf32>
    %72 = arith.mulf %70, %71 : vector<32x32xf32>
    %73 = arith.addf %72, %7 : vector<32x32xf32>
    %cst_55 = arith.constant dense<0xFF800000> : vector<32xf32>
    %74 = vector.multi_reduction <maximumf>, %73, %cst_55 [1] : vector<32x32xf32> to vector<32xf32>
    %75 = vector.shape_cast %74 : vector<32xf32> to vector<32x1xf32>
    %76 = vector.broadcast %75 : vector<32x1xf32> to vector<32x32xf32>
    %77 = arith.subf %73, %76 : vector<32x32xf32>
    %78 = math.exp %77 : vector<32x32xf32>
    %cst_56 = arith.constant dense<0.000000e+00> : vector<32xf32>
    %79 = vector.multi_reduction <add>, %78, %cst_56 [1] : vector<32x32xf32> to vector<32xf32>
    %80 = vector.shape_cast %79 : vector<32xf32> to vector<32x1xf32>
    %81 = vector.broadcast %80 : vector<32x1xf32> to vector<32x32xf32>
    %82 = arith.divf %78, %81 : vector<32x32xf32>
    %cst_57 = arith.constant dense<0.000000e+00> : vector<32x16xf32>
    %83 = tpu.matmul %82, %68, %cst_57 {dimension_numbers = #tpu.dot_dimension_numbers<[1], [0], [0], [1], [0, 0, 1, 1], [], []>} : vector<32x32xf32>, vector<32x16xf32>, vector<32x16xf32> -> vector<32x16xf32>
    %c0_58 = arith.constant 0 : index
    %c1_59 = arith.constant 1 : index
    %c0_60 = arith.constant 0 : index
    %c0_61 = arith.constant 0 : index
    %84 = vector.load %arg8[%c0_58, %c1_59, %c0_60, %c0_61] : memref<2x4x16x32xf32, #tpu.memory_space<vmem>>, vector<1x1x16x32xf32>
    %85 = vector.shape_cast %84 : vector<1x1x16x32xf32> to vector<16x32xf32>
    %cst_62 = arith.constant dense<0.000000e+00> : vector<32x32xf32>
    %86 = tpu.matmul %83, %85, %cst_62 {dimension_numbers = #tpu.dot_dimension_numbers<[1], [0], [0], [1], [0, 0, 1, 1], [], []>} : vector<32x16xf32>, vector<16x32xf32>, vector<32x32xf32> -> vector<32x32xf32>
    %87 = arith.addf %62, %86 : vector<32x32xf32>
    %c0_63 = arith.constant 0 : index
    %c2 = arith.constant 2 : index
    %c0_64 = arith.constant 0 : index
    %c0_65 = arith.constant 0 : index
    %88 = vector.load %arg5[%c0_63, %c2, %c0_64, %c0_65] : memref<2x4x32x16xf32, #tpu.memory_space<vmem>>, vector<1x1x32x16xf32>
    %89 = vector.shape_cast %88 : vector<1x1x32x16xf32> to vector<32x16xf32>
    %cst_66 = arith.constant dense<0.000000e+00> : vector<32x16xf32>
    %90 = tpu.matmul %31, %89, %cst_66 {dimension_numbers = #tpu.dot_dimension_numbers<[1], [0], [0], [1], [0, 0, 1, 1], [], []>} : vector<32x32xf32>, vector<32x16xf32>, vector<32x16xf32> -> vector<32x16xf32>
    %c0_67 = arith.constant 0 : index
    %c2_68 = arith.constant 2 : index
    %c0_69 = arith.constant 0 : index
    %c0_70 = arith.constant 0 : index
    %91 = vector.load %arg7[%c0_67, %c2_68, %c0_69, %c0_70] : memref<2x4x32x16xf32, #tpu.memory_space<vmem>>, vector<1x1x32x16xf32>
    %92 = vector.shape_cast %91 : vector<1x1x32x16xf32> to vector<32x16xf32>
    %cst_71 = arith.constant dense<0.000000e+00> : vector<32x16xf32>
    %93 = tpu.matmul %31, %92, %cst_71 {dimension_numbers = #tpu.dot_dimension_numbers<[1], [0], [0], [1], [0, 0, 1, 1], [], []>} : vector<32x32xf32>, vector<32x16xf32>, vector<32x16xf32> -> vector<32x16xf32>
    %94 = vector.extract_strided_slice %34 {offsets = [32, 0], sizes = [16, 32], strides = [1, 1]} : vector<64x32xf32> to vector<16x32xf32>
    %cst_72 = arith.constant dense<0.000000e+00> : vector<32x32xf32>
    %95 = tpu.matmul %90, %94, %cst_72 {dimension_numbers = #tpu.dot_dimension_numbers<[1], [0], [0], [1], [0, 0, 1, 1], [], []>} : vector<32x16xf32>, vector<16x32xf32>, vector<32x32xf32> -> vector<32x32xf32>
    %cst_73 = arith.constant 2.500000e-01 : f32
    %96 = vector.broadcast %cst_73 : f32 to vector<32x32xf32>
    %97 = arith.mulf %95, %96 : vector<32x32xf32>
    %98 = arith.addf %97, %7 : vector<32x32xf32>
    %cst_74 = arith.constant dense<0xFF800000> : vector<32xf32>
    %99 = vector.multi_reduction <maximumf>, %98, %cst_74 [1] : vector<32x32xf32> to vector<32xf32>
    %100 = vector.shape_cast %99 : vector<32xf32> to vector<32x1xf32>
    %101 = vector.broadcast %100 : vector<32x1xf32> to vector<32x32xf32>
    %102 = arith.subf %98, %101 : vector<32x32xf32>
    %103 = math.exp %102 : vector<32x32xf32>
    %cst_75 = arith.constant dense<0.000000e+00> : vector<32xf32>
    %104 = vector.multi_reduction <add>, %103, %cst_75 [1] : vector<32x32xf32> to vector<32xf32>
    %105 = vector.shape_cast %104 : vector<32xf32> to vector<32x1xf32>
    %106 = vector.broadcast %105 : vector<32x1xf32> to vector<32x32xf32>
    %107 = arith.divf %103, %106 : vector<32x32xf32>
    %cst_76 = arith.constant dense<0.000000e+00> : vector<32x16xf32>
    %108 = tpu.matmul %107, %93, %cst_76 {dimension_numbers = #tpu.dot_dimension_numbers<[1], [0], [0], [1], [0, 0, 1, 1], [], []>} : vector<32x32xf32>, vector<32x16xf32>, vector<32x16xf32> -> vector<32x16xf32>
    %c0_77 = arith.constant 0 : index
    %c2_78 = arith.constant 2 : index
    %c0_79 = arith.constant 0 : index
    %c0_80 = arith.constant 0 : index
    %109 = vector.load %arg8[%c0_77, %c2_78, %c0_79, %c0_80] : memref<2x4x16x32xf32, #tpu.memory_space<vmem>>, vector<1x1x16x32xf32>
    %110 = vector.shape_cast %109 : vector<1x1x16x32xf32> to vector<16x32xf32>
    %cst_81 = arith.constant dense<0.000000e+00> : vector<32x32xf32>
    %111 = tpu.matmul %108, %110, %cst_81 {dimension_numbers = #tpu.dot_dimension_numbers<[1], [0], [0], [1], [0, 0, 1, 1], [], []>} : vector<32x16xf32>, vector<16x32xf32>, vector<32x32xf32> -> vector<32x32xf32>
    %112 = arith.addf %87, %111 : vector<32x32xf32>
    %c0_82 = arith.constant 0 : index
    %c3 = arith.constant 3 : index
    %c0_83 = arith.constant 0 : index
    %c0_84 = arith.constant 0 : index
    %113 = vector.load %arg5[%c0_82, %c3, %c0_83, %c0_84] : memref<2x4x32x16xf32, #tpu.memory_space<vmem>>, vector<1x1x32x16xf32>
    %114 = vector.shape_cast %113 : vector<1x1x32x16xf32> to vector<32x16xf32>
    %cst_85 = arith.constant dense<0.000000e+00> : vector<32x16xf32>
    %115 = tpu.matmul %31, %114, %cst_85 {dimension_numbers = #tpu.dot_dimension_numbers<[1], [0], [0], [1], [0, 0, 1, 1], [], []>} : vector<32x32xf32>, vector<32x16xf32>, vector<32x16xf32> -> vector<32x16xf32>
    %c0_86 = arith.constant 0 : index
    %c3_87 = arith.constant 3 : index
    %c0_88 = arith.constant 0 : index
    %c0_89 = arith.constant 0 : index
    %116 = vector.load %arg7[%c0_86, %c3_87, %c0_88, %c0_89] : memref<2x4x32x16xf32, #tpu.memory_space<vmem>>, vector<1x1x32x16xf32>
    %117 = vector.shape_cast %116 : vector<1x1x32x16xf32> to vector<32x16xf32>
    %cst_90 = arith.constant dense<0.000000e+00> : vector<32x16xf32>
    %118 = tpu.matmul %31, %117, %cst_90 {dimension_numbers = #tpu.dot_dimension_numbers<[1], [0], [0], [1], [0, 0, 1, 1], [], []>} : vector<32x32xf32>, vector<32x16xf32>, vector<32x16xf32> -> vector<32x16xf32>
    %119 = vector.extract_strided_slice %34 {offsets = [48, 0], sizes = [16, 32], strides = [1, 1]} : vector<64x32xf32> to vector<16x32xf32>
    %cst_91 = arith.constant dense<0.000000e+00> : vector<32x32xf32>
    %120 = tpu.matmul %115, %119, %cst_91 {dimension_numbers = #tpu.dot_dimension_numbers<[1], [0], [0], [1], [0, 0, 1, 1], [], []>} : vector<32x16xf32>, vector<16x32xf32>, vector<32x32xf32> -> vector<32x32xf32>
    %cst_92 = arith.constant 2.500000e-01 : f32
    %121 = vector.broadcast %cst_92 : f32 to vector<32x32xf32>
    %122 = arith.mulf %120, %121 : vector<32x32xf32>
    %123 = arith.addf %122, %7 : vector<32x32xf32>
    %cst_93 = arith.constant dense<0xFF800000> : vector<32xf32>
    %124 = vector.multi_reduction <maximumf>, %123, %cst_93 [1] : vector<32x32xf32> to vector<32xf32>
    %125 = vector.shape_cast %124 : vector<32xf32> to vector<32x1xf32>
    %126 = vector.broadcast %125 : vector<32x1xf32> to vector<32x32xf32>
    %127 = arith.subf %123, %126 : vector<32x32xf32>
    %128 = math.exp %127 : vector<32x32xf32>
    %cst_94 = arith.constant dense<0.000000e+00> : vector<32xf32>
    %129 = vector.multi_reduction <add>, %128, %cst_94 [1] : vector<32x32xf32> to vector<32xf32>
    %130 = vector.shape_cast %129 : vector<32xf32> to vector<32x1xf32>
    %131 = vector.broadcast %130 : vector<32x1xf32> to vector<32x32xf32>
    %132 = arith.divf %128, %131 : vector<32x32xf32>
    %cst_95 = arith.constant dense<0.000000e+00> : vector<32x16xf32>
    %133 = tpu.matmul %132, %118, %cst_95 {dimension_numbers = #tpu.dot_dimension_numbers<[1], [0], [0], [1], [0, 0, 1, 1], [], []>} : vector<32x32xf32>, vector<32x16xf32>, vector<32x16xf32> -> vector<32x16xf32>
    %c0_96 = arith.constant 0 : index
    %c3_97 = arith.constant 3 : index
    %c0_98 = arith.constant 0 : index
    %c0_99 = arith.constant 0 : index
    %134 = vector.load %arg8[%c0_96, %c3_97, %c0_98, %c0_99] : memref<2x4x16x32xf32, #tpu.memory_space<vmem>>, vector<1x1x16x32xf32>
    %135 = vector.shape_cast %134 : vector<1x1x16x32xf32> to vector<16x32xf32>
    %cst_100 = arith.constant dense<0.000000e+00> : vector<32x32xf32>
    %136 = tpu.matmul %133, %135, %cst_100 {dimension_numbers = #tpu.dot_dimension_numbers<[1], [0], [0], [1], [0, 0, 1, 1], [], []>} : vector<32x16xf32>, vector<16x32xf32>, vector<32x32xf32> -> vector<32x32xf32>
    %137 = arith.addf %112, %136 : vector<32x32xf32>
    %c0_101 = arith.constant 0 : index
    %c0_102 = arith.constant 0 : index
    %138 = vector.load %arg10[%c0_101, %c0_102] : memref<2x32xf32, #tpu.memory_space<vmem>>, vector<1x32xf32>
    %c0_103 = arith.constant 0 : index
    %c0_104 = arith.constant 0 : index
    %139 = vector.load %arg11[%c0_103, %c0_104] : memref<2x32xf32, #tpu.memory_space<vmem>>, vector<1x32xf32>
    %cst_105 = arith.constant dense<0.000000e+00> : vector<32xf32>
    %140 = vector.multi_reduction <add>, %137, %cst_105 [1] : vector<32x32xf32> to vector<32xf32>
    %141 = vector.shape_cast %140 : vector<32xf32> to vector<32x1xf32>
    %cst_106 = arith.constant 3.200000e+01 : f32
    %142 = vector.broadcast %cst_106 : f32 to vector<32x1xf32>
    %143 = arith.divf %141, %142 : vector<32x1xf32>
    %144 = vector.broadcast %143 : vector<32x1xf32> to vector<32x32xf32>
    %145 = arith.subf %137, %144 : vector<32x32xf32>
    %146 = arith.mulf %145, %145 : vector<32x32xf32>
    %cst_107 = arith.constant dense<0.000000e+00> : vector<32xf32>
    %147 = vector.multi_reduction <add>, %146, %cst_107 [1] : vector<32x32xf32> to vector<32xf32>
    %148 = vector.shape_cast %147 : vector<32xf32> to vector<32x1xf32>
    %cst_108 = arith.constant 3.200000e+01 : f32
    %149 = vector.broadcast %cst_108 : f32 to vector<32x1xf32>
    %150 = arith.divf %148, %149 : vector<32x1xf32>
    %151 = vector.broadcast %143 : vector<32x1xf32> to vector<32x32xf32>
    %152 = arith.subf %137, %151 : vector<32x32xf32>
    %cst_109 = arith.constant 9.99999974E-6 : f32
    %153 = vector.broadcast %cst_109 : f32 to vector<32x1xf32>
    %154 = arith.addf %150, %153 : vector<32x1xf32>
    %155 = math.rsqrt %154 : vector<32x1xf32>
    %156 = vector.broadcast %155 : vector<32x1xf32> to vector<32x32xf32>
    %157 = arith.mulf %152, %156 : vector<32x32xf32>
    %158 = vector.broadcast %138 : vector<1x32xf32> to vector<32x32xf32>
    %159 = arith.mulf %157, %158 : vector<32x32xf32>
    %160 = vector.broadcast %139 : vector<1x32xf32> to vector<32x32xf32>
    %161 = arith.addf %159, %160 : vector<32x32xf32>
    %c0_110 = arith.constant 0 : index
    %c0_111 = arith.constant 0 : index
    %c0_112 = arith.constant 0 : index
    %162 = vector.load %arg12[%c0_110, %c0_111, %c0_112] : memref<2x32x64xf32, #tpu.memory_space<vmem>>, vector<1x32x64xf32>
    %163 = vector.shape_cast %162 : vector<1x32x64xf32> to vector<32x64xf32>
    %cst_113 = arith.constant dense<0.000000e+00> : vector<32x64xf32>
    %164 = tpu.matmul %161, %163, %cst_113 {dimension_numbers = #tpu.dot_dimension_numbers<[1], [0], [0], [1], [0, 0, 1, 1], [], []>} : vector<32x32xf32>, vector<32x64xf32>, vector<32x64xf32> -> vector<32x64xf32>
    %c0_114 = arith.constant 0 : index
    %c0_115 = arith.constant 0 : index
    %165 = vector.load %arg13[%c0_114, %c0_115] : memref<2x64xf32, #tpu.memory_space<vmem>>, vector<1x64xf32>
    %166 = vector.broadcast %165 : vector<1x64xf32> to vector<32x64xf32>
    %167 = arith.addf %164, %166 : vector<32x64xf32>
    %cst_116 = arith.constant 5.000000e-01 : f32
    %168 = vector.broadcast %cst_116 : f32 to vector<32x64xf32>
    %169 = arith.mulf %168, %167 : vector<32x64xf32>
    %170 = arith.mulf %167, %167 : vector<32x64xf32>
    %171 = arith.mulf %170, %167 : vector<32x64xf32>
    %cst_117 = arith.constant 4.471500e-02 : f32
    %172 = vector.broadcast %cst_117 : f32 to vector<32x64xf32>
    %173 = arith.mulf %172, %171 : vector<32x64xf32>
    %174 = arith.addf %167, %173 : vector<32x64xf32>
    %cst_118 = arith.constant 0.797884583 : f32
    %175 = vector.broadcast %cst_118 : f32 to vector<32x64xf32>
    %176 = arith.mulf %175, %174 : vector<32x64xf32>
    %177 = math.tanh %176 : vector<32x64xf32>
    %cst_119 = arith.constant 1.000000e+00 : f32
    %178 = vector.broadcast %cst_119 : f32 to vector<32x64xf32>
    %179 = arith.addf %178, %177 : vector<32x64xf32>
    %180 = arith.mulf %169, %179 : vector<32x64xf32>
    %c0_120 = arith.constant 0 : index
    %c0_121 = arith.constant 0 : index
    %c0_122 = arith.constant 0 : index
    %181 = vector.load %arg14[%c0_120, %c0_121, %c0_122] : memref<2x64x32xf32, #tpu.memory_space<vmem>>, vector<1x64x32xf32>
    %182 = vector.shape_cast %181 : vector<1x64x32xf32> to vector<64x32xf32>
    %cst_123 = arith.constant dense<0.000000e+00> : vector<32x32xf32>
    %183 = tpu.matmul %180, %182, %cst_123 {dimension_numbers = #tpu.dot_dimension_numbers<[1], [0], [0], [1], [0, 0, 1, 1], [], []>} : vector<32x64xf32>, vector<64x32xf32>, vector<32x32xf32> -> vector<32x32xf32>
    %184 = arith.addf %137, %183 : vector<32x32xf32>
    %c0_124 = arith.constant 0 : index
    %c0_125 = arith.constant 0 : index
    %185 = vector.load %arg15[%c0_124, %c0_125] : memref<2x32xf32, #tpu.memory_space<vmem>>, vector<1x32xf32>
    %186 = vector.broadcast %185 : vector<1x32xf32> to vector<32x32xf32>
    %187 = arith.addf %184, %186 : vector<32x32xf32>
    %c1_126 = arith.constant 1 : index
    %c0_127 = arith.constant 0 : index
    %188 = vector.load %arg3[%c1_126, %c0_127] : memref<2x32xf32, #tpu.memory_space<vmem>>, vector<1x32xf32>
    %c1_128 = arith.constant 1 : index
    %c0_129 = arith.constant 0 : index
    %189 = vector.load %arg4[%c1_128, %c0_129] : memref<2x32xf32, #tpu.memory_space<vmem>>, vector<1x32xf32>
    %cst_130 = arith.constant dense<0.000000e+00> : vector<32xf32>
    %190 = vector.multi_reduction <add>, %187, %cst_130 [1] : vector<32x32xf32> to vector<32xf32>
    %191 = vector.shape_cast %190 : vector<32xf32> to vector<32x1xf32>
    %cst_131 = arith.constant 3.200000e+01 : f32
    %192 = vector.broadcast %cst_131 : f32 to vector<32x1xf32>
    %193 = arith.divf %191, %192 : vector<32x1xf32>
    %194 = vector.broadcast %193 : vector<32x1xf32> to vector<32x32xf32>
    %195 = arith.subf %187, %194 : vector<32x32xf32>
    %196 = arith.mulf %195, %195 : vector<32x32xf32>
    %cst_132 = arith.constant dense<0.000000e+00> : vector<32xf32>
    %197 = vector.multi_reduction <add>, %196, %cst_132 [1] : vector<32x32xf32> to vector<32xf32>
    %198 = vector.shape_cast %197 : vector<32xf32> to vector<32x1xf32>
    %cst_133 = arith.constant 3.200000e+01 : f32
    %199 = vector.broadcast %cst_133 : f32 to vector<32x1xf32>
    %200 = arith.divf %198, %199 : vector<32x1xf32>
    %201 = vector.broadcast %193 : vector<32x1xf32> to vector<32x32xf32>
    %202 = arith.subf %187, %201 : vector<32x32xf32>
    %cst_134 = arith.constant 9.99999974E-6 : f32
    %203 = vector.broadcast %cst_134 : f32 to vector<32x1xf32>
    %204 = arith.addf %200, %203 : vector<32x1xf32>
    %205 = math.rsqrt %204 : vector<32x1xf32>
    %206 = vector.broadcast %205 : vector<32x1xf32> to vector<32x32xf32>
    %207 = arith.mulf %202, %206 : vector<32x32xf32>
    %208 = vector.broadcast %188 : vector<1x32xf32> to vector<32x32xf32>
    %209 = arith.mulf %207, %208 : vector<32x32xf32>
    %210 = vector.broadcast %189 : vector<1x32xf32> to vector<32x32xf32>
    %211 = arith.addf %209, %210 : vector<32x32xf32>
    %c1_135 = arith.constant 1 : index
    %c0_136 = arith.constant 0 : index
    %c0_137 = arith.constant 0 : index
    %212 = vector.load %arg6[%c1_135, %c0_136, %c0_137] : memref<2x64x32xf32, #tpu.memory_space<vmem>>, vector<1x64x32xf32>
    %213 = vector.shape_cast %212 : vector<1x64x32xf32> to vector<64x32xf32>
    %cst_138 = arith.constant dense<0.000000e+00> : vector<64x32xf32>
    %214 = tpu.matmul %213, %211, %cst_138 {dimension_numbers = #tpu.dot_dimension_numbers<[1], [1], [0], [0], [0, 0, 1, 0], [], []>} : vector<64x32xf32>, vector<32x32xf32>, vector<64x32xf32> -> vector<64x32xf32>
    %c1_139 = arith.constant 1 : index
    %c0_140 = arith.constant 0 : index
    %215 = vector.load %arg9[%c1_139, %c0_140] : memref<2x32xf32, #tpu.memory_space<vmem>>, vector<1x32xf32>
    %216 = vector.broadcast %215 : vector<1x32xf32> to vector<32x32xf32>
    %217 = arith.addf %187, %216 : vector<32x32xf32>
    %c1_141 = arith.constant 1 : index
    %c0_142 = arith.constant 0 : index
    %c0_143 = arith.constant 0 : index
    %c0_144 = arith.constant 0 : index
    %218 = vector.load %arg5[%c1_141, %c0_142, %c0_143, %c0_144] : memref<2x4x32x16xf32, #tpu.memory_space<vmem>>, vector<1x1x32x16xf32>
    %219 = vector.shape_cast %218 : vector<1x1x32x16xf32> to vector<32x16xf32>
    %cst_145 = arith.constant dense<0.000000e+00> : vector<32x16xf32>
    %220 = tpu.matmul %211, %219, %cst_145 {dimension_numbers = #tpu.dot_dimension_numbers<[1], [0], [0], [1], [0, 0, 1, 1], [], []>} : vector<32x32xf32>, vector<32x16xf32>, vector<32x16xf32> -> vector<32x16xf32>
    %c1_146 = arith.constant 1 : index
    %c0_147 = arith.constant 0 : index
    %c0_148 = arith.constant 0 : index
    %c0_149 = arith.constant 0 : index
    %221 = vector.load %arg7[%c1_146, %c0_147, %c0_148, %c0_149] : memref<2x4x32x16xf32, #tpu.memory_space<vmem>>, vector<1x1x32x16xf32>
    %222 = vector.shape_cast %221 : vector<1x1x32x16xf32> to vector<32x16xf32>
    %cst_150 = arith.constant dense<0.000000e+00> : vector<32x16xf32>
    %223 = tpu.matmul %211, %222, %cst_150 {dimension_numbers = #tpu.dot_dimension_numbers<[1], [0], [0], [1], [0, 0, 1, 1], [], []>} : vector<32x32xf32>, vector<32x16xf32>, vector<32x16xf32> -> vector<32x16xf32>
    %224 = vector.extract_strided_slice %214 {offsets = [0, 0], sizes = [16, 32], strides = [1, 1]} : vector<64x32xf32> to vector<16x32xf32>
    %cst_151 = arith.constant dense<0.000000e+00> : vector<32x32xf32>
    %225 = tpu.matmul %220, %224, %cst_151 {dimension_numbers = #tpu.dot_dimension_numbers<[1], [0], [0], [1], [0, 0, 1, 1], [], []>} : vector<32x16xf32>, vector<16x32xf32>, vector<32x32xf32> -> vector<32x32xf32>
    %cst_152 = arith.constant 2.500000e-01 : f32
    %226 = vector.broadcast %cst_152 : f32 to vector<32x32xf32>
    %227 = arith.mulf %225, %226 : vector<32x32xf32>
    %228 = arith.addf %227, %7 : vector<32x32xf32>
    %cst_153 = arith.constant dense<0xFF800000> : vector<32xf32>
    %229 = vector.multi_reduction <maximumf>, %228, %cst_153 [1] : vector<32x32xf32> to vector<32xf32>
    %230 = vector.shape_cast %229 : vector<32xf32> to vector<32x1xf32>
    %231 = vector.broadcast %230 : vector<32x1xf32> to vector<32x32xf32>
    %232 = arith.subf %228, %231 : vector<32x32xf32>
    %233 = math.exp %232 : vector<32x32xf32>
    %cst_154 = arith.constant dense<0.000000e+00> : vector<32xf32>
    %234 = vector.multi_reduction <add>, %233, %cst_154 [1] : vector<32x32xf32> to vector<32xf32>
    %235 = vector.shape_cast %234 : vector<32xf32> to vector<32x1xf32>
    %236 = vector.broadcast %235 : vector<32x1xf32> to vector<32x32xf32>
    %237 = arith.divf %233, %236 : vector<32x32xf32>
    %cst_155 = arith.constant dense<0.000000e+00> : vector<32x16xf32>
    %238 = tpu.matmul %237, %223, %cst_155 {dimension_numbers = #tpu.dot_dimension_numbers<[1], [0], [0], [1], [0, 0, 1, 1], [], []>} : vector<32x32xf32>, vector<32x16xf32>, vector<32x16xf32> -> vector<32x16xf32>
    %c1_156 = arith.constant 1 : index
    %c0_157 = arith.constant 0 : index
    %c0_158 = arith.constant 0 : index
    %c0_159 = arith.constant 0 : index
    %239 = vector.load %arg8[%c1_156, %c0_157, %c0_158, %c0_159] : memref<2x4x16x32xf32, #tpu.memory_space<vmem>>, vector<1x1x16x32xf32>
    %240 = vector.shape_cast %239 : vector<1x1x16x32xf32> to vector<16x32xf32>
    %cst_160 = arith.constant dense<0.000000e+00> : vector<32x32xf32>
    %241 = tpu.matmul %238, %240, %cst_160 {dimension_numbers = #tpu.dot_dimension_numbers<[1], [0], [0], [1], [0, 0, 1, 1], [], []>} : vector<32x16xf32>, vector<16x32xf32>, vector<32x32xf32> -> vector<32x32xf32>
    %242 = arith.addf %217, %241 : vector<32x32xf32>
    %c1_161 = arith.constant 1 : index
    %c1_162 = arith.constant 1 : index
    %c0_163 = arith.constant 0 : index
    %c0_164 = arith.constant 0 : index
    %243 = vector.load %arg5[%c1_161, %c1_162, %c0_163, %c0_164] : memref<2x4x32x16xf32, #tpu.memory_space<vmem>>, vector<1x1x32x16xf32>
    %244 = vector.shape_cast %243 : vector<1x1x32x16xf32> to vector<32x16xf32>
    %cst_165 = arith.constant dense<0.000000e+00> : vector<32x16xf32>
    %245 = tpu.matmul %211, %244, %cst_165 {dimension_numbers = #tpu.dot_dimension_numbers<[1], [0], [0], [1], [0, 0, 1, 1], [], []>} : vector<32x32xf32>, vector<32x16xf32>, vector<32x16xf32> -> vector<32x16xf32>
    %c1_166 = arith.constant 1 : index
    %c1_167 = arith.constant 1 : index
    %c0_168 = arith.constant 0 : index
    %c0_169 = arith.constant 0 : index
    %246 = vector.load %arg7[%c1_166, %c1_167, %c0_168, %c0_169] : memref<2x4x32x16xf32, #tpu.memory_space<vmem>>, vector<1x1x32x16xf32>
    %247 = vector.shape_cast %246 : vector<1x1x32x16xf32> to vector<32x16xf32>
    %cst_170 = arith.constant dense<0.000000e+00> : vector<32x16xf32>
    %248 = tpu.matmul %211, %247, %cst_170 {dimension_numbers = #tpu.dot_dimension_numbers<[1], [0], [0], [1], [0, 0, 1, 1], [], []>} : vector<32x32xf32>, vector<32x16xf32>, vector<32x16xf32> -> vector<32x16xf32>
    %249 = vector.extract_strided_slice %214 {offsets = [16, 0], sizes = [16, 32], strides = [1, 1]} : vector<64x32xf32> to vector<16x32xf32>
    %cst_171 = arith.constant dense<0.000000e+00> : vector<32x32xf32>
    %250 = tpu.matmul %245, %249, %cst_171 {dimension_numbers = #tpu.dot_dimension_numbers<[1], [0], [0], [1], [0, 0, 1, 1], [], []>} : vector<32x16xf32>, vector<16x32xf32>, vector<32x32xf32> -> vector<32x32xf32>
    %cst_172 = arith.constant 2.500000e-01 : f32
    %251 = vector.broadcast %cst_172 : f32 to vector<32x32xf32>
    %252 = arith.mulf %250, %251 : vector<32x32xf32>
    %253 = arith.addf %252, %7 : vector<32x32xf32>
    %cst_173 = arith.constant dense<0xFF800000> : vector<32xf32>
    %254 = vector.multi_reduction <maximumf>, %253, %cst_173 [1] : vector<32x32xf32> to vector<32xf32>
    %255 = vector.shape_cast %254 : vector<32xf32> to vector<32x1xf32>
    %256 = vector.broadcast %255 : vector<32x1xf32> to vector<32x32xf32>
    %257 = arith.subf %253, %256 : vector<32x32xf32>
    %258 = math.exp %257 : vector<32x32xf32>
    %cst_174 = arith.constant dense<0.000000e+00> : vector<32xf32>
    %259 = vector.multi_reduction <add>, %258, %cst_174 [1] : vector<32x32xf32> to vector<32xf32>
    %260 = vector.shape_cast %259 : vector<32xf32> to vector<32x1xf32>
    %261 = vector.broadcast %260 : vector<32x1xf32> to vector<32x32xf32>
    %262 = arith.divf %258, %261 : vector<32x32xf32>
    %cst_175 = arith.constant dense<0.000000e+00> : vector<32x16xf32>
    %263 = tpu.matmul %262, %248, %cst_175 {dimension_numbers = #tpu.dot_dimension_numbers<[1], [0], [0], [1], [0, 0, 1, 1], [], []>} : vector<32x32xf32>, vector<32x16xf32>, vector<32x16xf32> -> vector<32x16xf32>
    %c1_176 = arith.constant 1 : index
    %c1_177 = arith.constant 1 : index
    %c0_178 = arith.constant 0 : index
    %c0_179 = arith.constant 0 : index
    %264 = vector.load %arg8[%c1_176, %c1_177, %c0_178, %c0_179] : memref<2x4x16x32xf32, #tpu.memory_space<vmem>>, vector<1x1x16x32xf32>
    %265 = vector.shape_cast %264 : vector<1x1x16x32xf32> to vector<16x32xf32>
    %cst_180 = arith.constant dense<0.000000e+00> : vector<32x32xf32>
    %266 = tpu.matmul %263, %265, %cst_180 {dimension_numbers = #tpu.dot_dimension_numbers<[1], [0], [0], [1], [0, 0, 1, 1], [], []>} : vector<32x16xf32>, vector<16x32xf32>, vector<32x32xf32> -> vector<32x32xf32>
    %267 = arith.addf %242, %266 : vector<32x32xf32>
    %c1_181 = arith.constant 1 : index
    %c2_182 = arith.constant 2 : index
    %c0_183 = arith.constant 0 : index
    %c0_184 = arith.constant 0 : index
    %268 = vector.load %arg5[%c1_181, %c2_182, %c0_183, %c0_184] : memref<2x4x32x16xf32, #tpu.memory_space<vmem>>, vector<1x1x32x16xf32>
    %269 = vector.shape_cast %268 : vector<1x1x32x16xf32> to vector<32x16xf32>
    %cst_185 = arith.constant dense<0.000000e+00> : vector<32x16xf32>
    %270 = tpu.matmul %211, %269, %cst_185 {dimension_numbers = #tpu.dot_dimension_numbers<[1], [0], [0], [1], [0, 0, 1, 1], [], []>} : vector<32x32xf32>, vector<32x16xf32>, vector<32x16xf32> -> vector<32x16xf32>
    %c1_186 = arith.constant 1 : index
    %c2_187 = arith.constant 2 : index
    %c0_188 = arith.constant 0 : index
    %c0_189 = arith.constant 0 : index
    %271 = vector.load %arg7[%c1_186, %c2_187, %c0_188, %c0_189] : memref<2x4x32x16xf32, #tpu.memory_space<vmem>>, vector<1x1x32x16xf32>
    %272 = vector.shape_cast %271 : vector<1x1x32x16xf32> to vector<32x16xf32>
    %cst_190 = arith.constant dense<0.000000e+00> : vector<32x16xf32>
    %273 = tpu.matmul %211, %272, %cst_190 {dimension_numbers = #tpu.dot_dimension_numbers<[1], [0], [0], [1], [0, 0, 1, 1], [], []>} : vector<32x32xf32>, vector<32x16xf32>, vector<32x16xf32> -> vector<32x16xf32>
    %274 = vector.extract_strided_slice %214 {offsets = [32, 0], sizes = [16, 32], strides = [1, 1]} : vector<64x32xf32> to vector<16x32xf32>
    %cst_191 = arith.constant dense<0.000000e+00> : vector<32x32xf32>
    %275 = tpu.matmul %270, %274, %cst_191 {dimension_numbers = #tpu.dot_dimension_numbers<[1], [0], [0], [1], [0, 0, 1, 1], [], []>} : vector<32x16xf32>, vector<16x32xf32>, vector<32x32xf32> -> vector<32x32xf32>
    %cst_192 = arith.constant 2.500000e-01 : f32
    %276 = vector.broadcast %cst_192 : f32 to vector<32x32xf32>
    %277 = arith.mulf %275, %276 : vector<32x32xf32>
    %278 = arith.addf %277, %7 : vector<32x32xf32>
    %cst_193 = arith.constant dense<0xFF800000> : vector<32xf32>
    %279 = vector.multi_reduction <maximumf>, %278, %cst_193 [1] : vector<32x32xf32> to vector<32xf32>
    %280 = vector.shape_cast %279 : vector<32xf32> to vector<32x1xf32>
    %281 = vector.broadcast %280 : vector<32x1xf32> to vector<32x32xf32>
    %282 = arith.subf %278, %281 : vector<32x32xf32>
    %283 = math.exp %282 : vector<32x32xf32>
    %cst_194 = arith.constant dense<0.000000e+00> : vector<32xf32>
    %284 = vector.multi_reduction <add>, %283, %cst_194 [1] : vector<32x32xf32> to vector<32xf32>
    %285 = vector.shape_cast %284 : vector<32xf32> to vector<32x1xf32>
    %286 = vector.broadcast %285 : vector<32x1xf32> to vector<32x32xf32>
    %287 = arith.divf %283, %286 : vector<32x32xf32>
    %cst_195 = arith.constant dense<0.000000e+00> : vector<32x16xf32>
    %288 = tpu.matmul %287, %273, %cst_195 {dimension_numbers = #tpu.dot_dimension_numbers<[1], [0], [0], [1], [0, 0, 1, 1], [], []>} : vector<32x32xf32>, vector<32x16xf32>, vector<32x16xf32> -> vector<32x16xf32>
    %c1_196 = arith.constant 1 : index
    %c2_197 = arith.constant 2 : index
    %c0_198 = arith.constant 0 : index
    %c0_199 = arith.constant 0 : index
    %289 = vector.load %arg8[%c1_196, %c2_197, %c0_198, %c0_199] : memref<2x4x16x32xf32, #tpu.memory_space<vmem>>, vector<1x1x16x32xf32>
    %290 = vector.shape_cast %289 : vector<1x1x16x32xf32> to vector<16x32xf32>
    %cst_200 = arith.constant dense<0.000000e+00> : vector<32x32xf32>
    %291 = tpu.matmul %288, %290, %cst_200 {dimension_numbers = #tpu.dot_dimension_numbers<[1], [0], [0], [1], [0, 0, 1, 1], [], []>} : vector<32x16xf32>, vector<16x32xf32>, vector<32x32xf32> -> vector<32x32xf32>
    %292 = arith.addf %267, %291 : vector<32x32xf32>
    %c1_201 = arith.constant 1 : index
    %c3_202 = arith.constant 3 : index
    %c0_203 = arith.constant 0 : index
    %c0_204 = arith.constant 0 : index
    %293 = vector.load %arg5[%c1_201, %c3_202, %c0_203, %c0_204] : memref<2x4x32x16xf32, #tpu.memory_space<vmem>>, vector<1x1x32x16xf32>
    %294 = vector.shape_cast %293 : vector<1x1x32x16xf32> to vector<32x16xf32>
    %cst_205 = arith.constant dense<0.000000e+00> : vector<32x16xf32>
    %295 = tpu.matmul %211, %294, %cst_205 {dimension_numbers = #tpu.dot_dimension_numbers<[1], [0], [0], [1], [0, 0, 1, 1], [], []>} : vector<32x32xf32>, vector<32x16xf32>, vector<32x16xf32> -> vector<32x16xf32>
    %c1_206 = arith.constant 1 : index
    %c3_207 = arith.constant 3 : index
    %c0_208 = arith.constant 0 : index
    %c0_209 = arith.constant 0 : index
    %296 = vector.load %arg7[%c1_206, %c3_207, %c0_208, %c0_209] : memref<2x4x32x16xf32, #tpu.memory_space<vmem>>, vector<1x1x32x16xf32>
    %297 = vector.shape_cast %296 : vector<1x1x32x16xf32> to vector<32x16xf32>
    %cst_210 = arith.constant dense<0.000000e+00> : vector<32x16xf32>
    %298 = tpu.matmul %211, %297, %cst_210 {dimension_numbers = #tpu.dot_dimension_numbers<[1], [0], [0], [1], [0, 0, 1, 1], [], []>} : vector<32x32xf32>, vector<32x16xf32>, vector<32x16xf32> -> vector<32x16xf32>
    %299 = vector.extract_strided_slice %214 {offsets = [48, 0], sizes = [16, 32], strides = [1, 1]} : vector<64x32xf32> to vector<16x32xf32>
    %cst_211 = arith.constant dense<0.000000e+00> : vector<32x32xf32>
    %300 = tpu.matmul %295, %299, %cst_211 {dimension_numbers = #tpu.dot_dimension_numbers<[1], [0], [0], [1], [0, 0, 1, 1], [], []>} : vector<32x16xf32>, vector<16x32xf32>, vector<32x32xf32> -> vector<32x32xf32>
    %cst_212 = arith.constant 2.500000e-01 : f32
    %301 = vector.broadcast %cst_212 : f32 to vector<32x32xf32>
    %302 = arith.mulf %300, %301 : vector<32x32xf32>
    %303 = arith.addf %302, %7 : vector<32x32xf32>
    %cst_213 = arith.constant dense<0xFF800000> : vector<32xf32>
    %304 = vector.multi_reduction <maximumf>, %303, %cst_213 [1] : vector<32x32xf32> to vector<32xf32>
    %305 = vector.shape_cast %304 : vector<32xf32> to vector<32x1xf32>
    %306 = vector.broadcast %305 : vector<32x1xf32> to vector<32x32xf32>
    %307 = arith.subf %303, %306 : vector<32x32xf32>
    %308 = math.exp %307 : vector<32x32xf32>
    %cst_214 = arith.constant dense<0.000000e+00> : vector<32xf32>
    %309 = vector.multi_reduction <add>, %308, %cst_214 [1] : vector<32x32xf32> to vector<32xf32>
    %310 = vector.shape_cast %309 : vector<32xf32> to vector<32x1xf32>
    %311 = vector.broadcast %310 : vector<32x1xf32> to vector<32x32xf32>
    %312 = arith.divf %308, %311 : vector<32x32xf32>
    %cst_215 = arith.constant dense<0.000000e+00> : vector<32x16xf32>
    %313 = tpu.matmul %312, %298, %cst_215 {dimension_numbers = #tpu.dot_dimension_numbers<[1], [0], [0], [1], [0, 0, 1, 1], [], []>} : vector<32x32xf32>, vector<32x16xf32>, vector<32x16xf32> -> vector<32x16xf32>
    %c1_216 = arith.constant 1 : index
    %c3_217 = arith.constant 3 : index
    %c0_218 = arith.constant 0 : index
    %c0_219 = arith.constant 0 : index
    %314 = vector.load %arg8[%c1_216, %c3_217, %c0_218, %c0_219] : memref<2x4x16x32xf32, #tpu.memory_space<vmem>>, vector<1x1x16x32xf32>
    %315 = vector.shape_cast %314 : vector<1x1x16x32xf32> to vector<16x32xf32>
    %cst_220 = arith.constant dense<0.000000e+00> : vector<32x32xf32>
    %316 = tpu.matmul %313, %315, %cst_220 {dimension_numbers = #tpu.dot_dimension_numbers<[1], [0], [0], [1], [0, 0, 1, 1], [], []>} : vector<32x16xf32>, vector<16x32xf32>, vector<32x32xf32> -> vector<32x32xf32>
    %317 = arith.addf %292, %316 : vector<32x32xf32>
    %c1_221 = arith.constant 1 : index
    %c0_222 = arith.constant 0 : index
    %318 = vector.load %arg10[%c1_221, %c0_222] : memref<2x32xf32, #tpu.memory_space<vmem>>, vector<1x32xf32>
    %c1_223 = arith.constant 1 : index
    %c0_224 = arith.constant 0 : index
    %319 = vector.load %arg11[%c1_223, %c0_224] : memref<2x32xf32, #tpu.memory_space<vmem>>, vector<1x32xf32>
    %cst_225 = arith.constant dense<0.000000e+00> : vector<32xf32>
    %320 = vector.multi_reduction <add>, %317, %cst_225 [1] : vector<32x32xf32> to vector<32xf32>
    %321 = vector.shape_cast %320 : vector<32xf32> to vector<32x1xf32>
    %cst_226 = arith.constant 3.200000e+01 : f32
    %322 = vector.broadcast %cst_226 : f32 to vector<32x1xf32>
    %323 = arith.divf %321, %322 : vector<32x1xf32>
    %324 = vector.broadcast %323 : vector<32x1xf32> to vector<32x32xf32>
    %325 = arith.subf %317, %324 : vector<32x32xf32>
    %326 = arith.mulf %325, %325 : vector<32x32xf32>
    %cst_227 = arith.constant dense<0.000000e+00> : vector<32xf32>
    %327 = vector.multi_reduction <add>, %326, %cst_227 [1] : vector<32x32xf32> to vector<32xf32>
    %328 = vector.shape_cast %327 : vector<32xf32> to vector<32x1xf32>
    %cst_228 = arith.constant 3.200000e+01 : f32
    %329 = vector.broadcast %cst_228 : f32 to vector<32x1xf32>
    %330 = arith.divf %328, %329 : vector<32x1xf32>
    %331 = vector.broadcast %323 : vector<32x1xf32> to vector<32x32xf32>
    %332 = arith.subf %317, %331 : vector<32x32xf32>
    %cst_229 = arith.constant 9.99999974E-6 : f32
    %333 = vector.broadcast %cst_229 : f32 to vector<32x1xf32>
    %334 = arith.addf %330, %333 : vector<32x1xf32>
    %335 = math.rsqrt %334 : vector<32x1xf32>
    %336 = vector.broadcast %335 : vector<32x1xf32> to vector<32x32xf32>
    %337 = arith.mulf %332, %336 : vector<32x32xf32>
    %338 = vector.broadcast %318 : vector<1x32xf32> to vector<32x32xf32>
    %339 = arith.mulf %337, %338 : vector<32x32xf32>
    %340 = vector.broadcast %319 : vector<1x32xf32> to vector<32x32xf32>
    %341 = arith.addf %339, %340 : vector<32x32xf32>
    %c1_230 = arith.constant 1 : index
    %c0_231 = arith.constant 0 : index
    %c0_232 = arith.constant 0 : index
    %342 = vector.load %arg12[%c1_230, %c0_231, %c0_232] : memref<2x32x64xf32, #tpu.memory_space<vmem>>, vector<1x32x64xf32>
    %343 = vector.shape_cast %342 : vector<1x32x64xf32> to vector<32x64xf32>
    %cst_233 = arith.constant dense<0.000000e+00> : vector<32x64xf32>
    %344 = tpu.matmul %341, %343, %cst_233 {dimension_numbers = #tpu.dot_dimension_numbers<[1], [0], [0], [1], [0, 0, 1, 1], [], []>} : vector<32x32xf32>, vector<32x64xf32>, vector<32x64xf32> -> vector<32x64xf32>
    %c1_234 = arith.constant 1 : index
    %c0_235 = arith.constant 0 : index
    %345 = vector.load %arg13[%c1_234, %c0_235] : memref<2x64xf32, #tpu.memory_space<vmem>>, vector<1x64xf32>
    %346 = vector.broadcast %345 : vector<1x64xf32> to vector<32x64xf32>
    %347 = arith.addf %344, %346 : vector<32x64xf32>
    %cst_236 = arith.constant 5.000000e-01 : f32
    %348 = vector.broadcast %cst_236 : f32 to vector<32x64xf32>
    %349 = arith.mulf %348, %347 : vector<32x64xf32>
    %350 = arith.mulf %347, %347 : vector<32x64xf32>
    %351 = arith.mulf %350, %347 : vector<32x64xf32>
    %cst_237 = arith.constant 4.471500e-02 : f32
    %352 = vector.broadcast %cst_237 : f32 to vector<32x64xf32>
    %353 = arith.mulf %352, %351 : vector<32x64xf32>
    %354 = arith.addf %347, %353 : vector<32x64xf32>
    %cst_238 = arith.constant 0.797884583 : f32
    %355 = vector.broadcast %cst_238 : f32 to vector<32x64xf32>
    %356 = arith.mulf %355, %354 : vector<32x64xf32>
    %357 = math.tanh %356 : vector<32x64xf32>
    %cst_239 = arith.constant 1.000000e+00 : f32
    %358 = vector.broadcast %cst_239 : f32 to vector<32x64xf32>
    %359 = arith.addf %358, %357 : vector<32x64xf32>
    %360 = arith.mulf %349, %359 : vector<32x64xf32>
    %c1_240 = arith.constant 1 : index
    %c0_241 = arith.constant 0 : index
    %c0_242 = arith.constant 0 : index
    %361 = vector.load %arg14[%c1_240, %c0_241, %c0_242] : memref<2x64x32xf32, #tpu.memory_space<vmem>>, vector<1x64x32xf32>
    %362 = vector.shape_cast %361 : vector<1x64x32xf32> to vector<64x32xf32>
    %cst_243 = arith.constant dense<0.000000e+00> : vector<32x32xf32>
    %363 = tpu.matmul %360, %362, %cst_243 {dimension_numbers = #tpu.dot_dimension_numbers<[1], [0], [0], [1], [0, 0, 1, 1], [], []>} : vector<32x64xf32>, vector<64x32xf32>, vector<32x32xf32> -> vector<32x32xf32>
    %364 = arith.addf %317, %363 : vector<32x32xf32>
    %c1_244 = arith.constant 1 : index
    %c0_245 = arith.constant 0 : index
    %365 = vector.load %arg15[%c1_244, %c0_245] : memref<2x32xf32, #tpu.memory_space<vmem>>, vector<1x32xf32>
    %366 = vector.broadcast %365 : vector<1x32xf32> to vector<32x32xf32>
    %367 = arith.addf %364, %366 : vector<32x32xf32>
    %368 = vector.extract_strided_slice %367 {offsets = [8, 0], sizes = [1, 32], strides = [1, 1]} : vector<32x32xf32> to vector<1x32xf32>
    %369 = vector.extract_strided_slice %367 {offsets = [24, 0], sizes = [1, 32], strides = [1, 1]} : vector<32x32xf32> to vector<1x32xf32>
    %370 = tpu.concatenate %368, %369 in 0 : vector<1x32xf32>, vector<1x32xf32> -> vector<2x32xf32>
    %c0_246 = arith.constant 0 : index
    %c0_247 = arith.constant 0 : index
    %371 = vector.load %arg16[%c0_246, %c0_247] : memref<1x32xf32, #tpu.memory_space<vmem>>, vector<1x32xf32>
    %c0_248 = arith.constant 0 : index
    %c0_249 = arith.constant 0 : index
    %372 = vector.load %arg17[%c0_248, %c0_249] : memref<1x32xf32, #tpu.memory_space<vmem>>, vector<1x32xf32>
    %cst_250 = arith.constant dense<0.000000e+00> : vector<2xf32>
    %373 = vector.multi_reduction <add>, %370, %cst_250 [1] : vector<2x32xf32> to vector<2xf32>
    %374 = vector.shape_cast %373 : vector<2xf32> to vector<2x1xf32>
    %cst_251 = arith.constant 3.200000e+01 : f32
    %375 = vector.broadcast %cst_251 : f32 to vector<2x1xf32>
    %376 = arith.divf %374, %375 : vector<2x1xf32>
    %377 = vector.broadcast %376 : vector<2x1xf32> to vector<2x32xf32>
    %378 = arith.subf %370, %377 : vector<2x32xf32>
    %379 = arith.mulf %378, %378 : vector<2x32xf32>
    %cst_252 = arith.constant dense<0.000000e+00> : vector<2xf32>
    %380 = vector.multi_reduction <add>, %379, %cst_252 [1] : vector<2x32xf32> to vector<2xf32>
    %381 = vector.shape_cast %380 : vector<2xf32> to vector<2x1xf32>
    %cst_253 = arith.constant 3.200000e+01 : f32
    %382 = vector.broadcast %cst_253 : f32 to vector<2x1xf32>
    %383 = arith.divf %381, %382 : vector<2x1xf32>
    %384 = vector.broadcast %376 : vector<2x1xf32> to vector<2x32xf32>
    %385 = arith.subf %370, %384 : vector<2x32xf32>
    %cst_254 = arith.constant 9.99999974E-6 : f32
    %386 = vector.broadcast %cst_254 : f32 to vector<2x1xf32>
    %387 = arith.addf %383, %386 : vector<2x1xf32>
    %388 = math.rsqrt %387 : vector<2x1xf32>
    %389 = vector.broadcast %388 : vector<2x1xf32> to vector<2x32xf32>
    %390 = arith.mulf %385, %389 : vector<2x32xf32>
    %391 = vector.broadcast %371 : vector<1x32xf32> to vector<2x32xf32>
    %392 = arith.mulf %390, %391 : vector<2x32xf32>
    %393 = vector.broadcast %372 : vector<1x32xf32> to vector<2x32xf32>
    %394 = arith.addf %392, %393 : vector<2x32xf32>
    %c0_255 = arith.constant 0 : index
    %c0_256 = arith.constant 0 : index
    %395 = vector.load %arg18[%c0_255, %c0_256] : memref<2x32xf32, #tpu.memory_space<vmem>>, vector<2x32xf32>
    tpu.vector_store %arg18[%c0_255, %c0_256], %394 {strides = array<i32>} : memref<2x32xf32, #tpu.memory_space<vmem>>, vector<2x32xf32>,
    return
  }
}

</mosaic_0001>

<bundles_post_ra>
// kernel: tpu_custom_call.1
= control target key start
LH: loop header
LB: loop body
LE: loop exit
PB: predicated region body
PF: predicated region fallthrough
CT: control target
= control target key end

     0   :  { %s8397_s0 = inlined_call_operand.vmem [shape: f32[2,8,32], index: 0, kind: input, shape index: {}]   ;;  %s8398_s1 = inlined_call_operand.vmem [shape: f32[1,32], index: 1, kind: input, shape index: {}]   ;;  %s8399_s2 = inlined_call_operand.vmem [shape: f32[32,32], index: 2, kind: input, shape index: {}]   ;;  %s8400_s3 = inlined_call_operand.vmem [shape: f32[2,32], index: 3, kind: input, shape index: {}]   ;;  %s8401_s4 = inlined_call_operand.vmem [shape: f32[2,32], index: 4, kind: input, shape index: {}]   ;;  %s8402_s5 = inlined_call_operand.vmem [shape: f32[2,4,32,16], index: 5, kind: input, shape index: {}]   ;;  %s8403_s6 = inlined_call_operand.vmem [shape: f32[2,64,32], index: 6, kind: input, shape index: {}]   ;;  %s8404_s7 = inlined_call_operand.vmem [shape: f32[2,4,32,16], index: 7, kind: input, shape index: {}]   ;;  %s8405_s8 = inlined_call_operand.vmem [shape: f32[2,4,16,32], index: 8, kind: input, shape index: {}]   ;;  %s8406_s9 = inlined_call_operand.vmem [shape: f32[2,32], index: 9, kind: input, shape index: {}]   ;;  %s8407_s10 = inlined_call_operand.vmem [shape: f32[2,32], index: 10, kind: input, shape index: {}]   ;;  %s8408_s11 = inlined_call_operand.vmem [shape: f32[2,32], index: 11, kind: input, shape index: {}]   ;;  %s8409_s12 = inlined_call_operand.vmem [shape: f32[2,32,64], index: 12, kind: input, shape index: {}]   ;;  %s8410_s13 = inlined_call_operand.vmem [shape: f32[2,64], index: 13, kind: input, shape index: {}]   ;;  %s8411_s14 = inlined_call_operand.vmem [shape: f32[2,64,32], index: 14, kind: input, shape index: {}]   ;;  %s8412_s15 = inlined_call_operand.vmem [shape: f32[2,32], index: 15, kind: input, shape index: {}]   ;;  %s8413_s16 = inlined_call_operand.vmem [shape: f32[1,32], index: 16, kind: input, shape index: {}]   ;;  %s8414_s17 = inlined_call_operand.vmem [shape: f32[1,32], index: 17, kind: input, shape index: {}]   ;;  %s8415_s18 = inlined_call_operand.hbm [shape: f32[2,32], index: 18, kind: output, shape index: {}]  }
   0x1   :  { %8418 = sst [smem:[#allocation5_spill]] %s8397_s0 }
   0x2   :  { %8419 = sst [smem:[#allocation6_spill]] %s8398_s1 }
   0x3   :  { %8420 = sst [smem:[#allocation7_spill]] %s8399_s2 }
   0x4   :  { %s8421_s29 = sld [smem:[#allocation5_spill]]  ;;  %vm72_vm0 = vcmask 261120   ;;  %s8422_s20 = sld [smem:[#allocation6_spill]]  ;;  %vm64_vm1 = vcmask 1040384  }
   0xa   :  { %v61_v0 = vld [vmem:[%s8421_s29] sm:$0xff]  ;;  %v5454_v1 = vld [vmem:[%s8421_s29 + $0x8] sm:$0xff] }
   0xb   :  { %v60_v2 = vld [vmem:[%s8422_s20] sm:$0x1]  ;;  %v73_v3 = vsel %vm72_vm0, %v61_v0, 0.0  ;;  %v79_v4 = vsel %vm72_vm0, %v5454_v1, 0.0 }
   0xc   :  { %v7396_v5 = vsel %vm64_vm1, %v60_v2, 0.0 }
   0xd   :  { %23 = vsyncpa [#allocation3], 0  ;;  %74 = vadd.xlane.f32.xlu0 %v73_v3  ;;  %80 = vadd.xlane.f32.xlu1 %v79_v4  ;;  %v76_v6 = vsel %vm72_vm0, %v7396_v5, 0.0  ;;  %v281_v22 = vld [vmem:[%s8402_s5] sm:$0xff]  ;;  %v282_v23 = vld [vmem:[%s8402_s5 + $0x8] sm:$0xff]  ;;  %vm459_vm3 = vcmask 130048  }
   0xe   :  { %v6733_v24 = vpack.c.bf16 %v282_v23, %v281_v22  ;;  %v283_v25 = vld [vmem:[%s8402_s5 + $0x10] sm:$0xff]  ;;  %v284_v26 = vld [vmem:[%s8402_s5 + $0x18] sm:$0xff]  ;;  %v370_v28 = vld [vmem:[%s8404_s7] sm:$0xff]  ;;  %s8425_s26 = sld [smem:[#allocation7_spill]]  ;;  %vm2619_vm4 = vcmask 523264   ;;  %vm5411_vm5 = vcmask 254976  }
   0xf   :  { %v6737_v27 = vpack.c.bf16 %v284_v26, %v283_v25  ;;  %v371_v29 = vld [vmem:[%s8404_s7 + $0x8] sm:$0xff]  ;;  %v127_v31 = vld [vmem:[%s8403_s6] sm:$0xff]  ;;  %v372_v52 = vld [vmem:[%s8404_s7 + $0x10] sm:$0xff] }
  0x10   :  { %6734 = vmatprep.subr.bf16.mxu1 %v6733_v24  ;;  %v6741_v30 = vpack.c.bf16 %v371_v29, %v370_v28  ;;  %6121 = vmatprep.mubr.msk.f32.mxu0 %vm72_vm0, %v127_v31  ;;  %v5455_v42 = vld [vmem:[%s8400_s3] ss:$0 sm:$0xff]  ;;  %v373_v53 = vld [vmem:[%s8404_s7 + $0x18] sm:$0xff]  ;;  %vm7448_vm2 = vmpackc.low %vm72_vm0, %vm72_vm0 }
  0x11   :  { %77 = vadd.xlane.f32.xlu0 %v76_v6  ;;  %6736 = vmatpush3.bf16.msra.mxu1 %v6733_v24  ;;  %v5456_v44 = vld [vmem:[%s8401_s4] ss:$0 sm:$0xff]  ;;  %v6745_v57 = vpack.c.bf16 %v373_v53, %v372_v52  ;;  %v5491_v62 = vld [vmem:[%s8402_s5 + $0x28] sm:$0xff]  ;;  %v129_v3 = vld [vmem:[%s8403_s6 + $0x10] sm:$0xff] }
  0x12   :  { %6738 = vmatprep.subr.bf16.mxu1 %v6737_v27  ;;  %v5490_v61 = vld [vmem:[%s8402_s5 + $0x20] sm:$0xff]  ;;  %v128_v2 = vld [vmem:[%s8403_s6 + $0x8] sm:$0xff]  ;;  %v130_v6 = vld [vmem:[%s8403_s6 + $0x18] sm:$0xff] }
  0x13   :  { %v6765_v63 = vpack.c.bf16 %v5491_v62, %v5490_v61  ;;  %v5520_v25 = vld [vmem:[%s8402_s5 + $0x40] sm:$0xff]  ;;  %v5521_v26 = vld [vmem:[%s8402_s5 + $0x48] sm:$0xff]  ;;  %v5597_v58 = vld [vmem:[%s8403_s6 + $0x58] sm:$0xff] }
  0x14   :  { %v6797_v29 = vpack.c.bf16 %v5521_v26, %v5520_v25  ;;  %v7593_v62 = vld [vmem:[%s8425_s26 + $0x18] sm:$0xff] }
  0x15   :  { %6740 = vmatpush3.bf16.msra.mxu1 %v6737_v27 }
  0x16   :  { %6742 = vmatprep.subr.bf16.mxu1 %v6741_v30 }
  0x9a   :  { %v75_v7 = vpop.xlane.xlu0 %74  ;;  %v81_v8 = vpop.xlane.xlu1 %80 }
  0x9b   :  { %v83_v9 = vmul.f32 0.03125, %v75_v7  ;;  %v85_v10 = vmul.f32 0.03125, %v81_v8  ;;  %v131_v7 = vld [vmem:[%s8403_s6 + $0x20] sm:$0xff]  ;;  %v132_v8 = vld [vmem:[%s8403_s6 + $0x28] sm:$0xff] }
  0x9d   :  { %v86_v11 = vsub.f32 %v61_v0, %v83_v9  ;;  %v88_v12 = vsub.f32 %v5454_v1, %v85_v10  ;;  %v5492_v0 = vld [vmem:[%s8402_s5 + $0x30] sm:$0xff]  ;;  %v5493_v1 = vld [vmem:[%s8402_s5 + $0x38] sm:$0xff] }
  0x9e   :  { %v78_v13 = vpop.xlane.xlu0 %77  ;;  %v6769_v4 = vpack.c.bf16 %v5493_v1, %v5492_v0  ;;  %v133_v9 = vld [vmem:[%s8403_s6 + $0x30] sm:$0xff]  ;;  %v134_v10 = vld [vmem:[%s8403_s6 + $0x38] sm:$0xff] }
  0x9f   :  { %v84_v14 = vmul.f32 0.03125, %v78_v13  ;;  %v89_v15 = vmul.f32 %v86_v11, %v86_v11  ;;  %v91_v16 = vmul.f32 %v88_v12, %v88_v12 }
  0xa1   :  { %v87_v17 = vsub.f32 %v7396_v5, %v84_v14  ;;  %v92_v18 = vsel %vm72_vm0, %v89_v15, 0.0  ;;  %v98_v19 = vsel %vm72_vm0, %v91_v16, 0.0 }
  0xa2   :  { %93 = vadd.xlane.f32.xlu1 %v92_v18 }
  0xa3   :  { %v90_v20 = vmul.f32 %v87_v17, %v87_v17 }
  0xa5   :  { %v95_v21 = vsel %vm72_vm0, %v90_v20, 0.0 }
  0xa6   :  { %99 = vadd.xlane.f32.xlu1 %v98_v19  ;;  %96 = vadd.xlane.f32.xlu0 %v95_v21 }
 0x12f   :  { %v94_v32 = vpop.xlane.xlu1 %93 }
 0x130   :  { %v101_v33 = vmul.f32 0.03125, %v94_v32 }
 0x132   :  { %v104_v34 = vadd.f32 1e-05, %v101_v33 }
 0x133   :  { %v100_v35 = vpop.xlane.xlu1 %99  ;;  %v97_v36 = vpop.xlane.xlu0 %96 }
 0x134   :  { %7082 = vrsqrt.f32 %v104_v34  ;;  %v103_v37 = vmul.f32 0.03125, %v100_v35  ;;  %v102_v38 = vmul.f32 0.03125, %v97_v36  ;;  %v5522_v36 = vld [vmem:[%s8402_s5 + $0x50] sm:$0xff] }
 0x136   :  { %v106_v39 = vadd.f32 1e-05, %v103_v37  ;;  %v105_v40 = vadd.f32 1e-05, %v102_v38  ;;  %v5523_v37 = vld [vmem:[%s8402_s5 + $0x58] sm:$0xff] }
 0x138   :  { %7084 = vrsqrt.f32 %v106_v39 }
 0x139   :  { %7086 = vrsqrt.f32 %v105_v40  ;;  %v6801_v40 = vpack.c.bf16 %v5523_v37, %v5522_v36 }
 0x13e   :  { %v7083_v41 = vpop.eup %7082 }
 0x13f   :  { %v110_v43 = vmul.f32 %v7083_v41, %v86_v11  ;;  %v5528_v41 = vld [vmem:[%s8404_s7 + $0x40] sm:$0xff] }
 0x141   :  { %v117_v45 = vmul.f32 %v5455_v42, %v110_v43 }
 0x142   :  { %v7085_v46 = vpop.eup %7084 }
 0x143   :  { %v7087_v47 = vpop.eup %7086  ;;  %v7432_v48 = vadd.f32 %v5456_v44, %v117_v45  ;;  %v112_v49 = vmul.f32 %v7085_v46, %v88_v12  ;;  %v5530_v46 = vld [vmem:[%s8404_s7 + $0x50] sm:$0xff] }
 0x144   :  { %v111_v50 = vmul.f32 %v7087_v47, %v87_v17  ;;  %v5531_v47 = vld [vmem:[%s8404_s7 + $0x58] sm:$0xff] }
 0x145   :  { %v119_v51 = vmul.f32 %v5455_v42, %v112_v49  ;;  %6141 = vmatprep.mubr.msk.f32.mxu1 %vm72_vm0, %v7432_v48  ;;  %v6809_v49 = vpack.c.bf16 %v5531_v47, %v5530_v46 }
 0x146   :  { %v118_v54 = vmul.f32 %v5455_v42, %v111_v50  ;;  %v5529_v42 = vld [vmem:[%s8404_s7 + $0x48] sm:$0xff] }
 0x147   :  { %v7442_v55 = vadd.f32 %v5456_v44, %v119_v51  ;;  %v6805_v45 = vpack.c.bf16 %v5529_v42, %v5528_v41  ;;  %v7581_v51 = vld [vmem:[%s8425_s26 + $0x8] sm:$0xff] }
 0x148   :  { %v7444_v56 = vadd.f32 %v5456_v44, %v118_v54  ;;  %v7586_v54 = vld [vmem:[%s8425_s26] sm:$0xff] }
 0x14a   :  { %6142 = vmatmul.mubr.msk.f32.vlgmr.msra.gmra.mrb[0].mxu1 %vm72_vm0, %v7444_v56  ;;  %v6721_v59 = vpack.c.bf16 %v7444_v56, %v7432_v48  ;;  %v6727_v60 = vpack.c.bf16 %v7444_v56, %v7442_v55 }
 0x14b   :  { %6144 = vmatprep.mubr.msk.f32.mxu1 %vm72_vm0, %v7442_v55  ;;  %6744 = vmatpush3.bf16.msra.mxu1 %v6741_v30 }
 0x14c   :  { %6723 = vmatprep.subr.msk.bf16.mxu0 %vm7448_vm2, %v6721_v59  ;;  %6746 = vmatprep.subr.bf16.mxu1 %v6745_v57 }
 0x14d   :  { %6726 = vmatpush3.bf16.xpose.msk.msra.mxu0 %vm7448_vm2, %v6721_v59 }
 0x14e   :  { %6729 = vmatprep.subr.msk.bf16.mxu0 %vm7448_vm2, %v6727_v60  ;;  %6145 = vmatmul.mubr.msk.f32.gmra.mrb[2].mxu1 %vm72_vm0, %v7444_v56 }
 0x14f   :  { %6748 = vmatpush3.bf16.msra.mxu1 %v6745_v57  ;;  %6155 = vmatprep.mubr.msk.f32.mxu1 %vm72_vm0, %v7432_v48 }
 0x152   :  { %6156 = vmatmul.mubr.msk.f32.vlgmr.msra.gmra.mrb[4].mxu1 %vm72_vm0, %v7444_v56 }
 0x153   :  { %6158 = vmatprep.mubr.msk.f32.mxu1 %vm72_vm0, %v7442_v55 }
 0x155   :  { %6732 = vmatpush3.bf16.xpose.msk.msra.mxu0 %vm7448_vm2, %v6727_v60 }
 0x156   :  { %6159 = vmatmul.mubr.msk.f32.gmra.mrb[6].mxu1 %vm72_vm0, %v7444_v56  ;;  %6766 = vmatprep.subr.bf16.mxu0 %v6765_v63 }
 0x15c   :  { %6122 = vmatmul.mubr.msk.f32.vlgmr.msra.gmra.mrb[0].mxu0 %vm72_vm0, %v128_v2  ;;  %v7599_v2 = vld [vmem:[%s8425_s26 + $0x10] sm:$0xff] }
 0x15d   :  { %6124 = vmatprep.mubr.msk.f32.mxu0 %vm72_vm0, %v129_v3  ;;  %6768 = vmatpush3.bf16.msra.mxu0 %v6765_v63 }
 0x15e   :  { %6770 = vmatprep.subr.bf16.mxu0 %v6769_v4 }
 0x160   :  { %6125 = vmatmul.mubr.msk.f32.gmra.mrb[2].mxu0 %vm72_vm0, %v130_v6 }
 0x161   :  { %6127 = vmatprep.mubr.msk.f32.mxu0 %vm72_vm0, %v131_v7  ;;  %6772 = vmatpush3.bf16.msra.mxu0 %v6769_v4 }
 0x164   :  { %6128 = vmatmul.mubr.msk.f32.gmra.mrb[4].mxu0 %vm72_vm0, %v132_v8 }
 0x165   :  { %6130 = vmatprep.mubr.msk.f32.mxu0 %vm72_vm0, %v133_v9 }
 0x168   :  { %6131 = vmatmul.mubr.msk.f32.gmra.mrb[6].mxu0 %vm72_vm0, %v134_v10 }
 0x169   :  { %6203 = vmatprep.mubr.msk.f32.mxu0 %vm72_vm0, %v7432_v48 }
 0x16c   :  { %6204 = vmatmul.mubr.msk.f32.vlgmr.msra.gmra.mrb[8].mxu0 %vm72_vm0, %v7444_v56 }
 0x16d   :  { %6206 = vmatprep.mubr.msk.f32.mxu0 %vm72_vm0, %v7442_v55 }
 0x170   :  { %6207 = vmatmul.mubr.msk.f32.gmra.mrb[10].mxu0 %vm72_vm0, %v7444_v56 }
 0x21d   :  { %v6143_v11 = vpop.f32.mrb[0].mxu1 }
 0x21e   :  { %v351_v12 = vpop.f32.mrb[1].mxu1 }
 0x21f   :  { %6165 = vmatprep.mubr.msk.f32.mxu1 %vm459_vm3, %v351_v12 }
 0x221   :  { %v6146_v13 = vpop.f32.mrb[2].mxu1 }
 0x222   :  { %v361_v14 = vpop.f32.mrb[3].mxu1 }
 0x225   :  { %v6157_v15 = vpop.f32.mrb[4].mxu1 }
 0x226   :  { %v440_v16 = vpop.f32.mrb[5].mxu1 }
 0x227   :  { %v6753_v17 = vpack.c.bf16 %v6157_v15, %v440_v16 }
 0x229   :  { %v6160_v18 = vpop.f32.mrb[6].mxu1 }
 0x22a   :  { %v450_v19 = vpop.f32.mrb[7].mxu1 }
 0x22b   :  { %v6757_v20 = vpack.c.bf16 %v6160_v18, %v450_v19 }
 0x22f   :  { %v6123_v21 = vpop.f32.mrb[0].mxu0 }
 0x230   :  { %v234_v22 = vpop.f32.mrb[1].mxu0 }
 0x231   :  { %v6749_v23 = vpack.c.bf16 %v6123_v21, %v234_v22 }
 0x233   :  { %6750 = vmatprep.subr.bf16.mxu1 %v6749_v23  ;;  %v6126_v24 = vpop.f32.mrb[2].mxu0 }
 0x234   :  { %6752 = vmatpush3.bf16.msra.mxu1 %v6749_v23  ;;  %v244_v27 = vpop.f32.mrb[3].mxu0 }
 0x235   :  { %6754 = vmatprep.subr.bf16.mxu1 %v6753_v17  ;;  %v6781_v28 = vpack.c.bf16 %v6126_v24, %v244_v27 }
 0x237   :  { %6166 = vmatmul.mubr.msk.f32.vlgmr.msra.gmra.mrb[8].mxu1 %vm459_vm3, %v6143_v11  ;;  %v6129_v30 = vpop.f32.mrb[4].mxu0  ;;  %6782 = vmatprep.subr.bf16.mxu0 %v6781_v28 }
 0x238   :  { %6168 = vmatprep.mubr.msk.f32.mxu1 %vm459_vm3, %v361_v14  ;;  %6756 = vmatpush3.bf16.msra.mxu1 %v6753_v17  ;;  %v254_v31 = vpop.f32.mrb[5].mxu0 }
 0x239   :  { %6758 = vmatprep.subr.bf16.mxu1 %v6757_v20  ;;  %v7535_v32 = vpack.c.bf16 %v6129_v30, %v254_v31  ;;  %6784 = vmatpush3.bf16.msra.mxu0 %v6781_v28 }
 0x23a   :  { %6798 = vmatprep.subr.bf16.mxu0 %v6797_v29 }
 0x23b   :  { %6169 = vmatmul.mubr.msk.f32.gmra.mrb[10].mxu1 %vm459_vm3, %v6146_v13  ;;  %v6132_v33 = vpop.f32.mrb[6].mxu0 }
 0x23c   :  { %6760 = vmatpush3.bf16.msra.mxu1 %v6757_v20  ;;  %v264_v34 = vpop.f32.mrb[7].mxu0 }
 0x23d   :  { %v7538_v35 = vpack.c.bf16 %v6132_v33, %v264_v34 }
 0x23f   :  { %v6205_v38 = vpop.f32.mrb[8].mxu0 }
 0x240   :  { %v880_v39 = vpop.f32.mrb[9].mxu0 }
 0x241   :  { %6227 = vmatprep.mubr.msk.f32.mxu0 %vm459_vm3, %v880_v39 }
 0x242   :  { %6228 = vmatmul.mubr.msk.f32.vlgmr.msra.gmra.mrb[12].mxu0 %vm459_vm3, %v6205_v38 }
 0x243   :  { %v6208_v43 = vpop.f32.mrb[10].mxu0  ;;  %6800 = vmatpush3.bf16.msra.mxu0 %v6797_v29 }
 0x244   :  { %v890_v44 = vpop.f32.mrb[11].mxu0  ;;  %6802 = vmatprep.subr.bf16.mxu0 %v6801_v40 }
 0x245   :  { %6230 = vmatprep.mubr.msk.f32.mxu0 %vm459_vm3, %v890_v44 }
 0x246   :  { %6231 = vmatmul.mubr.msk.f32.gmra.mrb[14].mxu0 %vm459_vm3, %v6208_v43 }
 0x247   :  { %6804 = vmatpush3.bf16.msra.mxu0 %v6801_v40  ;;  %6265 = vmatprep.mubr.msk.f32.mxu0 %vm72_vm0, %v7432_v48 }
 0x248   :  { %6806 = vmatprep.subr.bf16.mxu0 %v6805_v45 }
 0x24a   :  { %6266 = vmatmul.mubr.msk.f32.vlgmr.msra.gmra.mrb[16].mxu0 %vm72_vm0, %v7444_v56 }
 0x24b   :  { %6268 = vmatprep.mubr.msk.f32.mxu0 %vm72_vm0, %v7442_v55  ;;  %6808 = vmatpush3.bf16.msra.mxu0 %v6805_v45 }
 0x24c   :  { %6810 = vmatprep.subr.bf16.mxu0 %v6809_v49 }
 0x24e   :  { %6269 = vmatmul.mubr.msk.f32.gmra.mrb[18].mxu0 %vm72_vm0, %v7444_v56 }
 0x24f   :  { %6812 = vmatpush3.bf16.msra.mxu0 %v6809_v49  ;;  %6279 = vmatprep.mubr.msk.f32.mxu0 %vm72_vm0, %v7432_v48 }
 0x252   :  { %6280 = vmatmul.mubr.msk.f32.vlgmr.msra.gmra.mrb[20].mxu0 %vm72_vm0, %v7444_v56 }
 0x253   :  { %6282 = vmatprep.mubr.msk.f32.mxu0 %vm72_vm0, %v7442_v55 }
 0x256   :  { %6283 = vmatmul.mubr.msk.f32.gmra.mrb[22].mxu0 %vm72_vm0, %v7444_v56 }
 0x30a   :  { %v6167_v50 = vpop.f32.mrb[8].mxu1 }
 0x30b   :  { %v558_v52 = vmul.f32 0.25, %v6167_v50  ;;  %v538_v53 = vpop.f32.mrb[9].mxu1 }
 0x30c   :  { %v557_v57 = vmul.f32 0.25, %v538_v53 }
 0x30d   :  { %v562_v59 = vadd.f32 %v558_v52, %v7581_v51 }
 0x30e   :  { %v6170_v60 = vpop.f32.mrb[10].mxu1  ;;  %v561_v61 = vadd.f32 %v557_v57, %v7586_v54 }
 0x30f   :  { %v560_v63 = vmul.f32 0.25, %v6170_v60  ;;  %v548_v0 = vpop.f32.mrb[11].mxu1  ;;  %v568_v1 = vsel %vm72_vm0, %v562_v59, -inf }
 0x310   :  { %v559_v3 = vmul.f32 0.25, %v548_v0  ;;  %569 = vmax.xlane.f32.xlu1 %v568_v1  ;;  %v565_v4 = vsel %vm72_vm0, %v561_v61, -inf }
 0x311   :  { %566 = vmax.xlane.f32.xlu0 %v565_v4  ;;  %v564_v6 = vadd.f32 %v560_v63, %v7593_v62 }
 0x312   :  { %v563_v7 = vadd.f32 %v559_v3, %v7599_v2 }
 0x313   :  { %v574_v8 = vsel %vm72_vm0, %v564_v6, -inf }
 0x314   :  { %575 = vmax.xlane.f32.xlu1 %v574_v8  ;;  %v571_v9 = vsel %vm72_vm0, %v563_v7, -inf }
 0x315   :  { %572 = vmax.xlane.f32.xlu0 %v571_v9  ;;  %v6229_v10 = vpop.f32.mrb[12].mxu0 }
 0x316   :  { %v1067_v11 = vpop.f32.mrb[13].mxu0  ;;  %v1087_v40 = vmul.f32 0.25, %v6229_v10 }
 0x317   :  { %v1086_v42 = vmul.f32 0.25, %v1067_v11 }
 0x318   :  { %v1091_v49 = vadd.f32 %v1087_v40, %v7581_v51 }
 0x319   :  { %v6232_v12 = vpop.f32.mrb[14].mxu0  ;;  %v1090_v53 = vadd.f32 %v1086_v42, %v7586_v54  ;;  %v707_v42 = vld [vmem:[%s8405_s8 + $0x8] sm:$0xff] }
 0x31a   :  { %v1077_v13 = vpop.f32.mrb[15].mxu0  ;;  %v1089_v46 = vmul.f32 0.25, %v6232_v12  ;;  %v1097_v57 = vsel %vm72_vm0, %v1091_v49, -inf }
 0x31b   :  { %v1088_v50 = vmul.f32 0.25, %v1077_v13  ;;  %v1094_v60 = vsel %vm72_vm0, %v1090_v53, -inf }
 0x31d   :  { %v7606_v14 = vpop.f32.mrb[16].mxu0 }
 0x31e   :  { %v7608_v15 = vpop.f32.mrb[17].mxu0 }
 0x321   :  { %v7610_v16 = vpop.f32.mrb[18].mxu0 }
 0x322   :  { %v7612_v17 = vpop.f32.mrb[19].mxu0 }
 0x325   :  { %v6281_v18 = vpop.f32.mrb[20].mxu0 }
 0x326   :  { %v1500_v19 = vpop.f32.mrb[21].mxu0 }
 0x327   :  { %v6817_v20 = vpack.c.bf16 %v6281_v18, %v1500_v19 }
 0x329   :  { %v6284_v21 = vpop.f32.mrb[22].mxu0  ;;  %6818 = vmatprep.subr.bf16.mxu0 %v6817_v20 }
 0x32a   :  { %v1510_v22 = vpop.f32.mrb[23].mxu0  ;;  %6820 = vmatpush3.bf16.msra.mxu0 %v6817_v20 }
 0x32b   :  { %v6821_v23 = vpack.c.bf16 %v6284_v21, %v1510_v22 }
 0x32d   :  { %6822 = vmatprep.subr.bf16.mxu0 %v6821_v23 }
 0x32e   :  { %6824 = vmatpush3.bf16.msra.mxu0 %v6821_v23 }
 0x39d   :  { %v570_v24 = vpop.xlane.xlu1 %569 }
 0x39e   :  { %v578_v25 = vsub.f32 %v562_v59, %v570_v24  ;;  %v567_v26 = vpop.xlane.xlu0 %566  ;;  %v1093_v59 = vadd.f32 %v1089_v46, %v7593_v62 }
 0x39f   :  { %v577_v27 = vsub.f32 %v561_v61, %v567_v26  ;;  %v1092_v61 = vadd.f32 %v1088_v50, %v7599_v2  ;;  %v5501_v50 = vld [vmem:[%s8404_s7 + $0x38] sm:$0xff] }
 0x3a0   :  { %v583_v28 = vmul.f32 1.442695, %v578_v25  ;;  %v1103_v63 = vsel %vm72_vm0, %v1093_v59, -inf }
 0x3a1   :  { %v581_v29 = vmul.f32 1.442695, %v577_v27  ;;  %v576_v30 = vpop.xlane.xlu1 %575  ;;  %v1100_v0 = vsel %vm72_vm0, %v1092_v61, -inf }
 0x3a2   :  { %7088 = vpow2.f32 %v583_v28  ;;  %v580_v31 = vsub.f32 %v564_v6, %v576_v30  ;;  %v573_v33 = vpop.xlane.xlu0 %572 }
 0x3a3   :  { %7090 = vpow2.f32 %v581_v29  ;;  %v579_v34 = vsub.f32 %v563_v7, %v573_v33 }
 0x3a4   :  { %v587_v36 = vmul.f32 1.442695, %v580_v31 }
 0x3a5   :  { %v585_v37 = vmul.f32 1.442695, %v579_v34 }
 0x3a6   :  { %7092 = vpow2.f32 %v587_v36 }
 0x3a7   :  { %7094 = vpow2.f32 %v585_v37 }
 0x3ac   :  { %v7089_v38 = vpop.eup %7088 }
 0x3ad   :  { %v7091_v39 = vpop.eup %7090  ;;  %v592_v41 = vsel %vm72_vm0, %v7089_v38, 0.0 }
 0x3ae   :  { %593 = vadd.xlane.f32.xlu1 %v592_v41  ;;  %v589_v43 = vsel %vm72_vm0, %v7091_v39, 0.0  ;;  %v706_v41 = vld [vmem:[%s8405_s8] sm:$0xff] }
 0x3af   :  { %590 = vadd.xlane.f32.xlu0 %v589_v43  ;;  %v6761_v43 = vpack.c.bf16 %v707_v42, %v706_v41 }
 0x3b0   :  { %v7093_v44 = vpop.eup %7092 }
 0x3b1   :  { %v7095_v45 = vpop.eup %7094  ;;  %v598_v47 = vsel %vm72_vm0, %v7093_v44, 0.0  ;;  %6762 = vmatprep.subr.bf16.mxu1 %v6761_v43 }
 0x3b2   :  { %599 = vadd.xlane.f32.xlu1 %v598_v47  ;;  %v595_v52 = vsel %vm72_vm0, %v7095_v45, 0.0 }
 0x3b3   :  { %596 = vadd.xlane.f32.xlu0 %v595_v52 }
 0x3b6   :  { %1098 = vmax.xlane.f32.xlu1 %v1097_v57 }
 0x3b7   :  { %1095 = vmax.xlane.f32.xlu0 %v1094_v60 }
 0x3ba   :  { %1104 = vmax.xlane.f32.xlu1 %v1103_v63 }
 0x3bb   :  { %1101 = vmax.xlane.f32.xlu0 %v1100_v0 }
 0x43b   :  { %v594_v1 = vpop.xlane.xlu1 %593 }
 0x43c   :  { %7096 = vrcp.f32 %v594_v1  ;;  %v591_v3 = vpop.xlane.xlu0 %590 }
 0x43d   :  { %7098 = vrcp.f32 %v591_v3 }
 0x43f   :  { %v600_v4 = vpop.xlane.xlu1 %599 }
 0x440   :  { %7100 = vrcp.f32 %v600_v4  ;;  %v597_v6 = vpop.xlane.xlu0 %596 }
 0x441   :  { %7102 = vrcp.f32 %v597_v6 }
 0x443   :  { %v1099_v7 = vpop.xlane.xlu1 %1098 }
 0x444   :  { %v1107_v8 = vsub.f32 %v1091_v49, %v1099_v7  ;;  %v1096_v9 = vpop.xlane.xlu0 %1095  ;;  %v5500_v49 = vld [vmem:[%s8404_s7 + $0x30] sm:$0xff] }
 0x445   :  { %v1106_v10 = vsub.f32 %v1090_v53, %v1096_v9  ;;  %v6777_v57 = vpack.c.bf16 %v5501_v50, %v5500_v49  ;;  %v5515_v9 = vld [vmem:[%s8405_s8 + $0x18] sm:$0xff] }
 0x446   :  { %v7097_v11 = vpop.eup %7096  ;;  %v1112_v12 = vmul.f32 1.442695, %v1107_v8  ;;  %v5514_v8 = vld [vmem:[%s8405_s8 + $0x10] sm:$0xff] }
 0x447   :  { %v7099_v13 = vpop.eup %7098  ;;  %v1110_v18 = vmul.f32 1.442695, %v1106_v10  ;;  %v1105_v19 = vpop.xlane.xlu1 %1104  ;;  %v604_v23 = vmul.f32 %v7097_v11, %v7089_v38 }
 0x448   :  { %7104 = vpow2.f32 %v1112_v12  ;;  %v1109_v20 = vsub.f32 %v1093_v59, %v1105_v19  ;;  %v1102_v21 = vpop.xlane.xlu0 %1101  ;;  %v602_v22 = vmul.f32 %v7099_v13, %v7091_v39  ;;  %v6793_v13 = vpack.c.bf16 %v5515_v9, %v5514_v8  ;;  %v5544_v9 = vld [vmem:[%s8405_s8 + $0x20] sm:$0xff] }
 0x449   :  { %7106 = vpow2.f32 %v1110_v18  ;;  %v1108_v24 = vsub.f32 %v1092_v61, %v1102_v21 }
 0x44a   :  { %v7101_v25 = vpop.eup %7100  ;;  %v1116_v26 = vmul.f32 1.442695, %v1109_v20  ;;  %6179 = vmatprep.mubr.msk.f32.mxu1 %vm72_vm0, %v602_v22 }
 0x44b   :  { %v7103_v27 = vpop.eup %7102  ;;  %v1114_v28 = vmul.f32 1.442695, %v1108_v24  ;;  %6180 = vmatmul.mubr.msk.f32.vlgmr.msra.gmra.mrb[12].mxu1 %vm72_vm0, %v604_v23  ;;  %v608_v30 = vmul.f32 %v7101_v25, %v7093_v44  ;;  %v5498_v44 = vld [vmem:[%s8404_s7 + $0x20] sm:$0xff] }
 0x44c   :  { %7108 = vpow2.f32 %v1116_v26  ;;  %v606_v29 = vmul.f32 %v7103_v27, %v7095_v45  ;;  %6764 = vmatpush3.bf16.msra.mxu1 %v6761_v43  ;;  %v5499_v45 = vld [vmem:[%s8404_s7 + $0x28] sm:$0xff] }
 0x44d   :  { %7110 = vpow2.f32 %v1114_v28  ;;  %v6773_v46 = vpack.c.bf16 %v5499_v45, %v5498_v44 }
 0x44e   :  { %6182 = vmatprep.mubr.msk.f32.mxu1 %vm72_vm0, %v606_v29 }
 0x44f   :  { %6183 = vmatmul.mubr.msk.f32.gmra.mrb[14].mxu1 %vm72_vm0, %v608_v30  ;;  %6774 = vmatprep.subr.bf16.mxu1 %v6773_v46 }
 0x452   :  { %v7630_v31 = vpop.eup %7104 }
 0x453   :  { %v7107_v33 = vpop.eup %7106  ;;  %v1121_v34 = vsel %vm72_vm0, %v7630_v31, 0.0 }
 0x454   :  { %1122 = vadd.xlane.f32.xlu1 %v1121_v34  ;;  %v1118_v36 = vsel %vm72_vm0, %v7107_v33, 0.0 }
 0x455   :  { %1119 = vadd.xlane.f32.xlu0 %v1118_v36 }
 0x456   :  { %v7635_v37 = vpop.eup %7108 }
 0x457   :  { %v7111_v38 = vpop.eup %7110  ;;  %v1127_v39 = vsel %vm72_vm0, %v7635_v37, 0.0 }
 0x458   :  { %1128 = vadd.xlane.f32.xlu1 %v1127_v39  ;;  %v1124_v40 = vsel %vm72_vm0, %v7111_v38, 0.0 }
 0x459   :  { %1125 = vadd.xlane.f32.xlu0 %v1124_v40 }
 0x4e1   :  { %v1123_v0 = vpop.xlane.xlu1 %1122 }
 0x4e2   :  { %v1120_v47 = vpop.xlane.xlu0 %1119 }
 0x4e3   :  { %7112 = vrcp.f32 %v1120_v47 }
 0x4e4   :  { %7114 = vrcp.f32 %v1123_v0 }
 0x4e5   :  { %v1129_v3 = vpop.xlane.xlu1 %1128 }
 0x4e6   :  { %v1126_v1 = vpop.xlane.xlu0 %1125 }
 0x4e7   :  { %7116 = vrcp.f32 %v1126_v1 }
 0x4e8   :  { %7118 = vrcp.f32 %v1129_v3 }
 0x4ed   :  { %v7113_v61 = vpop.eup %7112 }
 0x4ee   :  { %v1131_v63 = vmul.f32 %v7113_v61, %v7107_v33  ;;  %v7115_v18 = vpop.eup %7114 }
 0x4ef   :  { %v1133_v20 = vmul.f32 %v7115_v18, %v7630_v31 }
 0x4f1   :  { %v7117_v19 = vpop.eup %7116 }
 0x4f2   :  { %v7119_v21 = vpop.eup %7118  ;;  %v1135_v22 = vmul.f32 %v7117_v19, %v7111_v38 }
 0x4f3   :  { %v1137_v23 = vmul.f32 %v7119_v21, %v7635_v37  ;;  %v5552_v21 = vld [vmem:[%s8402_s5 + $0x70] sm:$0xff] }
 0x51e   :  { %v6181_v52 = vpop.f32.mrb[12].mxu1 }
 0x51f   :  { %v687_v53 = vpop.f32.mrb[13].mxu1 }
 0x520   :  { %6189 = vmatprep.mubr.msk.f32.mxu1 %vm459_vm3, %v687_v53 }
 0x521   :  { %6190 = vmatmul.mubr.msk.f32.vlgmr.msra.gmra.mrb[16].mxu1 %vm459_vm3, %v6181_v52 }
 0x522   :  { %v6184_v59 = vpop.f32.mrb[14].mxu1  ;;  %6776 = vmatpush3.bf16.msra.mxu1 %v6773_v46 }
 0x523   :  { %v697_v60 = vpop.f32.mrb[15].mxu1  ;;  %6778 = vmatprep.subr.bf16.mxu1 %v6777_v57 }
 0x524   :  { %6192 = vmatprep.mubr.msk.f32.mxu1 %vm459_vm3, %v697_v60 }
 0x525   :  { %6193 = vmatmul.mubr.msk.f32.gmra.mrb[18].mxu1 %vm459_vm3, %v6184_v59 }
 0x526   :  { %6780 = vmatpush3.bf16.msra.mxu1 %v6777_v57  ;;  %6217 = vmatprep.mubr.msk.f32.mxu1 %vm72_vm0, %v7432_v48 }
 0x529   :  { %6218 = vmatmul.mubr.msk.f32.vlgmr.msra.gmra.mrb[20].mxu1 %vm72_vm0, %v7444_v56 }
 0x52a   :  { %6220 = vmatprep.mubr.msk.f32.mxu1 %vm72_vm0, %v7442_v55 }
 0x52d   :  { %6221 = vmatmul.mubr.msk.f32.gmra.mrb[22].mxu1 %vm72_vm0, %v7444_v56 }
 0x52e   :  { %6241 = vmatprep.mubr.msk.f32.mxu1 %vm72_vm0, %v1131_v63 }
 0x5fc   :  { %v6219_v4 = vpop.f32.mrb[20].mxu1 }
 0x5fd   :  { %v970_v6 = vpop.f32.mrb[21].mxu1 }
 0x5fe   :  { %v6785_v7 = vpack.c.bf16 %v6219_v4, %v970_v6  ;;  %v5550_v6 = vld [vmem:[%s8402_s5 + $0x60] sm:$0xff] }
 0x600   :  { %v6222_v10 = vpop.f32.mrb[22].mxu1  ;;  %6786 = vmatprep.subr.bf16.mxu1 %v6785_v7 }
 0x601   :  { %v980_v11 = vpop.f32.mrb[23].mxu1  ;;  %6788 = vmatpush3.bf16.msra.mxu1 %v6785_v7  ;;  %v5551_v7 = vld [vmem:[%s8402_s5 + $0x68] sm:$0xff] }
 0x602   :  { %v6789_v12 = vpack.c.bf16 %v6222_v10, %v980_v11  ;;  %v6829_v8 = vpack.c.bf16 %v5551_v7, %v5550_v6  ;;  %v5545_v10 = vld [vmem:[%s8405_s8 + $0x28] sm:$0xff] }
 0x603   :  { %v6825_v11 = vpack.c.bf16 %v5545_v10, %v5544_v9 }
 0x604   :  { %6790 = vmatprep.subr.bf16.mxu1 %v6789_v12  ;;  %6830 = vmatprep.subr.bf16.mxu0 %v6829_v8 }
 0x605   :  { %6792 = vmatpush3.bf16.msra.mxu1 %v6789_v12 }
 0x606   :  { %6794 = vmatprep.subr.bf16.mxu1 %v6793_v13 }
 0x608   :  { %6242 = vmatmul.mubr.msk.f32.vlgmr.msra.gmra.mrb[24].mxu1 %vm72_vm0, %v1133_v20 }
 0x609   :  { %6244 = vmatprep.mubr.msk.f32.mxu1 %vm72_vm0, %v1135_v22  ;;  %6796 = vmatpush3.bf16.msra.mxu1 %v6793_v13  ;;  %v5553_v22 = vld [vmem:[%s8402_s5 + $0x78] sm:$0xff] }
 0x60a   :  { %6814 = vmatprep.subr.bf16.mxu1 %v7535_v32 }
 0x60c   :  { %6245 = vmatmul.mubr.msk.f32.gmra.mrb[26].mxu1 %vm72_vm0, %v1137_v23 }
 0x6db   :  { %v6243_v24 = vpop.f32.mrb[24].mxu1 }
 0x6dc   :  { %v1216_v25 = vpop.f32.mrb[25].mxu1 }
 0x6dd   :  { %6251 = vmatprep.mubr.msk.f32.mxu1 %vm459_vm3, %v1216_v25 }
 0x6de   :  { %6252 = vmatmul.mubr.msk.f32.vlgmr.msra.gmra.mrb[16].mxu1 %vm459_vm3, %v6243_v24 }
 0x6df   :  { %6816 = vmatpush3.bf16.msra.mxu1 %v7535_v32  ;;  %v6246_v26 = vpop.f32.mrb[26].mxu1 }
 0x6e0   :  { %v1226_v27 = vpop.f32.mrb[27].mxu1  ;;  %6826 = vmatprep.subr.bf16.mxu1 %v6825_v11 }
 0x6e1   :  { %6254 = vmatprep.mubr.msk.f32.mxu1 %vm459_vm3, %v1226_v27 }
 0x6e2   :  { %6255 = vmatmul.mubr.msk.f32.gmra.mrb[18].mxu1 %vm459_vm3, %v6246_v26  ;;  %v6833_v26 = vpack.c.bf16 %v5553_v22, %v5552_v21 }
 0x6e3   :  { %6289 = vmatprep.mubr.msk.f32.mxu1 %vm459_vm3, %v7608_v15 }
 0x6e6   :  { %6290 = vmatmul.mubr.msk.f32.vlgmr.msra.gmra.mrb[28].mxu1 %vm459_vm3, %v7606_v14 }
 0x6e7   :  { %6292 = vmatprep.mubr.msk.f32.mxu1 %vm459_vm3, %v7612_v17  ;;  %6828 = vmatpush3.bf16.msra.mxu1 %v6825_v11 }
 0x6ea   :  { %6293 = vmatmul.mubr.msk.f32.gmra.mrb[30].mxu1 %vm459_vm3, %v7610_v16 }
 0x7b9   :  { %v6291_v28 = vpop.f32.mrb[28].mxu1 }
 0x7ba   :  { %v1617_v32 = vmul.f32 0.25, %v6291_v28  ;;  %v1597_v29 = vpop.f32.mrb[29].mxu1 }
 0x7bb   :  { %v1616_v30 = vmul.f32 0.25, %v1597_v29 }
 0x7bc   :  { %v1621_v31 = vadd.f32 %v1617_v32, %v7581_v51 }
 0x7bd   :  { %v6294_v33 = vpop.f32.mrb[30].mxu1  ;;  %v1620_v34 = vadd.f32 %v1616_v30, %v7586_v54  ;;  %v5558_v30 = vld [vmem:[%s8404_s7 + $0x60] sm:$0xff] }
 0x7be   :  { %v1619_v36 = vmul.f32 0.25, %v6294_v33  ;;  %v1607_v15 = vpop.f32.mrb[31].mxu1  ;;  %v1627_v37 = vsel %vm72_vm0, %v1621_v31, -inf }
 0x7bf   :  { %v1618_v14 = vmul.f32 0.25, %v1607_v15  ;;  %1628 = vmax.xlane.f32.xlu1 %v1627_v37  ;;  %v1624_v17 = vsel %vm72_vm0, %v1620_v34, -inf }
 0x7c0   :  { %1625 = vmax.xlane.f32.xlu0 %v1624_v17  ;;  %v1623_v16 = vadd.f32 %v1619_v36, %v7593_v62 }
 0x7c1   :  { %v1622_v38 = vadd.f32 %v1618_v14, %v7599_v2 }
 0x7c2   :  { %v1633_v39 = vsel %vm72_vm0, %v1623_v16, -inf }
 0x7c3   :  { %1634 = vmax.xlane.f32.xlu1 %v1633_v39  ;;  %v1630_v40 = vsel %vm72_vm0, %v1622_v38, -inf }
 0x7c4   :  { %1631 = vmax.xlane.f32.xlu0 %v1630_v40 }
 0x84c   :  { %v1629_v41 = vpop.xlane.xlu1 %1628 }
 0x84d   :  { %v1637_v42 = vsub.f32 %v1621_v31, %v1629_v41  ;;  %v1626_v43 = vpop.xlane.xlu0 %1625  ;;  %v5559_v31 = vld [vmem:[%s8404_s7 + $0x68] sm:$0xff] }
 0x84e   :  { %v1636_v44 = vsub.f32 %v1620_v34, %v1626_v43  ;;  %v6837_v33 = vpack.c.bf16 %v5559_v31, %v5558_v30  ;;  %v5561_v34 = vld [vmem:[%s8404_s7 + $0x78] sm:$0xff] }
 0x84f   :  { %v1642_v45 = vmul.f32 1.442695, %v1637_v42 }
 0x850   :  { %v1640_v46 = vmul.f32 1.442695, %v1636_v44  ;;  %v1635_v47 = vpop.xlane.xlu1 %1634  ;;  %6838 = vmatprep.subr.bf16.mxu1 %v6837_v33 }
 0x851   :  { %7120 = vpow2.f32 %v1642_v45  ;;  %v1639_v49 = vsub.f32 %v1623_v16, %v1635_v47  ;;  %v1632_v50 = vpop.xlane.xlu0 %1631 }
 0x852   :  { %7122 = vpow2.f32 %v1640_v46  ;;  %v1638_v52 = vsub.f32 %v1622_v38, %v1632_v50 }
 0x853   :  { %v1646_v53 = vmul.f32 1.442695, %v1639_v49 }
 0x854   :  { %v1644_v57 = vmul.f32 1.442695, %v1638_v52 }
 0x855   :  { %7124 = vpow2.f32 %v1646_v53 }
 0x856   :  { %7126 = vpow2.f32 %v1644_v57 }
 0x85b   :  { %v7121_v59 = vpop.eup %7120 }
 0x85c   :  { %v7123_v60 = vpop.eup %7122  ;;  %v1651_v61 = vsel %vm72_vm0, %v7121_v59, 0.0 }
 0x85d   :  { %1652 = vadd.xlane.f32.xlu1 %v1651_v61  ;;  %v1648_v63 = vsel %vm72_vm0, %v7123_v60, 0.0 }
 0x85e   :  { %1649 = vadd.xlane.f32.xlu0 %v1648_v63 }
 0x85f   :  { %v7125_v0 = vpop.eup %7124 }
 0x860   :  { %v7127_v1 = vpop.eup %7126  ;;  %v1657_v3 = vsel %vm72_vm0, %v7125_v0, 0.0 }
 0x861   :  { %1658 = vadd.xlane.f32.xlu1 %v1657_v3  ;;  %v1654_v4 = vsel %vm72_vm0, %v7127_v1, 0.0 }
 0x862   :  { %1655 = vadd.xlane.f32.xlu0 %v1654_v4 }
 0x8ea   :  { %v1653_v12 = vpop.xlane.xlu1 %1652 }
 0x8eb   :  { %7128 = vrcp.f32 %v1653_v12  ;;  %v1650_v13 = vpop.xlane.xlu0 %1649 }
 0x8ec   :  { %7130 = vrcp.f32 %v1650_v13 }
 0x8ee   :  { %v1659_v18 = vpop.xlane.xlu1 %1658 }
 0x8ef   :  { %7132 = vrcp.f32 %v1659_v18  ;;  %v1656_v19 = vpop.xlane.xlu0 %1655 }
 0x8f0   :  { %7134 = vrcp.f32 %v1656_v19 }
 0x8f5   :  { %v7129_v20 = vpop.eup %7128 }
 0x8f6   :  { %v7131_v23 = vpop.eup %7130  ;;  %v1663_v25 = vmul.f32 %v7129_v20, %v7121_v59 }
 0x8f7   :  { %v1661_v24 = vmul.f32 %v7131_v23, %v7123_v60 }
 0x8f9   :  { %v7133_v27 = vpop.eup %7132  ;;  %6303 = vmatprep.mubr.msk.f32.mxu0 %vm72_vm0, %v1661_v24 }
 0x8fa   :  { %v7135_v28 = vpop.eup %7134  ;;  %6304 = vmatmul.mubr.msk.f32.vlgmr.msra.gmra.mrb[24].mxu0 %vm72_vm0, %v1663_v25  ;;  %v1667_v29 = vmul.f32 %v7133_v27, %v7125_v0  ;;  %v5574_v25 = vld [vmem:[%s8405_s8 + $0x30] sm:$0xff] }
 0x8fb   :  { %6832 = vmatpush3.bf16.msra.mxu0 %v6829_v8  ;;  %v1665_v32 = vmul.f32 %v7135_v28, %v7127_v1 }
 0x8fc   :  { %6834 = vmatprep.subr.bf16.mxu0 %v6833_v26 }
 0x8fd   :  { %6306 = vmatprep.mubr.msk.f32.mxu0 %vm72_vm0, %v1665_v32 }
 0x8fe   :  { %6307 = vmatmul.mubr.msk.f32.gmra.mrb[26].mxu0 %vm72_vm0, %v1667_v29 }
 0x8ff   :  { %6836 = vmatpush3.bf16.msra.mxu0 %v6833_v26  ;;  %6327 = vmatprep.mubr.msk.f32.mxu0 %vm72_vm0, %v7432_v48  ;;  %v5575_v26 = vld [vmem:[%s8405_s8 + $0x38] sm:$0xff] }
 0x900   :  { %6846 = vmatprep.subr.bf16.mxu0 %v7538_v35  ;;  %v6857_v27 = vpack.c.bf16 %v5575_v26, %v5574_v25 }
 0x902   :  { %6328 = vmatmul.mubr.msk.f32.vlgmr.msra.gmra.mrb[28].mxu0 %vm72_vm0, %v7444_v56 }
 0x903   :  { %6848 = vmatpush3.bf16.msra.mxu0 %v7538_v35  ;;  %6330 = vmatprep.mubr.msk.f32.mxu0 %vm72_vm0, %v7442_v55  ;;  %v5560_v35 = vld [vmem:[%s8404_s7 + $0x70] sm:$0xff] }
 0x904   :  { %v6841_v37 = vpack.c.bf16 %v5561_v34, %v5560_v35 }
 0x906   :  { %6331 = vmatmul.mubr.msk.f32.gmra.mrb[30].mxu0 %vm72_vm0, %v7444_v56 }
 0x9cd   :  { %v6305_v36 = vpop.f32.mrb[24].mxu0 }
 0x9ce   :  { %v1746_v15 = vpop.f32.mrb[25].mxu0 }
 0x9cf   :  { %6313 = vmatprep.mubr.msk.f32.mxu1 %vm459_vm3, %v1746_v15 }
 0x9d0   :  { %6314 = vmatmul.mubr.msk.f32.vlgmr.msra.gmra.mrb[16].mxu1 %vm459_vm3, %v6305_v36 }
 0x9d1   :  { %v6308_v14 = vpop.f32.mrb[26].mxu0  ;;  %6840 = vmatpush3.bf16.msra.mxu1 %v6837_v33 }
 0x9d2   :  { %v1756_v17 = vpop.f32.mrb[27].mxu0  ;;  %6842 = vmatprep.subr.bf16.mxu1 %v6841_v37 }
 0x9d3   :  { %6316 = vmatprep.mubr.msk.f32.mxu1 %vm459_vm3, %v1756_v17 }
 0x9d4   :  { %6317 = vmatmul.mubr.msk.f32.gmra.mrb[18].mxu1 %vm459_vm3, %v6308_v14 }
 0x9d5   :  { %v6329_v16 = vpop.f32.mrb[28].mxu0  ;;  %6844 = vmatpush3.bf16.msra.mxu1 %v6841_v37  ;;  %6341 = vmatprep.mubr.msk.f32.mxu1 %vm72_vm0, %v7432_v48 }
 0x9d6   :  { %v1940_v38 = vpop.f32.mrb[29].mxu0 }
 0x9d7   :  { %6351 = vmatprep.mubr.msk.f32.mxu0 %vm459_vm3, %v1940_v38 }
 0x9d8   :  { %6342 = vmatmul.mubr.msk.f32.vlgmr.msra.gmra.mrb[32].mxu1 %vm72_vm0, %v7444_v56  ;;  %6352 = vmatmul.mubr.msk.f32.vlgmr.msra.gmra.mrb[32].mxu0 %vm459_vm3, %v6329_v16 }
 0x9d9   :  { %v6332_v39 = vpop.f32.mrb[30].mxu0  ;;  %6344 = vmatprep.mubr.msk.f32.mxu1 %vm72_vm0, %v7442_v55 }
 0x9da   :  { %v1950_v40 = vpop.f32.mrb[31].mxu0 }
 0x9db   :  { %6354 = vmatprep.mubr.msk.f32.mxu0 %vm459_vm3, %v1950_v40  ;;  %v5469_v40 = vld [vmem:[%s8406_s9] ss:$0 sm:$0xff] }
 0x9dc   :  { %6345 = vmatmul.mubr.msk.f32.gmra.mrb[34].mxu1 %vm72_vm0, %v7444_v56  ;;  %6355 = vmatmul.mubr.msk.f32.gmra.mrb[34].mxu0 %vm459_vm3, %v6332_v39 }
 0xaab   :  { %v6343_v48 = vpop.f32.mrb[32].mxu1  ;;  %v6353_v41 = vpop.f32.mrb[32].mxu0 }
 0xaac   :  { %v2147_v42 = vmul.f32 0.25, %v6353_v41  ;;  %v2030_v43 = vpop.f32.mrb[33].mxu1  ;;  %v2127_v44 = vpop.f32.mrb[33].mxu0  ;;  %v7258_v41 = vld [vmem:[%s8421_s29] sm:$0xff] }
 0xaad   :  { %v6849_v45 = vpack.c.bf16 %v6343_v48, %v2030_v43  ;;  %v2146_v46 = vmul.f32 0.25, %v2127_v44  ;;  %v279_v48 = vadd.f32 %v5469_v40, %v7396_v5 }
 0xaae   :  { %v2151_v47 = vadd.f32 %v2147_v42, %v7581_v51  ;;  %v278_v42 = vadd.f32 %v7258_v41, %v5469_v40 }
 0xaaf   :  { %v6346_v49 = vpop.f32.mrb[34].mxu1  ;;  %v6356_v50 = vpop.f32.mrb[34].mxu0  ;;  %6850 = vmatprep.subr.bf16.mxu1 %v6849_v45  ;;  %v2150_v55 = vadd.f32 %v2146_v46, %v7586_v54 }
 0xab0   :  { %v2149_v52 = vmul.f32 0.25, %v6356_v50  ;;  %v2040_v53 = vpop.f32.mrb[35].mxu1  ;;  %v2137_v57 = vpop.f32.mrb[35].mxu0  ;;  %6852 = vmatpush3.bf16.msra.mxu1 %v6849_v45  ;;  %v2157_v56 = vsel %vm72_vm0, %v2151_v47, -inf }
 0xab1   :  { %v6853_v59 = vpack.c.bf16 %v6346_v49, %v2040_v53  ;;  %v2148_v60 = vmul.f32 0.25, %v2137_v57  ;;  %2158 = vmax.xlane.f32.xlu1 %v2157_v56  ;;  %v2154_v61 = vsel %vm72_vm0, %v2150_v55, -inf }
 0xab2   :  { %2155 = vmax.xlane.f32.xlu0 %v2154_v61  ;;  %v2153_v63 = vadd.f32 %v2149_v52, %v7593_v62 }
 0xab3   :  { %6854 = vmatprep.subr.bf16.mxu1 %v6853_v59  ;;  %v2152_v51 = vadd.f32 %v2148_v60, %v7599_v2 }
 0xab4   :  { %6856 = vmatpush3.bf16.msra.mxu1 %v6853_v59  ;;  %v2163_v54 = vsel %vm72_vm0, %v2153_v63, -inf }
 0xab5   :  { %2164 = vmax.xlane.f32.xlu1 %v2163_v54  ;;  %v2160_v0 = vsel %vm72_vm0, %v2152_v51, -inf  ;;  %6858 = vmatprep.subr.bf16.mxu1 %v6857_v27 }
 0xab6   :  { %2161 = vmax.xlane.f32.xlu0 %v2160_v0 }
 0xb3e   :  { %v2159_v1 = vpop.xlane.xlu1 %2158 }
 0xb3f   :  { %v2167_v3 = vsub.f32 %v2151_v47, %v2159_v1  ;;  %v2156_v4 = vpop.xlane.xlu0 %2155  ;;  %v7259_v47 = vld [vmem:[%s8421_s29 + $0x8] sm:$0xff] }
 0xb40   :  { %v2166_v6 = vsub.f32 %v2150_v55, %v2156_v4  ;;  %v280_v49 = vadd.f32 %v7259_v47, %v5469_v40 }
 0xb41   :  { %v2172_v7 = vmul.f32 1.442695, %v2167_v3 }
 0xb42   :  { %v2170_v8 = vmul.f32 1.442695, %v2166_v6  ;;  %v2165_v9 = vpop.xlane.xlu1 %2164 }
 0xb43   :  { %7136 = vpow2.f32 %v2172_v7  ;;  %v2169_v10 = vsub.f32 %v2153_v63, %v2165_v9  ;;  %v2162_v62 = vpop.xlane.xlu0 %2161 }
 0xb44   :  { %7138 = vpow2.f32 %v2170_v8  ;;  %v2168_v11 = vsub.f32 %v2152_v51, %v2162_v62 }
 0xb45   :  { %v2176_v2 = vmul.f32 1.442695, %v2169_v10 }
 0xb46   :  { %v2174_v12 = vmul.f32 1.442695, %v2168_v11 }
 0xb47   :  { %7140 = vpow2.f32 %v2176_v2 }
 0xb48   :  { %7142 = vpow2.f32 %v2174_v12 }
 0xb4d   :  { %v7137_v13 = vpop.eup %7136 }
 0xb4e   :  { %v7139_v18 = vpop.eup %7138  ;;  %v2181_v19 = vsel %vm72_vm0, %v7137_v13, 0.0 }
 0xb4f   :  { %2182 = vadd.xlane.f32.xlu1 %v2181_v19  ;;  %v2178_v20 = vsel %vm72_vm0, %v7139_v18, 0.0  ;;  %v2469_v19 = vld [vmem:[%s8409_s12] sm:$0xff] }
 0xb50   :  { %2179 = vadd.xlane.f32.xlu0 %v2178_v20  ;;  %v2470_v20 = vld [vmem:[%s8409_s12 + $0x8] sm:$0xff] }
 0xb51   :  { %v7141_v21 = vpop.eup %7140 }
 0xb52   :  { %v7143_v22 = vpop.eup %7142  ;;  %v2187_v23 = vsel %vm72_vm0, %v7141_v21, 0.0 }
 0xb53   :  { %2188 = vadd.xlane.f32.xlu1 %v2187_v23  ;;  %v2184_v24 = vsel %vm72_vm0, %v7143_v22, 0.0  ;;  %v2472_v23 = vld [vmem:[%s8409_s12 + $0x18] sm:$0xff] }
 0xb54   :  { %2185 = vadd.xlane.f32.xlu0 %v2184_v24 }
 0xbdc   :  { %v2183_v28 = vpop.xlane.xlu1 %2182 }
 0xbdd   :  { %7144 = vrcp.f32 %v2183_v28  ;;  %v2180_v32 = vpop.xlane.xlu0 %2179 }
 0xbde   :  { %7146 = vrcp.f32 %v2180_v32 }
 0xbe0   :  { %v2189_v29 = vpop.xlane.xlu1 %2188 }
 0xbe1   :  { %7148 = vrcp.f32 %v2189_v29  ;;  %v2186_v30 = vpop.xlane.xlu0 %2185 }
 0xbe2   :  { %7150 = vrcp.f32 %v2186_v30 }
 0xbe7   :  { %v7145_v31 = vpop.eup %7144 }
 0xbe8   :  { %v7147_v33 = vpop.eup %7146  ;;  %v2193_v34 = vmul.f32 %v7145_v31, %v7137_v13 }
 0xbe9   :  { %v2191_v35 = vmul.f32 %v7147_v33, %v7139_v18 }
 0xbeb   :  { %v7149_v36 = vpop.eup %7148  ;;  %6365 = vmatprep.mubr.msk.f32.mxu1 %vm72_vm0, %v2191_v35 }
 0xbec   :  { %v7151_v15 = vpop.eup %7150  ;;  %6366 = vmatmul.mubr.msk.f32.vlgmr.msra.gmra.mrb[36].mxu1 %vm72_vm0, %v2193_v34  ;;  %v2197_v14 = vmul.f32 %v7149_v36, %v7141_v21  ;;  %v6861_v21 = vpack.c.bf16 %v2470_v20, %v2469_v19 }
 0xbed   :  { %v2195_v37 = vmul.f32 %v7151_v15, %v7143_v22  ;;  %6860 = vmatpush3.bf16.msra.mxu1 %v6857_v27  ;;  %v2471_v22 = vld [vmem:[%s8409_s12 + $0x10] sm:$0xff] }
 0xbee   :  { %6862 = vmatprep.subr.bf16.mxu0 %v6861_v21  ;;  %v6865_v24 = vpack.c.bf16 %v2472_v23, %v2471_v22 }
 0xbef   :  { %6368 = vmatprep.mubr.msk.f32.mxu1 %vm72_vm0, %v2195_v37  ;;  %6864 = vmatpush3.bf16.msra.mxu0 %v6861_v21  ;;  %v5580_v37 = vld [vmem:[%s8407_s10] ss:$0 sm:$0xff] }
 0xbf0   :  { %6369 = vmatmul.mubr.msk.f32.gmra.mrb[38].mxu1 %vm72_vm0, %v2197_v14  ;;  %6866 = vmatprep.subr.bf16.mxu0 %v6865_v24 }
 0xbf3   :  { %6868 = vmatpush3.bf16.msra.mxu0 %v6865_v24 }
 0xcbf   :  { %v6367_v17 = vpop.f32.mrb[36].mxu1 }
 0xcc0   :  { %v2276_v16 = vpop.f32.mrb[37].mxu1 }
 0xcc1   :  { %6375 = vmatprep.mubr.msk.f32.mxu1 %vm459_vm3, %v2276_v16 }
 0xcc2   :  { %6376 = vmatmul.mubr.msk.f32.vlgmr.msra.gmra.mrb[16].mxu1 %vm459_vm3, %v6367_v17 }
 0xcc3   :  { %v6370_v38 = vpop.f32.mrb[38].mxu1 }
 0xcc4   :  { %v2286_v39 = vpop.f32.mrb[39].mxu1 }
 0xcc5   :  { %6378 = vmatprep.mubr.msk.f32.mxu1 %vm459_vm3, %v2286_v39 }
 0xcc6   :  { %6379 = vmatmul.mubr.msk.f32.gmra.mrb[18].mxu1 %vm459_vm3, %v6370_v38  ;;  %v5581_v38 = vld [vmem:[%s8408_s11] ss:$0 sm:$0xff] }
 0xd95   :  { %v6377_v43 = vpop.f32.mrb[16].mxu1 }
 0xd96   :  { %v7801_v44 = vadd.f32 %v6377_v43, %v279_v48  ;;  %v2376_v45 = vpop.f32.mrb[17].mxu1 }
 0xd97   :  { %v7803_v46 = vadd.f32 %v2376_v45, %v278_v42 }
 0xd98   :  { %v2404_v50 = vsel %vm72_vm0, %v7801_v44, 0.0 }
 0xd99   :  { %2405 = vadd.xlane.f32.xlu1 %v2404_v50  ;;  %v6380_v5 = vpop.f32.mrb[18].mxu1  ;;  %v2401_v55 = vsel %vm72_vm0, %v7803_v46, 0.0 }
 0xd9a   :  { %v7812_v52 = vadd.f32 %v6380_v5, %v279_v48  ;;  %2402 = vadd.xlane.f32.xlu0 %v2401_v55  ;;  %v2386_v53 = vpop.f32.mrb[19].mxu1 }
 0xd9b   :  { %v7814_v57 = vadd.f32 %v2386_v53, %v280_v49  ;;  %v2611_v53 = vld [vmem:[%s8411_s14] sm:$0xff] }
 0xd9c   :  { %v2410_v56 = vsel %vm72_vm0, %v7812_v52, 0.0 }
 0xd9d   :  { %2411 = vadd.xlane.f32.xlu1 %v2410_v56  ;;  %v2407_v59 = vsel %vm72_vm0, %v7814_v57, 0.0  ;;  %v2612_v56 = vld [vmem:[%s8411_s14 + $0x8] sm:$0xff] }
 0xd9e   :  { %2408 = vadd.xlane.f32.xlu0 %v2407_v59  ;;  %v6869_v59 = vpack.c.bf16 %v2612_v56, %v2611_v53 }
 0xda0   :  { %6870 = vmatprep.subr.bf16.mxu0 %v6869_v59 }
 0xe26   :  { %v2406_v60 = vpop.xlane.xlu1 %2405 }
 0xe27   :  { %v2414_v61 = vmul.f32 0.03125, %v2406_v60  ;;  %v2403_v63 = vpop.xlane.xlu0 %2402  ;;  %v2613_v60 = vld [vmem:[%s8411_s14 + $0x10] sm:$0xff] }
 0xe28   :  { %v2413_v51 = vmul.f32 0.03125, %v2403_v63 }
 0xe29   :  { %v2418_v54 = vsub.f32 %v7801_v44, %v2414_v61  ;;  %v2614_v61 = vld [vmem:[%s8411_s14 + $0x18] sm:$0xff] }
 0xe2a   :  { %v2417_v0 = vsub.f32 %v7803_v46, %v2413_v51  ;;  %v2412_v1 = vpop.xlane.xlu1 %2411  ;;  %v6873_v63 = vpack.c.bf16 %v2614_v61, %v2613_v60  ;;  %v2615_v51 = vld [vmem:[%s8411_s14 + $0x20] sm:$0xff] }
 0xe2b   :  { %v2416_v3 = vmul.f32 0.03125, %v2412_v1  ;;  %v2409_v4 = vpop.xlane.xlu0 %2408  ;;  %v2422_v6 = vmul.f32 %v2418_v54, %v2418_v54  ;;  %v2617_v1 = vld [vmem:[%s8411_s14 + $0x30] sm:$0xff] }
 0xe2c   :  { %v2415_v7 = vmul.f32 0.03125, %v2409_v4  ;;  %v2421_v8 = vmul.f32 %v2417_v0, %v2417_v0 }
 0xe2d   :  { %v2420_v9 = vsub.f32 %v7812_v52, %v2416_v3  ;;  %v2428_v10 = vsel %vm72_vm0, %v2422_v6, 0.0  ;;  %v2618_v3 = vld [vmem:[%s8411_s14 + $0x38] sm:$0xff]  ;;  %v5582_v6 = vld [vmem:[%s8410_s13] ss:$0 sm:$0xff] }
 0xe2e   :  { %v2419_v62 = vsub.f32 %v7814_v57, %v2415_v7  ;;  %2429 = vadd.xlane.f32.xlu1 %v2428_v10  ;;  %v2425_v11 = vsel %vm72_vm0, %v2421_v8, 0.0  ;;  %v6881_v4 = vpack.c.bf16 %v2618_v3, %v2617_v1 }
 0xe2f   :  { %2426 = vadd.xlane.f32.xlu0 %v2425_v11  ;;  %v2424_v2 = vmul.f32 %v2420_v9, %v2420_v9 }
 0xe30   :  { %v2423_v12 = vmul.f32 %v2419_v62, %v2419_v62 }
 0xe31   :  { %v2434_v13 = vsel %vm72_vm0, %v2424_v2, 0.0 }
 0xe32   :  { %2435 = vadd.xlane.f32.xlu1 %v2434_v13  ;;  %v2431_v18 = vsel %vm72_vm0, %v2423_v12, 0.0 }
 0xe33   :  { %2432 = vadd.xlane.f32.xlu0 %v2431_v18 }
 0xebb   :  { %v2430_v25 = vpop.xlane.xlu1 %2429 }
 0xebc   :  { %v2438_v26 = vmul.f32 0.03125, %v2430_v25  ;;  %v2427_v27 = vpop.xlane.xlu0 %2426 }
 0xebd   :  { %v2437_v28 = vmul.f32 0.03125, %v2427_v27 }
 0xebe   :  { %v2442_v32 = vadd.f32 1e-05, %v2438_v26 }
 0xebf   :  { %v2441_v29 = vadd.f32 1e-05, %v2437_v28  ;;  %v2436_v30 = vpop.xlane.xlu1 %2435 }
 0xec0   :  { %7152 = vrsqrt.f32 %v2442_v32  ;;  %v2440_v31 = vmul.f32 0.03125, %v2436_v30  ;;  %v2433_v33 = vpop.xlane.xlu0 %2432 }
 0xec1   :  { %7154 = vrsqrt.f32 %v2441_v29  ;;  %v2439_v35 = vmul.f32 0.03125, %v2433_v33 }
 0xec2   :  { %v2444_v34 = vadd.f32 1e-05, %v2440_v31 }
 0xec3   :  { %v2443_v36 = vadd.f32 1e-05, %v2439_v35 }
 0xec4   :  { %7156 = vrsqrt.f32 %v2444_v34 }
 0xec5   :  { %7158 = vrsqrt.f32 %v2443_v36 }
 0xeca   :  { %v7153_v15 = vpop.eup %7152 }
 0xecb   :  { %v7155_v14 = vpop.eup %7154  ;;  %v2450_v17 = vmul.f32 %v7153_v15, %v2418_v54  ;;  %v2616_v54 = vld [vmem:[%s8411_s14 + $0x28] sm:$0xff] }
 0xecc   :  { %v2449_v16 = vmul.f32 %v7155_v14, %v2417_v0  ;;  %v6877_v0 = vpack.c.bf16 %v2616_v54, %v2615_v51 }
 0xecd   :  { %v2458_v39 = vmul.f32 %v5580_v37, %v2450_v17 }
 0xece   :  { %v7157_v40 = vpop.eup %7156  ;;  %v2457_v48 = vmul.f32 %v5580_v37, %v2449_v16 }
 0xecf   :  { %v7159_v41 = vpop.eup %7158  ;;  %v2452_v42 = vmul.f32 %v7157_v40, %v2420_v9  ;;  %v2466_v47 = vadd.f32 %v5581_v38, %v2458_v39 }
 0xed0   :  { %v2465_v43 = vadd.f32 %v5581_v38, %v2457_v48  ;;  %v2451_v45 = vmul.f32 %v7159_v41, %v2419_v62 }
 0xed1   :  { %v2460_v49 = vmul.f32 %v5580_v37, %v2452_v42 }
 0xed2   :  { %6389 = vmatprep.mubr.msk.f32.mxu0 %vm72_vm0, %v2465_v43  ;;  %v2459_v50 = vmul.f32 %v5580_v37, %v2451_v45 }
 0xed3   :  { %6390 = vmatmul.mubr.msk.f32.vlgmr.msra.gmra.mrb[36].mxu0 %vm72_vm0, %v2466_v47  ;;  %v2468_v55 = vadd.f32 %v5581_v38, %v2460_v49 }
 0xed4   :  { %v2467_v5 = vadd.f32 %v5581_v38, %v2459_v50  ;;  %6872 = vmatpush3.bf16.msra.mxu0 %v6869_v59 }
 0xed5   :  { %6874 = vmatprep.subr.bf16.mxu0 %v6873_v63 }
 0xed6   :  { %6392 = vmatprep.mubr.msk.f32.mxu0 %vm72_vm0, %v2467_v5 }
 0xed7   :  { %6393 = vmatmul.mubr.msk.f32.gmra.mrb[38].mxu0 %vm72_vm0, %v2468_v55  ;;  %v5591_v55 = vld [vmem:[%s8412_s15] ss:$0 sm:$0xff] }
 0xed8   :  { %6876 = vmatpush3.bf16.msra.mxu0 %v6873_v63 }
 0xed9   :  { %6878 = vmatprep.subr.bf16.mxu0 %v6877_v0 }
 0xedc   :  { %6880 = vmatpush3.bf16.msra.mxu0 %v6877_v0 }
 0xedd   :  { %6882 = vmatprep.subr.bf16.mxu0 %v6881_v4 }
 0xee0   :  { %6884 = vmatpush3.bf16.msra.mxu0 %v6881_v4 }
 0xfa6   :  { %v6391_v7 = vpop.f32.mrb[36].mxu0 }
 0xfa7   :  { %v2562_v8 = vadd.f32 %v6391_v7, %v5582_v6  ;;  %v2556_v9 = vpop.f32.mrb[37].mxu0 }
 0xfa8   :  { %v2557_v10 = vadd.f32 %v5582_v6, %v2556_v9 }
 0xfa9   :  { %v2580_v62 = vmul.f32 %v2562_v8, %v2562_v8  ;;  %v2576_v38 = vmul.f32 0.5, %v2562_v8 }
 0xfaa   :  { %v2579_v11 = vmul.f32 %v2557_v10, %v2557_v10  ;;  %v6394_v2 = vpop.f32.mrb[38].mxu0  ;;  %v2575_v17 = vmul.f32 0.5, %v2557_v10 }
 0xfab   :  { %v2584_v12 = vmul.f32 %v2580_v62, %v2562_v8  ;;  %v2572_v13 = vadd.f32 %v6394_v2, %v5582_v6  ;;  %v2566_v18 = vpop.f32.mrb[39].mxu0 }
 0xfac   :  { %v2583_v19 = vmul.f32 %v2579_v11, %v2557_v10  ;;  %v2567_v20 = vadd.f32 %v5582_v6, %v2566_v18 }
 0xfad   :  { %v2588_v21 = vmul.f32 0.044715, %v2584_v12  ;;  %v2582_v22 = vmul.f32 %v2572_v13, %v2572_v13  ;;  %v2578_v47 = vmul.f32 0.5, %v2572_v13 }
 0xfae   :  { %v2587_v23 = vmul.f32 0.044715, %v2583_v19  ;;  %v2581_v24 = vmul.f32 %v2567_v20, %v2567_v20  ;;  %v2577_v43 = vmul.f32 0.5, %v2567_v20 }
 0xfaf   :  { %v2592_v25 = vadd.f32 %v2588_v21, %v2562_v8  ;;  %v2586_v26 = vmul.f32 %v2582_v22, %v2572_v13 }
 0xfb0   :  { %v2591_v27 = vadd.f32 %v2587_v23, %v2557_v10  ;;  %v2585_v28 = vmul.f32 %v2581_v24, %v2567_v20 }
 0xfb1   :  { %v2596_v32 = vmul.f32 0.7978846, %v2592_v25  ;;  %v2590_v29 = vmul.f32 0.044715, %v2586_v26 }
 0xfb2   :  { %v2595_v30 = vmul.f32 0.7978846, %v2591_v27  ;;  %v2589_v31 = vmul.f32 0.044715, %v2585_v28  ;;  %v5615_v27 = vld [vmem:[%s8402_s5 + $0x80] sm:$0xff]  ;;  %v5616_v28 = vld [vmem:[%s8402_s5 + $0x88] sm:$0xff] }
 0xfb3   :  { %7160 = vtanh.f32 %v2596_v32  ;;  %v2594_v33 = vadd.f32 %v2590_v29, %v2572_v13  ;;  %v6897_v32 = vpack.c.bf16 %v5616_v28, %v5615_v27  ;;  %v5617_v29 = vld [vmem:[%s8402_s5 + $0x90] sm:$0xff] }
 0xfb4   :  { %7162 = vtanh.f32 %v2595_v30  ;;  %v2593_v35 = vadd.f32 %v2589_v31, %v2567_v20  ;;  %v5618_v30 = vld [vmem:[%s8402_s5 + $0x98] sm:$0xff] }
 0xfb5   :  { %v2598_v34 = vmul.f32 0.7978846, %v2594_v33  ;;  %6898 = vmatprep.subr.bf16.mxu0 %v6897_v32  ;;  %v6901_v31 = vpack.c.bf16 %v5618_v30, %v5617_v29  ;;  %v5623_v33 = vld [vmem:[%s8404_s7 + $0x80] sm:$0xff] }
 0xfb6   :  { %v2597_v36 = vmul.f32 0.7978846, %v2593_v35  ;;  %v5624_v35 = vld [vmem:[%s8404_s7 + $0x88] sm:$0xff] }
 0xfb7   :  { %7164 = vtanh.f32 %v2598_v34  ;;  %v6905_v34 = vpack.c.bf16 %v5624_v35, %v5623_v33 }
 0xfb8   :  { %7166 = vtanh.f32 %v2597_v36  ;;  %v5594_v36 = vld [vmem:[%s8403_s6 + $0x40] sm:$0xff] }
 0xfb9   :  { %6425 = vmatprep.mubr.msk.f32.mxu1 %vm72_vm0, %v5594_v36 }
 0xfbd   :  { %v7161_v15 = vpop.eup %7160 }
 0xfbe   :  { %v7163_v37 = vpop.eup %7162  ;;  %v2604_v14 = vadd.f32 1.0, %v7161_v15 }
 0xfbf   :  { %v2603_v16 = vadd.f32 1.0, %v7163_v37 }
 0xfc0   :  { %v2608_v41 = vmul.f32 %v2604_v14, %v2576_v38 }
 0xfc1   :  { %v7165_v39 = vpop.eup %7164  ;;  %v2607_v40 = vmul.f32 %v2603_v16, %v2575_v17 }
 0xfc2   :  { %v7167_v48 = vpop.eup %7166  ;;  %v2606_v42 = vadd.f32 1.0, %v7165_v39 }
 0xfc3   :  { %6411 = vmatprep.mubr.msk.f32.mxu0 %vm2619_vm4, %v2607_v40  ;;  %v2605_v45 = vadd.f32 1.0, %v7167_v48 }
 0xfc4   :  { %6412 = vmatmul.mubr.msk.f32.vlgmr.msra.gmra.mrb[40].mxu0 %vm2619_vm4, %v2608_v41  ;;  %v2610_v50 = vmul.f32 %v2606_v42, %v2578_v47  ;;  %v5592_v47 = vld [vmem:[%s8400_s3 + $0x1] ss:$0 sm:$0xff] }
 0xfc5   :  { %v2609_v49 = vmul.f32 %v2605_v45, %v2577_v43  ;;  %6900 = vmatpush3.bf16.msra.mxu0 %v6897_v32 }
 0xfc6   :  { %6902 = vmatprep.subr.bf16.mxu0 %v6901_v31 }
 0xfc7   :  { %6414 = vmatprep.mubr.msk.f32.mxu0 %vm2619_vm4, %v2609_v49 }
 0xfc8   :  { %6415 = vmatmul.mubr.msk.f32.gmra.mrb[42].mxu0 %vm2619_vm4, %v2610_v50 }
 0xfc9   :  { %6904 = vmatpush3.bf16.msra.mxu0 %v6901_v31 }
 0xfca   :  { %6906 = vmatprep.subr.bf16.mxu0 %v6905_v34 }
0x1097   :  { %v6413_v5 = vpop.f32.mrb[40].mxu0 }
0x1098   :  { %v2718_v53 = vadd.f32 %v7801_v44, %v6413_v5  ;;  %v2698_v56 = vpop.f32.mrb[41].mxu0  ;;  %v5593_v5 = vld [vmem:[%s8401_s4 + $0x1] ss:$0 sm:$0xff] }
0x1099   :  { %v2717_v59 = vadd.f32 %v7803_v46, %v2698_v56 }
0x109a   :  { %v7886_v60 = vadd.f32 %v5591_v55, %v2718_v53 }
0x109b   :  { %v7888_v61 = vadd.f32 %v5591_v55, %v2717_v59  ;;  %v6416_v63 = vpop.f32.mrb[42].mxu0 }
0x109c   :  { %v2720_v51 = vadd.f32 %v7812_v52, %v6416_v63  ;;  %v2708_v54 = vpop.f32.mrb[43].mxu0  ;;  %v2735_v0 = vsel %vm72_vm0, %v7886_v60, 0.0  ;;  %v5625_v63 = vld [vmem:[%s8404_s7 + $0x90] sm:$0xff] }
0x109d   :  { %v2719_v1 = vadd.f32 %v7814_v57, %v2708_v54  ;;  %2736 = vadd.xlane.f32.xlu1 %v2735_v0  ;;  %v2732_v44 = vsel %vm72_vm0, %v7888_v61, 0.0 }
0x109e   :  { %v7896_v3 = vadd.f32 %v5591_v55, %v2720_v51  ;;  %2733 = vadd.xlane.f32.xlu0 %v2732_v44  ;;  %v5626_v51 = vld [vmem:[%s8404_s7 + $0x98] sm:$0xff] }
0x109f   :  { %v7898_v46 = vadd.f32 %v5591_v55, %v2719_v1 }
0x10a0   :  { %v2741_v4 = vsel %vm72_vm0, %v7896_v3, 0.0 }
0x10a1   :  { %2742 = vadd.xlane.f32.xlu1 %v2741_v4  ;;  %v2738_v52 = vsel %vm72_vm0, %v7898_v46, 0.0 }
0x10a2   :  { %2739 = vadd.xlane.f32.xlu0 %v2738_v52 }
0x112a   :  { %v2737_v6 = vpop.xlane.xlu1 %2736 }
0x112b   :  { %v2745_v7 = vmul.f32 0.03125, %v2737_v6  ;;  %v2734_v57 = vpop.xlane.xlu0 %2733  ;;  %v6909_v6 = vpack.c.bf16 %v5626_v51, %v5625_v63 }
0x112c   :  { %v2744_v8 = vmul.f32 0.03125, %v2734_v57 }
0x112d   :  { %v2749_v9 = vsub.f32 %v7886_v60, %v2745_v7 }
0x112e   :  { %v2748_v10 = vsub.f32 %v7888_v61, %v2744_v8  ;;  %v2743_v62 = vpop.xlane.xlu1 %2742 }
0x112f   :  { %v2747_v11 = vmul.f32 0.03125, %v2743_v62  ;;  %v2740_v2 = vpop.xlane.xlu0 %2739  ;;  %v2753_v12 = vmul.f32 %v2749_v9, %v2749_v9  ;;  %v5595_v62 = vld [vmem:[%s8403_s6 + $0x48] sm:$0xff] }
0x1130   :  { %v2746_v13 = vmul.f32 0.03125, %v2740_v2  ;;  %v2752_v18 = vmul.f32 %v2748_v10, %v2748_v10  ;;  %v5598_v2 = vld [vmem:[%s8403_s6 + $0x60] sm:$0xff] }
0x1131   :  { %v2751_v19 = vsub.f32 %v7896_v3, %v2747_v11  ;;  %v2759_v20 = vsel %vm72_vm0, %v2753_v12, 0.0  ;;  %v5596_v11 = vld [vmem:[%s8403_s6 + $0x50] sm:$0xff]  ;;  %v5599_v12 = vld [vmem:[%s8403_s6 + $0x68] sm:$0xff] }
0x1132   :  { %v2750_v21 = vsub.f32 %v7898_v46, %v2746_v13  ;;  %2760 = vadd.xlane.f32.xlu1 %v2759_v20  ;;  %v2756_v22 = vsel %vm72_vm0, %v2752_v18, 0.0  ;;  %v5600_v13 = vld [vmem:[%s8403_s6 + $0x70] sm:$0xff]  ;;  %v5601_v18 = vld [vmem:[%s8403_s6 + $0x78] sm:$0xff] }
0x1133   :  { %2757 = vadd.xlane.f32.xlu0 %v2756_v22  ;;  %v2755_v23 = vmul.f32 %v2751_v19, %v2751_v19 }
0x1134   :  { %v2754_v24 = vmul.f32 %v2750_v21, %v2750_v21 }
0x1135   :  { %v2765_v25 = vsel %vm72_vm0, %v2755_v23, 0.0 }
0x1136   :  { %2766 = vadd.xlane.f32.xlu1 %v2765_v25  ;;  %v2762_v26 = vsel %vm72_vm0, %v2754_v24, 0.0 }
0x1137   :  { %2763 = vadd.xlane.f32.xlu0 %v2762_v26 }
0x11bf   :  { %v2761_v15 = vpop.xlane.xlu1 %2760 }
0x11c0   :  { %v2769_v37 = vmul.f32 0.03125, %v2761_v15  ;;  %v2758_v14 = vpop.xlane.xlu0 %2757 }
0x11c1   :  { %v2768_v17 = vmul.f32 0.03125, %v2758_v14 }
0x11c2   :  { %v2773_v16 = vadd.f32 1e-05, %v2769_v37 }
0x11c3   :  { %v2772_v38 = vadd.f32 1e-05, %v2768_v17  ;;  %v2767_v39 = vpop.xlane.xlu1 %2766 }
0x11c4   :  { %7168 = vrsqrt.f32 %v2773_v16  ;;  %v2771_v40 = vmul.f32 0.03125, %v2767_v39  ;;  %v2764_v48 = vpop.xlane.xlu0 %2763 }
0x11c5   :  { %7170 = vrsqrt.f32 %v2772_v38  ;;  %v2770_v41 = vmul.f32 0.03125, %v2764_v48  ;;  %v8023_v48 = vld [vmem:[%s8425_s26 + $0x8] sm:$0xff] }
0x11c6   :  { %v2775_v42 = vadd.f32 1e-05, %v2771_v40 }
0x11c7   :  { %v2774_v43 = vadd.f32 1e-05, %v2770_v41 }
0x11c8   :  { %7172 = vrsqrt.f32 %v2775_v42 }
0x11c9   :  { %7174 = vrsqrt.f32 %v2774_v43  ;;  %v8029_v43 = vld [vmem:[%s8425_s26] sm:$0xff] }
0x11ce   :  { %v7169_v45 = vpop.eup %7168 }
0x11cf   :  { %v7171_v49 = vpop.eup %7170  ;;  %v2781_v50 = vmul.f32 %v7169_v45, %v2749_v9 }
0x11d0   :  { %v2780_v55 = vmul.f32 %v7171_v49, %v2748_v10 }
0x11d1   :  { %v2789_v53 = vmul.f32 %v5592_v47, %v2781_v50 }
0x11d2   :  { %v7173_v56 = vpop.eup %7172  ;;  %v2788_v59 = vmul.f32 %v5592_v47, %v2780_v55 }
0x11d3   :  { %v7175_v54 = vpop.eup %7174  ;;  %v7946_v0 = vadd.f32 %v5593_v5, %v2789_v53  ;;  %v2783_v1 = vmul.f32 %v7173_v56, %v2751_v19  ;;  %v8037_v53 = vld [vmem:[%s8425_s26 + $0x18] sm:$0xff] }
0x11d4   :  { %v7948_v44 = vadd.f32 %v5593_v5, %v2788_v59  ;;  %v2782_v4 = vmul.f32 %v7175_v54, %v2750_v21  ;;  %v8043_v59 = vld [vmem:[%s8425_s26 + $0x10] sm:$0xff] }
0x11d5   :  { %v2791_v52 = vmul.f32 %v5592_v47, %v2783_v1 }
0x11d6   :  { %v2790_v7 = vmul.f32 %v5592_v47, %v2782_v4  ;;  %6445 = vmatprep.mubr.msk.f32.mxu0 %vm72_vm0, %v7948_v44  ;;  %v6885_v57 = vpack.c.bf16 %v7946_v0, %v7948_v44 }
0x11d7   :  { %v7954_v8 = vadd.f32 %v5593_v5, %v2791_v52  ;;  %6446 = vmatmul.mubr.msk.f32.vlgmr.msra.gmra.mrb[44].mxu0 %vm72_vm0, %v7946_v0 }
0x11d8   :  { %v7958_v9 = vadd.f32 %v5593_v5, %v2790_v7  ;;  %6887 = vmatprep.subr.msk.bf16.mxu1 %vm7448_vm2, %v6885_v57  ;;  %6908 = vmatpush3.bf16.msra.mxu0 %v6905_v34 }
0x11d9   :  { %6890 = vmatpush3.bf16.xpose.msk.msra.mxu1 %vm7448_vm2, %v6885_v57  ;;  %6910 = vmatprep.subr.bf16.mxu0 %v6909_v6 }
0x11da   :  { %6448 = vmatprep.mubr.msk.f32.mxu0 %vm72_vm0, %v7958_v9  ;;  %v6891_v10 = vpack.c.bf16 %v7954_v8, %v7958_v9 }
0x11db   :  { %6449 = vmatmul.mubr.msk.f32.gmra.mrb[46].mxu0 %vm72_vm0, %v7954_v8 }
0x11dc   :  { %6893 = vmatprep.subr.msk.bf16.mxu1 %vm7448_vm2, %v6891_v10  ;;  %6912 = vmatpush3.bf16.msra.mxu0 %v6909_v6 }
0x11dd   :  { %6459 = vmatprep.mubr.msk.f32.mxu0 %vm72_vm0, %v7948_v44 }
0x11df   :  { %6460 = vmatmul.mubr.msk.f32.vlgmr.msra.gmra.mrb[48].mxu0 %vm72_vm0, %v7946_v0 }
0x11e0   :  { %6462 = vmatprep.mubr.msk.f32.mxu0 %vm72_vm0, %v7958_v9 }
0x11e1   :  { %6896 = vmatpush3.bf16.xpose.msk.msra.mxu1 %vm7448_vm2, %v6891_v10 }
0x11e3   :  { %6463 = vmatmul.mubr.msk.f32.gmra.mrb[50].mxu0 %vm72_vm0, %v7954_v8 }
0x11e8   :  { %6426 = vmatmul.mubr.msk.f32.vlgmr.msra.gmra.mrb[40].mxu1 %vm72_vm0, %v5595_v62 }
0x11e9   :  { %6428 = vmatprep.mubr.msk.f32.mxu1 %vm72_vm0, %v5596_v11 }
0x11ec   :  { %6429 = vmatmul.mubr.msk.f32.gmra.mrb[42].mxu1 %vm72_vm0, %v5597_v58 }
0x11ed   :  { %6431 = vmatprep.mubr.msk.f32.mxu1 %vm72_vm0, %v5598_v2 }
0x11f0   :  { %6432 = vmatmul.mubr.msk.f32.gmra.mrb[44].mxu1 %vm72_vm0, %v5599_v12 }
0x11f1   :  { %6434 = vmatprep.mubr.msk.f32.mxu1 %vm72_vm0, %v5600_v13 }
0x11f4   :  { %6435 = vmatmul.mubr.msk.f32.gmra.mrb[46].mxu1 %vm72_vm0, %v5601_v18 }
0x12aa   :  { %v6447_v19 = vpop.f32.mrb[44].mxu0 }
0x12ab   :  { %v3030_v20 = vpop.f32.mrb[45].mxu0 }
0x12ac   :  { %6469 = vmatprep.mubr.msk.f32.mxu1 %vm459_vm3, %v3030_v20 }
0x12ae   :  { %v6450_v21 = vpop.f32.mrb[46].mxu0 }
0x12af   :  { %v3040_v22 = vpop.f32.mrb[47].mxu0 }
0x12b2   :  { %v6461_v23 = vpop.f32.mrb[48].mxu0 }
0x12b3   :  { %v3120_v24 = vpop.f32.mrb[49].mxu0 }
0x12b4   :  { %v6917_v25 = vpack.c.bf16 %v6461_v23, %v3120_v24 }
0x12b6   :  { %v6464_v26 = vpop.f32.mrb[50].mxu0  ;;  %6918 = vmatprep.subr.bf16.mxu0 %v6917_v25 }
0x12b7   :  { %v3130_v27 = vpop.f32.mrb[51].mxu0  ;;  %6920 = vmatpush3.bf16.msra.mxu0 %v6917_v25  ;;  %v5645_v25 = vld [vmem:[%s8402_s5 + $0xa0] sm:$0xff] }
0x12b8   :  { %v6921_v28 = vpack.c.bf16 %v6464_v26, %v3130_v27  ;;  %v5646_v26 = vld [vmem:[%s8402_s5 + $0xa8] sm:$0xff] }
0x12b9   :  { %v6929_v27 = vpack.c.bf16 %v5646_v26, %v5645_v25 }
0x12ba   :  { %6922 = vmatprep.subr.bf16.mxu0 %v6921_v28 }
0x12bb   :  { %v6427_v32 = vpop.f32.mrb[40].mxu1  ;;  %6924 = vmatpush3.bf16.msra.mxu0 %v6921_v28  ;;  %v5639_v28 = vld [vmem:[%s8405_s8 + $0x40] sm:$0xff] }
0x12bc   :  { %v2911_v29 = vpop.f32.mrb[41].mxu1  ;;  %6930 = vmatprep.subr.bf16.mxu0 %v6929_v27 }
0x12bd   :  { %v6913_v30 = vpack.c.bf16 %v6427_v32, %v2911_v29  ;;  %v5640_v32 = vld [vmem:[%s8405_s8 + $0x48] sm:$0xff] }
0x12be   :  { %v6925_v29 = vpack.c.bf16 %v5640_v32, %v5639_v28 }
0x12bf   :  { %6914 = vmatprep.subr.bf16.mxu1 %v6913_v30  ;;  %v6430_v31 = vpop.f32.mrb[42].mxu1 }
0x12c0   :  { %6916 = vmatpush3.bf16.msra.mxu1 %v6913_v30  ;;  %v2921_v33 = vpop.f32.mrb[43].mxu1 }
0x12c1   :  { %v8011_v35 = vpack.c.bf16 %v6430_v31, %v2921_v33  ;;  %6926 = vmatprep.subr.bf16.mxu1 %v6925_v29 }
0x12c3   :  { %6470 = vmatmul.mubr.msk.f32.vlgmr.msra.gmra.mrb[48].mxu1 %vm459_vm3, %v6447_v19  ;;  %v6433_v34 = vpop.f32.mrb[44].mxu1 }
0x12c4   :  { %6472 = vmatprep.mubr.msk.f32.mxu1 %vm459_vm3, %v3040_v22  ;;  %v2931_v36 = vpop.f32.mrb[45].mxu1  ;;  %6928 = vmatpush3.bf16.msra.mxu1 %v6925_v29 }
0x12c5   :  { %v8015_v15 = vpack.c.bf16 %v6433_v34, %v2931_v36 }
0x12c7   :  { %6473 = vmatmul.mubr.msk.f32.gmra.mrb[50].mxu1 %vm459_vm3, %v6450_v21  ;;  %v6436_v37 = vpop.f32.mrb[46].mxu1 }
0x12c8   :  { %v2941_v14 = vpop.f32.mrb[47].mxu1 }
0x12c9   :  { %v8018_v17 = vpack.c.bf16 %v6436_v37, %v2941_v14  ;;  %v5647_v37 = vld [vmem:[%s8402_s5 + $0xb0] sm:$0xff]  ;;  %v5648_v14 = vld [vmem:[%s8402_s5 + $0xb8] sm:$0xff] }
0x1396   :  { %v6471_v16 = vpop.f32.mrb[48].mxu1 }
0x1397   :  { %v3237_v38 = vmul.f32 0.25, %v6471_v16  ;;  %v3217_v39 = vpop.f32.mrb[49].mxu1 }
0x1398   :  { %v3236_v40 = vmul.f32 0.25, %v3217_v39 }
0x1399   :  { %v3241_v41 = vadd.f32 %v8023_v48, %v3237_v38 }
0x139a   :  { %v6474_v42 = vpop.f32.mrb[50].mxu1  ;;  %v3240_v45 = vadd.f32 %v8029_v43, %v3236_v40  ;;  %v6933_v40 = vpack.c.bf16 %v5648_v14, %v5647_v37 }
0x139b   :  { %v3239_v47 = vmul.f32 0.25, %v6474_v42  ;;  %v3227_v49 = vpop.f32.mrb[51].mxu1  ;;  %v3247_v50 = vsel %vm72_vm0, %v3241_v41, -inf }
0x139c   :  { %v3238_v5 = vmul.f32 0.25, %v3227_v49  ;;  %3248 = vmax.xlane.f32.xlu1 %v3247_v50  ;;  %v3244_v55 = vsel %vm72_vm0, %v3240_v45, -inf  ;;  %v5653_v49 = vld [vmem:[%s8404_s7 + $0xa0] sm:$0xff]  ;;  %v5654_v50 = vld [vmem:[%s8404_s7 + $0xa8] sm:$0xff] }
0x139d   :  { %3245 = vmax.xlane.f32.xlu0 %v3244_v55  ;;  %v3243_v56 = vadd.f32 %v8037_v53, %v3239_v47  ;;  %v5676_v55 = vld [vmem:[%s8402_s5 + $0xc8] sm:$0xff] }
0x139e   :  { %v3242_v63 = vadd.f32 %v8043_v59, %v3238_v5  ;;  %v6937_v5 = vpack.c.bf16 %v5654_v50, %v5653_v49 }
0x139f   :  { %v3253_v51 = vsel %vm72_vm0, %v3243_v56, -inf }
0x13a0   :  { %3254 = vmax.xlane.f32.xlu1 %v3253_v51  ;;  %v3250_v54 = vsel %vm72_vm0, %v3242_v63, -inf  ;;  %6938 = vmatprep.subr.bf16.mxu1 %v6937_v5  ;;  %v5656_v51 = vld [vmem:[%s8404_s7 + $0xb8] sm:$0xff] }
0x13a1   :  { %3251 = vmax.xlane.f32.xlu0 %v3250_v54 }
0x1429   :  { %v3249_v1 = vpop.xlane.xlu1 %3248 }
0x142a   :  { %v3257_v4 = vsub.f32 %v3241_v41, %v3249_v1  ;;  %v3246_v52 = vpop.xlane.xlu0 %3245 }
0x142b   :  { %v3256_v6 = vsub.f32 %v3240_v45, %v3246_v52 }
0x142c   :  { %v3262_v7 = vmul.f32 1.442695, %v3257_v4 }
0x142d   :  { %v3260_v57 = vmul.f32 1.442695, %v3256_v6  ;;  %v3255_v10 = vpop.xlane.xlu1 %3254 }
0x142e   :  { %7176 = vpow2.f32 %v3262_v7  ;;  %v3259_v62 = vsub.f32 %v3243_v56, %v3255_v10  ;;  %v3252_v11 = vpop.xlane.xlu0 %3251  ;;  %v5677_v7 = vld [vmem:[%s8402_s5 + $0xd0] sm:$0xff] }
0x142f   :  { %7178 = vpow2.f32 %v3260_v57  ;;  %v3258_v58 = vsub.f32 %v3242_v63, %v3252_v11  ;;  %v5655_v63 = vld [vmem:[%s8404_s7 + $0xb0] sm:$0xff]  ;;  %v5678_v57 = vld [vmem:[%s8402_s5 + $0xd8] sm:$0xff] }
0x1430   :  { %v3266_v2 = vmul.f32 1.442695, %v3259_v62  ;;  %v6941_v4 = vpack.c.bf16 %v5656_v51, %v5655_v63  ;;  %v6965_v11 = vpack.c.bf16 %v5678_v57, %v5677_v7 }
0x1431   :  { %v3264_v12 = vmul.f32 1.442695, %v3258_v58  ;;  %v5683_v58 = vld [vmem:[%s8404_s7 + $0xc0] sm:$0xff] }
0x1432   :  { %7180 = vpow2.f32 %v3266_v2  ;;  %v5684_v2 = vld [vmem:[%s8404_s7 + $0xc8] sm:$0xff] }
0x1433   :  { %7182 = vpow2.f32 %v3264_v12 }
0x1438   :  { %v7177_v13 = vpop.eup %7176 }
0x1439   :  { %v7179_v18 = vpop.eup %7178  ;;  %v3271_v19 = vsel %vm72_vm0, %v7177_v13, 0.0 }
0x143a   :  { %3272 = vadd.xlane.f32.xlu1 %v3271_v19  ;;  %v3268_v20 = vsel %vm72_vm0, %v7179_v18, 0.0  ;;  %v5685_v19 = vld [vmem:[%s8404_s7 + $0xd0] sm:$0xff] }
0x143b   :  { %3269 = vadd.xlane.f32.xlu0 %v3268_v20  ;;  %v5686_v20 = vld [vmem:[%s8404_s7 + $0xd8] sm:$0xff] }
0x143c   :  { %v7181_v21 = vpop.eup %7180 }
0x143d   :  { %v7183_v22 = vpop.eup %7182  ;;  %v3277_v23 = vsel %vm72_vm0, %v7181_v21, 0.0 }
0x143e   :  { %3278 = vadd.xlane.f32.xlu1 %v3277_v23  ;;  %v3274_v24 = vsel %vm72_vm0, %v7183_v22, 0.0 }
0x143f   :  { %3275 = vadd.xlane.f32.xlu0 %v3274_v24 }
0x14c7   :  { %v3273_v30 = vpop.xlane.xlu1 %3272 }
0x14c8   :  { %7184 = vrcp.f32 %v3273_v30  ;;  %v3270_v31 = vpop.xlane.xlu0 %3269 }
0x14c9   :  { %7186 = vrcp.f32 %v3270_v31 }
0x14cb   :  { %v3279_v33 = vpop.xlane.xlu1 %3278 }
0x14cc   :  { %7188 = vrcp.f32 %v3279_v33  ;;  %v3276_v34 = vpop.xlane.xlu0 %3275 }
0x14cd   :  { %7190 = vrcp.f32 %v3276_v34 }
0x14d2   :  { %v7185_v36 = vpop.eup %7184 }
0x14d3   :  { %v7187_v16 = vpop.eup %7186  ;;  %v3283_v39 = vmul.f32 %v7185_v36, %v7177_v13 }
0x14d4   :  { %v3281_v38 = vmul.f32 %v7187_v16, %v7179_v18  ;;  %v6969_v18 = vpack.c.bf16 %v5684_v2, %v5683_v58 }
0x14d6   :  { %v7189_v41 = vpop.eup %7188  ;;  %6483 = vmatprep.mubr.msk.f32.mxu0 %vm72_vm0, %v3281_v38 }
0x14d7   :  { %v7191_v42 = vpop.eup %7190  ;;  %6484 = vmatmul.mubr.msk.f32.vlgmr.msra.gmra.mrb[52].mxu0 %vm72_vm0, %v3283_v39  ;;  %v3287_v47 = vmul.f32 %v7189_v41, %v7181_v21  ;;  %v6973_v21 = vpack.c.bf16 %v5686_v20, %v5685_v19 }
0x14d8   :  { %6932 = vmatpush3.bf16.msra.mxu0 %v6929_v27  ;;  %v3285_v45 = vmul.f32 %v7191_v42, %v7183_v22 }
0x14d9   :  { %6934 = vmatprep.subr.bf16.mxu0 %v6933_v40 }
0x14da   :  { %6486 = vmatprep.mubr.msk.f32.mxu0 %vm72_vm0, %v3285_v45 }
0x14db   :  { %6487 = vmatmul.mubr.msk.f32.gmra.mrb[54].mxu0 %vm72_vm0, %v3287_v47 }
0x14dc   :  { %6936 = vmatpush3.bf16.msra.mxu0 %v6933_v40  ;;  %6507 = vmatprep.mubr.msk.f32.mxu0 %vm72_vm0, %v7948_v44 }
0x14dd   :  { %6946 = vmatprep.subr.bf16.mxu0 %v8011_v35 }
0x14df   :  { %6508 = vmatmul.mubr.msk.f32.vlgmr.msra.gmra.mrb[56].mxu0 %vm72_vm0, %v7946_v0 }
0x14e0   :  { %6948 = vmatpush3.bf16.msra.mxu0 %v8011_v35  ;;  %6510 = vmatprep.mubr.msk.f32.mxu0 %vm72_vm0, %v7958_v9  ;;  %v5675_v35 = vld [vmem:[%s8402_s5 + $0xc0] sm:$0xff] }
0x14e1   :  { %v6961_v56 = vpack.c.bf16 %v5676_v55, %v5675_v35 }
0x14e3   :  { %6511 = vmatmul.mubr.msk.f32.gmra.mrb[58].mxu0 %vm72_vm0, %v7954_v8  ;;  %6962 = vmatprep.subr.bf16.mxu0 %v6961_v56 }
0x15aa   :  { %v6485_v54 = vpop.f32.mrb[52].mxu0 }
0x15ab   :  { %v3366_v1 = vpop.f32.mrb[53].mxu0 }
0x15ac   :  { %6493 = vmatprep.mubr.msk.f32.mxu1 %vm459_vm3, %v3366_v1 }
0x15ad   :  { %6494 = vmatmul.mubr.msk.f32.vlgmr.msra.gmra.mrb[52].mxu1 %vm459_vm3, %v6485_v54 }
0x15ae   :  { %v6488_v52 = vpop.f32.mrb[54].mxu0  ;;  %6940 = vmatpush3.bf16.msra.mxu1 %v6937_v5 }
0x15af   :  { %v3376_v6 = vpop.f32.mrb[55].mxu0  ;;  %6942 = vmatprep.subr.bf16.mxu1 %v6941_v4 }
0x15b0   :  { %6496 = vmatprep.mubr.msk.f32.mxu1 %vm459_vm3, %v3376_v6 }
0x15b1   :  { %6497 = vmatmul.mubr.msk.f32.gmra.mrb[54].mxu1 %vm459_vm3, %v6488_v52 }
0x15b2   :  { %v6509_v10 = vpop.f32.mrb[56].mxu0  ;;  %6944 = vmatpush3.bf16.msra.mxu1 %v6941_v4  ;;  %6521 = vmatprep.mubr.msk.f32.mxu1 %vm72_vm0, %v7948_v44 }
0x15b3   :  { %v3560_v62 = vpop.f32.mrb[57].mxu0 }
0x15b4   :  { %6531 = vmatprep.mubr.msk.f32.mxu0 %vm459_vm3, %v3560_v62 }
0x15b5   :  { %6522 = vmatmul.mubr.msk.f32.vlgmr.msra.gmra.mrb[56].mxu1 %vm72_vm0, %v7946_v0  ;;  %6532 = vmatmul.mubr.msk.f32.vlgmr.msra.gmra.mrb[60].mxu0 %vm459_vm3, %v6509_v10 }
0x15b6   :  { %v6512_v12 = vpop.f32.mrb[58].mxu0  ;;  %6524 = vmatprep.mubr.msk.f32.mxu1 %vm72_vm0, %v7958_v9  ;;  %6964 = vmatpush3.bf16.msra.mxu0 %v6961_v56 }
0x15b7   :  { %v3570_v13 = vpop.f32.mrb[59].mxu0  ;;  %6966 = vmatprep.subr.bf16.mxu0 %v6965_v11 }
0x15b8   :  { %6534 = vmatprep.mubr.msk.f32.mxu0 %vm459_vm3, %v3570_v13 }
0x15b9   :  { %6525 = vmatmul.mubr.msk.f32.gmra.mrb[58].mxu1 %vm72_vm0, %v7954_v8  ;;  %6535 = vmatmul.mubr.msk.f32.gmra.mrb[62].mxu0 %vm459_vm3, %v6512_v12 }
0x15ba   :  { %6968 = vmatpush3.bf16.msra.mxu0 %v6965_v11  ;;  %6569 = vmatprep.mubr.msk.f32.mxu0 %vm72_vm0, %v7948_v44 }
0x15bb   :  { %6970 = vmatprep.subr.bf16.mxu0 %v6969_v18 }
0x15bd   :  { %6570 = vmatmul.mubr.msk.f32.vlgmr.msra.gmra.mrb[64].mxu0 %vm72_vm0, %v7946_v0 }
0x15be   :  { %6572 = vmatprep.mubr.msk.f32.mxu0 %vm72_vm0, %v7958_v9  ;;  %6972 = vmatpush3.bf16.msra.mxu0 %v6969_v18 }
0x15bf   :  { %6974 = vmatprep.subr.bf16.mxu0 %v6973_v21 }
0x15c1   :  { %6573 = vmatmul.mubr.msk.f32.gmra.mrb[66].mxu0 %vm72_vm0, %v7954_v8 }
0x15c2   :  { %6976 = vmatpush3.bf16.msra.mxu0 %v6973_v21  ;;  %6583 = vmatprep.mubr.msk.f32.mxu0 %vm72_vm0, %v7948_v44 }
0x15c5   :  { %6584 = vmatmul.mubr.msk.f32.vlgmr.msra.gmra.mrb[68].mxu0 %vm72_vm0, %v7946_v0 }
0x15c6   :  { %6586 = vmatprep.mubr.msk.f32.mxu0 %vm72_vm0, %v7958_v9 }
0x15c9   :  { %6587 = vmatmul.mubr.msk.f32.gmra.mrb[70].mxu0 %vm72_vm0, %v7954_v8 }
0x1688   :  { %v6523_v22 = vpop.f32.mrb[56].mxu1  ;;  %v6533_v23 = vpop.f32.mrb[60].mxu0 }
0x1689   :  { %v3767_v24 = vmul.f32 0.25, %v6533_v23  ;;  %v3650_v25 = vpop.f32.mrb[57].mxu1  ;;  %v3747_v26 = vpop.f32.mrb[61].mxu0 }
0x168a   :  { %v6949_v27 = vpack.c.bf16 %v6523_v22, %v3650_v25  ;;  %v3766_v28 = vmul.f32 0.25, %v3747_v26  ;;  %v5670_v25 = vld [vmem:[%s8405_s8 + $0x58] sm:$0xff] }
0x168b   :  { %v3771_v32 = vadd.f32 %v8023_v48, %v3767_v24  ;;  %v5669_v24 = vld [vmem:[%s8405_s8 + $0x50] sm:$0xff] }
0x168c   :  { %v6526_v29 = vpop.f32.mrb[58].mxu1  ;;  %v6536_v30 = vpop.f32.mrb[62].mxu0  ;;  %6950 = vmatprep.subr.bf16.mxu1 %v6949_v27  ;;  %v3770_v31 = vadd.f32 %v8029_v43, %v3766_v28  ;;  %v6957_v26 = vpack.c.bf16 %v5670_v25, %v5669_v24 }
0x168d   :  { %v3769_v33 = vmul.f32 0.25, %v6536_v30  ;;  %v3660_v34 = vpop.f32.mrb[59].mxu1  ;;  %v3757_v36 = vpop.f32.mrb[63].mxu0  ;;  %6952 = vmatpush3.bf16.msra.mxu1 %v6949_v27  ;;  %v3777_v37 = vsel %vm72_vm0, %v3771_v32, -inf }
0x168e   :  { %v6953_v14 = vpack.c.bf16 %v6526_v29, %v3660_v34  ;;  %v3768_v16 = vmul.f32 0.25, %v3757_v36  ;;  %3778 = vmax.xlane.f32.xlu1 %v3777_v37  ;;  %v3774_v38 = vsel %vm72_vm0, %v3770_v31, -inf }
0x168f   :  { %3775 = vmax.xlane.f32.xlu0 %v3774_v38  ;;  %v3773_v39 = vadd.f32 %v8037_v53, %v3769_v33 }
0x1690   :  { %6954 = vmatprep.subr.bf16.mxu1 %v6953_v14  ;;  %v8157_v40 = vpop.f32.mrb[64].mxu0  ;;  %v3772_v41 = vadd.f32 %v8043_v59, %v3768_v16 }
0x1691   :  { %6956 = vmatpush3.bf16.msra.mxu1 %v6953_v14  ;;  %v8160_v42 = vpop.f32.mrb[65].mxu0  ;;  %v3783_v45 = vsel %vm72_vm0, %v3773_v39, -inf }
0x1692   :  { %3784 = vmax.xlane.f32.xlu1 %v3783_v45  ;;  %v3780_v47 = vsel %vm72_vm0, %v3772_v41, -inf  ;;  %6958 = vmatprep.subr.bf16.mxu1 %v6957_v26 }
0x1693   :  { %3781 = vmax.xlane.f32.xlu0 %v3780_v47 }
0x1694   :  { %v8164_v49 = vpop.f32.mrb[66].mxu0 }
0x1695   :  { %v8166_v50 = vpop.f32.mrb[67].mxu0 }
0x1698   :  { %v6585_v5 = vpop.f32.mrb[68].mxu0 }
0x1699   :  { %v4180_v35 = vpop.f32.mrb[69].mxu0 }
0x169a   :  { %v6981_v55 = vpack.c.bf16 %v6585_v5, %v4180_v35 }
0x169c   :  { %v6588_v56 = vpop.f32.mrb[70].mxu0  ;;  %6982 = vmatprep.subr.bf16.mxu0 %v6981_v55 }
0x169d   :  { %v4190_v63 = vpop.f32.mrb[71].mxu0  ;;  %6984 = vmatpush3.bf16.msra.mxu0 %v6981_v55 }
0x169e   :  { %v6985_v51 = vpack.c.bf16 %v6588_v56, %v4190_v63 }
0x16a0   :  { %6986 = vmatprep.subr.bf16.mxu0 %v6985_v51 }
0x16a1   :  { %6988 = vmatpush3.bf16.msra.mxu0 %v6985_v51 }
0x171b   :  { %v3779_v54 = vpop.xlane.xlu1 %3778 }
0x171c   :  { %v3787_v1 = vsub.f32 %v3771_v32, %v3779_v54  ;;  %v3776_v4 = vpop.xlane.xlu0 %3775 }
0x171d   :  { %v3786_v52 = vsub.f32 %v3770_v31, %v3776_v4 }
0x171e   :  { %v3792_v6 = vmul.f32 1.442695, %v3787_v1 }
0x171f   :  { %v3790_v7 = vmul.f32 1.442695, %v3786_v52  ;;  %v3785_v57 = vpop.xlane.xlu1 %3784 }
0x1720   :  { %7192 = vpow2.f32 %v3792_v6  ;;  %v3789_v10 = vsub.f32 %v3773_v39, %v3785_v57  ;;  %v3782_v62 = vpop.xlane.xlu0 %3781 }
0x1721   :  { %7194 = vpow2.f32 %v3790_v7  ;;  %v3788_v11 = vsub.f32 %v3772_v41, %v3782_v62 }
0x1722   :  { %v3796_v58 = vmul.f32 1.442695, %v3789_v10 }
0x1723   :  { %v3794_v2 = vmul.f32 1.442695, %v3788_v11 }
0x1724   :  { %7196 = vpow2.f32 %v3796_v58 }
0x1725   :  { %7198 = vpow2.f32 %v3794_v2 }
0x172a   :  { %v7193_v12 = vpop.eup %7192 }
0x172b   :  { %v7195_v13 = vpop.eup %7194  ;;  %v3801_v18 = vsel %vm72_vm0, %v7193_v12, 0.0 }
0x172c   :  { %3802 = vadd.xlane.f32.xlu1 %v3801_v18  ;;  %v3798_v19 = vsel %vm72_vm0, %v7195_v13, 0.0 }
0x172d   :  { %3799 = vadd.xlane.f32.xlu0 %v3798_v19 }
0x172e   :  { %v7197_v20 = vpop.eup %7196 }
0x172f   :  { %v7199_v21 = vpop.eup %7198  ;;  %v3807_v22 = vsel %vm72_vm0, %v7197_v20, 0.0 }
0x1730   :  { %3808 = vadd.xlane.f32.xlu1 %v3807_v22  ;;  %v3804_v23 = vsel %vm72_vm0, %v7199_v21, 0.0 }
0x1731   :  { %3805 = vadd.xlane.f32.xlu0 %v3804_v23 }
0x17b9   :  { %v3803_v27 = vpop.xlane.xlu1 %3802 }
0x17ba   :  { %7200 = vrcp.f32 %v3803_v27  ;;  %v3800_v28 = vpop.xlane.xlu0 %3799 }
0x17bb   :  { %7202 = vrcp.f32 %v3800_v28  ;;  %v5705_v28 = vld [vmem:[%s8402_s5 + $0xe0] sm:$0xff] }
0x17bd   :  { %v3809_v32 = vpop.xlane.xlu1 %3808 }
0x17be   :  { %7204 = vrcp.f32 %v3809_v32  ;;  %v3806_v29 = vpop.xlane.xlu0 %3805  ;;  %v5706_v32 = vld [vmem:[%s8402_s5 + $0xe8] sm:$0xff] }
0x17bf   :  { %7206 = vrcp.f32 %v3806_v29  ;;  %v6993_v29 = vpack.c.bf16 %v5706_v32, %v5705_v28 }
0x17c1   :  { %6994 = vmatprep.subr.bf16.mxu0 %v6993_v29 }
0x17c4   :  { %v7201_v30 = vpop.eup %7200 }
0x17c5   :  { %v7203_v31 = vpop.eup %7202  ;;  %v3813_v34 = vmul.f32 %v7201_v30, %v7193_v12  ;;  %v5699_v30 = vld [vmem:[%s8405_s8 + $0x60] sm:$0xff] }
0x17c6   :  { %v3811_v33 = vmul.f32 %v7203_v31, %v7195_v13  ;;  %v5700_v31 = vld [vmem:[%s8405_s8 + $0x68] sm:$0xff] }
0x17c8   :  { %v7205_v36 = vpop.eup %7204  ;;  %6545 = vmatprep.mubr.msk.f32.mxu1 %vm72_vm0, %v3811_v33  ;;  %v6989_v33 = vpack.c.bf16 %v5700_v31, %v5699_v30 }
0x17c9   :  { %v7207_v37 = vpop.eup %7206  ;;  %6546 = vmatmul.mubr.msk.f32.vlgmr.msra.gmra.mrb[60].mxu1 %vm72_vm0, %v3813_v34  ;;  %v3817_v16 = vmul.f32 %v7205_v36, %v7197_v20 }
0x17ca   :  { %6960 = vmatpush3.bf16.msra.mxu1 %v6957_v26  ;;  %v3815_v14 = vmul.f32 %v7207_v37, %v7199_v21 }
0x17cb   :  { %6978 = vmatprep.subr.bf16.mxu1 %v8015_v15 }
0x17cc   :  { %6548 = vmatprep.mubr.msk.f32.mxu1 %vm72_vm0, %v3815_v14 }
0x17cd   :  { %6549 = vmatmul.mubr.msk.f32.gmra.mrb[62].mxu1 %vm72_vm0, %v3817_v16 }
0x189c   :  { %v6547_v38 = vpop.f32.mrb[60].mxu1 }
0x189d   :  { %v3896_v39 = vpop.f32.mrb[61].mxu1 }
0x189e   :  { %6555 = vmatprep.mubr.msk.f32.mxu1 %vm459_vm3, %v3896_v39  ;;  %v5708_v39 = vld [vmem:[%s8402_s5 + $0xf8] sm:$0xff] }
0x189f   :  { %6556 = vmatmul.mubr.msk.f32.vlgmr.msra.gmra.mrb[52].mxu1 %vm459_vm3, %v6547_v38  ;;  %v5707_v38 = vld [vmem:[%s8402_s5 + $0xf0] sm:$0xff] }
0x18a0   :  { %6980 = vmatpush3.bf16.msra.mxu1 %v8015_v15  ;;  %v6550_v41 = vpop.f32.mrb[62].mxu1 }
0x18a1   :  { %v3906_v45 = vpop.f32.mrb[63].mxu1  ;;  %6990 = vmatprep.subr.bf16.mxu1 %v6989_v33 }
0x18a2   :  { %6558 = vmatprep.mubr.msk.f32.mxu1 %vm459_vm3, %v3906_v45 }
0x18a3   :  { %6559 = vmatmul.mubr.msk.f32.gmra.mrb[54].mxu1 %vm459_vm3, %v6550_v41 }
0x18a4   :  { %6593 = vmatprep.mubr.msk.f32.mxu1 %vm459_vm3, %v8160_v42 }
0x18a7   :  { %6594 = vmatmul.mubr.msk.f32.vlgmr.msra.gmra.mrb[64].mxu1 %vm459_vm3, %v8157_v40 }
0x18a8   :  { %6596 = vmatprep.mubr.msk.f32.mxu1 %vm459_vm3, %v8166_v50  ;;  %6992 = vmatpush3.bf16.msra.mxu1 %v6989_v33 }
0x18ab   :  { %6597 = vmatmul.mubr.msk.f32.gmra.mrb[66].mxu1 %vm459_vm3, %v8164_v49 }
0x197a   :  { %v6595_v47 = vpop.f32.mrb[64].mxu1 }
0x197b   :  { %v4297_v15 = vmul.f32 0.25, %v6595_v47  ;;  %v4277_v5 = vpop.f32.mrb[65].mxu1 }
0x197c   :  { %v4296_v35 = vmul.f32 0.25, %v4277_v5 }
0x197d   :  { %v4301_v55 = vadd.f32 %v8023_v48, %v4297_v15  ;;  %v6997_v15 = vpack.c.bf16 %v5708_v39, %v5707_v38 }
0x197e   :  { %v6598_v56 = vpop.f32.mrb[66].mxu1  ;;  %v4300_v63 = vadd.f32 %v8029_v43, %v4296_v35 }
0x197f   :  { %v4299_v51 = vmul.f32 0.25, %v6598_v56  ;;  %v4287_v42 = vpop.f32.mrb[67].mxu1  ;;  %v4307_v54 = vsel %vm72_vm0, %v4301_v55, -inf }
0x1980   :  { %v4298_v40 = vmul.f32 0.25, %v4287_v42  ;;  %4308 = vmax.xlane.f32.xlu1 %v4307_v54  ;;  %v4304_v50 = vsel %vm72_vm0, %v4300_v63, -inf  ;;  %v5716_v54 = vld [vmem:[%s8404_s7 + $0xf8] sm:$0xff] }
0x1981   :  { %4305 = vmax.xlane.f32.xlu0 %v4304_v50  ;;  %v4303_v49 = vadd.f32 %v8037_v53, %v4299_v51  ;;  %v5714_v51 = vld [vmem:[%s8404_s7 + $0xe8] sm:$0xff] }
0x1982   :  { %v4302_v1 = vadd.f32 %v8043_v59, %v4298_v40 }
0x1983   :  { %v4313_v4 = vsel %vm72_vm0, %v4303_v49, -inf }
0x1984   :  { %4314 = vmax.xlane.f32.xlu1 %v4313_v4  ;;  %v4310_v52 = vsel %vm72_vm0, %v4302_v1, -inf }
0x1985   :  { %4311 = vmax.xlane.f32.xlu0 %v4310_v52 }
0x1a0d   :  { %v4309_v6 = vpop.xlane.xlu1 %4308 }
0x1a0e   :  { %v4317_v7 = vsub.f32 %v4301_v55, %v4309_v6  ;;  %v4306_v57 = vpop.xlane.xlu0 %4305 }
0x1a0f   :  { %v4316_v10 = vsub.f32 %v4300_v63, %v4306_v57  ;;  %v5713_v63 = vld [vmem:[%s8404_s7 + $0xe0] sm:$0xff] }
0x1a10   :  { %v4322_v62 = vmul.f32 1.442695, %v4317_v7  ;;  %v7001_v42 = vpack.c.bf16 %v5714_v51, %v5713_v63 }
0x1a11   :  { %v4320_v11 = vmul.f32 1.442695, %v4316_v10  ;;  %v4315_v58 = vpop.xlane.xlu1 %4314 }
0x1a12   :  { %7208 = vpow2.f32 %v4322_v62  ;;  %v4319_v2 = vsub.f32 %v4303_v49, %v4315_v58  ;;  %v4312_v12 = vpop.xlane.xlu0 %4311  ;;  %7002 = vmatprep.subr.bf16.mxu1 %v7001_v42 }
0x1a13   :  { %7210 = vpow2.f32 %v4320_v11  ;;  %v4318_v13 = vsub.f32 %v4302_v1, %v4312_v12 }
0x1a14   :  { %v4326_v18 = vmul.f32 1.442695, %v4319_v2 }
0x1a15   :  { %v4324_v19 = vmul.f32 1.442695, %v4318_v13 }
0x1a16   :  { %7212 = vpow2.f32 %v4326_v18 }
0x1a17   :  { %7214 = vpow2.f32 %v4324_v19 }
0x1a1c   :  { %v7209_v20 = vpop.eup %7208 }
0x1a1d   :  { %v7211_v21 = vpop.eup %7210  ;;  %v4331_v22 = vsel %vm72_vm0, %v7209_v20, 0.0 }
0x1a1e   :  { %4332 = vadd.xlane.f32.xlu1 %v4331_v22  ;;  %v4328_v23 = vsel %vm72_vm0, %v7211_v21, 0.0 }
0x1a1f   :  { %4329 = vadd.xlane.f32.xlu0 %v4328_v23 }
0x1a20   :  { %v7213_v24 = vpop.eup %7212 }
0x1a21   :  { %v7215_v25 = vpop.eup %7214  ;;  %v4337_v26 = vsel %vm72_vm0, %v7213_v24, 0.0 }
0x1a22   :  { %4338 = vadd.xlane.f32.xlu1 %v4337_v26  ;;  %v4334_v27 = vsel %vm72_vm0, %v7215_v25, 0.0 }
0x1a23   :  { %4335 = vadd.xlane.f32.xlu0 %v4334_v27 }
0x1aab   :  { %v4333_v34 = vpop.xlane.xlu1 %4332 }
0x1aac   :  { %7216 = vrcp.f32 %v4333_v34  ;;  %v4330_v36 = vpop.xlane.xlu0 %4329 }
0x1aad   :  { %7218 = vrcp.f32 %v4330_v36 }
0x1aaf   :  { %v4339_v37 = vpop.xlane.xlu1 %4338 }
0x1ab0   :  { %7220 = vrcp.f32 %v4339_v37  ;;  %v4336_v14 = vpop.xlane.xlu0 %4335 }
0x1ab1   :  { %7222 = vrcp.f32 %v4336_v14 }
0x1ab6   :  { %v7217_v16 = vpop.eup %7216 }
0x1ab7   :  { %v7219_v41 = vpop.eup %7218  ;;  %v4343_v47 = vmul.f32 %v7217_v16, %v7209_v20 }
0x1ab8   :  { %v4341_v45 = vmul.f32 %v7219_v41, %v7211_v21 }
0x1aba   :  { %v7221_v5 = vpop.eup %7220  ;;  %6607 = vmatprep.mubr.msk.f32.mxu0 %vm72_vm0, %v4341_v45 }
0x1abb   :  { %v7223_v35 = vpop.eup %7222  ;;  %6608 = vmatmul.mubr.msk.f32.vlgmr.msra.gmra.mrb[72].mxu0 %vm72_vm0, %v4343_v47  ;;  %v4347_v56 = vmul.f32 %v7221_v5, %v7213_v24  ;;  %v5729_v5 = vld [vmem:[%s8405_s8 + $0x70] sm:$0xff] }
0x1abc   :  { %6996 = vmatpush3.bf16.msra.mxu0 %v6993_v29  ;;  %v4345_v55 = vmul.f32 %v7223_v35, %v7215_v25  ;;  %v5730_v35 = vld [vmem:[%s8405_s8 + $0x78] sm:$0xff] }
0x1abd   :  { %6998 = vmatprep.subr.bf16.mxu0 %v6997_v15 }
0x1abe   :  { %6610 = vmatprep.mubr.msk.f32.mxu0 %vm72_vm0, %v4345_v55  ;;  %v7021_v55 = vpack.c.bf16 %v5730_v35, %v5729_v5 }
0x1abf   :  { %6611 = vmatmul.mubr.msk.f32.gmra.mrb[74].mxu0 %vm72_vm0, %v4347_v56 }
0x1ac0   :  { %7000 = vmatpush3.bf16.msra.mxu0 %v6997_v15  ;;  %6631 = vmatprep.mubr.msk.f32.mxu0 %vm72_vm0, %v7948_v44 }
0x1ac1   :  { %7010 = vmatprep.subr.bf16.mxu0 %v8018_v17 }
0x1ac3   :  { %6632 = vmatmul.mubr.msk.f32.vlgmr.msra.gmra.mrb[76].mxu0 %vm72_vm0, %v7946_v0 }
0x1ac4   :  { %7012 = vmatpush3.bf16.msra.mxu0 %v8018_v17  ;;  %6634 = vmatprep.mubr.msk.f32.mxu0 %vm72_vm0, %v7958_v9  ;;  %v5715_v17 = vld [vmem:[%s8404_s7 + $0xf0] sm:$0xff] }
0x1ac5   :  { %v7005_v49 = vpack.c.bf16 %v5716_v54, %v5715_v17 }
0x1ac7   :  { %6635 = vmatmul.mubr.msk.f32.gmra.mrb[78].mxu0 %vm72_vm0, %v7954_v8 }
0x1b8e   :  { %v6609_v40 = vpop.f32.mrb[72].mxu0 }
0x1b8f   :  { %v4426_v50 = vpop.f32.mrb[73].mxu0 }
0x1b90   :  { %6617 = vmatprep.mubr.msk.f32.mxu1 %vm459_vm3, %v4426_v50 }
0x1b91   :  { %6618 = vmatmul.mubr.msk.f32.vlgmr.msra.gmra.mrb[52].mxu1 %vm459_vm3, %v6609_v40 }
0x1b92   :  { %v6612_v1 = vpop.f32.mrb[74].mxu0  ;;  %7004 = vmatpush3.bf16.msra.mxu1 %v7001_v42 }
0x1b93   :  { %v4436_v4 = vpop.f32.mrb[75].mxu0  ;;  %7006 = vmatprep.subr.bf16.mxu1 %v7005_v49 }
0x1b94   :  { %6620 = vmatprep.mubr.msk.f32.mxu1 %vm459_vm3, %v4436_v4 }
0x1b95   :  { %6621 = vmatmul.mubr.msk.f32.gmra.mrb[54].mxu1 %vm459_vm3, %v6612_v1 }
0x1b96   :  { %v6633_v52 = vpop.f32.mrb[76].mxu0  ;;  %7008 = vmatpush3.bf16.msra.mxu1 %v7005_v49  ;;  %6645 = vmatprep.mubr.msk.f32.mxu1 %vm72_vm0, %v7948_v44 }
0x1b97   :  { %v4620_v6 = vpop.f32.mrb[77].mxu0 }
0x1b98   :  { %6655 = vmatprep.mubr.msk.f32.mxu0 %vm459_vm3, %v4620_v6 }
0x1b99   :  { %6646 = vmatmul.mubr.msk.f32.vlgmr.msra.gmra.mrb[68].mxu1 %vm72_vm0, %v7946_v0  ;;  %6656 = vmatmul.mubr.msk.f32.vlgmr.msra.gmra.mrb[80].mxu0 %vm459_vm3, %v6633_v52 }
0x1b9a   :  { %v6636_v7 = vpop.f32.mrb[78].mxu0  ;;  %6648 = vmatprep.mubr.msk.f32.mxu1 %vm72_vm0, %v7958_v9 }
0x1b9b   :  { %v4630_v57 = vpop.f32.mrb[79].mxu0 }
0x1b9c   :  { %6658 = vmatprep.mubr.msk.f32.mxu0 %vm459_vm3, %v4630_v57 }
0x1b9d   :  { %6649 = vmatmul.mubr.msk.f32.gmra.mrb[70].mxu1 %vm72_vm0, %v7954_v8  ;;  %6659 = vmatmul.mubr.msk.f32.gmra.mrb[82].mxu0 %vm459_vm3, %v6636_v7 }
0x1c6c   :  { %v6647_v44 = vpop.f32.mrb[68].mxu1  ;;  %v6657_v10 = vpop.f32.mrb[80].mxu0 }
0x1c6d   :  { %v4827_v62 = vmul.f32 0.25, %v6657_v10  ;;  %v4710_v11 = vpop.f32.mrb[69].mxu1  ;;  %v4807_v58 = vpop.f32.mrb[81].mxu0  ;;  %v5614_v10 = vld [vmem:[%s8406_s9 + $0x1] ss:$0 sm:$0xff] }
0x1c6e   :  { %v7013_v0 = vpack.c.bf16 %v6647_v44, %v4710_v11  ;;  %v4826_v2 = vmul.f32 0.25, %v4807_v58  ;;  %v2955_v58 = vadd.f32 %v5614_v10, %v7888_v61 }
0x1c6f   :  { %v4831_v12 = vadd.f32 %v8023_v48, %v4827_v62  ;;  %v2956_v62 = vadd.f32 %v5614_v10, %v7886_v60 }
0x1c70   :  { %v6650_v13 = vpop.f32.mrb[70].mxu1  ;;  %v6660_v18 = vpop.f32.mrb[82].mxu0  ;;  %7014 = vmatprep.subr.bf16.mxu1 %v7013_v0  ;;  %v4830_v9 = vadd.f32 %v8029_v43, %v4826_v2 }
0x1c71   :  { %v4829_v19 = vmul.f32 0.25, %v6660_v18  ;;  %v4720_v20 = vpop.f32.mrb[71].mxu1  ;;  %v4817_v21 = vpop.f32.mrb[83].mxu0  ;;  %7016 = vmatpush3.bf16.msra.mxu1 %v7013_v0  ;;  %v4837_v8 = vsel %vm72_vm0, %v4831_v12, -inf  ;;  %v2958_v18 = vadd.f32 %v5614_v10, %v7896_v3 }
0x1c72   :  { %v7017_v22 = vpack.c.bf16 %v6650_v13, %v4720_v20  ;;  %v4828_v23 = vmul.f32 0.25, %v4817_v21  ;;  %4838 = vmax.xlane.f32.xlu1 %v4837_v8  ;;  %v4834_v24 = vsel %vm72_vm0, %v4830_v9, -inf  ;;  %v2957_v20 = vadd.f32 %v5614_v10, %v7898_v46 }
0x1c73   :  { %4835 = vmax.xlane.f32.xlu0 %v4834_v24  ;;  %v4833_v25 = vadd.f32 %v8037_v53, %v4829_v19 }
0x1c74   :  { %7018 = vmatprep.subr.bf16.mxu1 %v7017_v22  ;;  %v4832_v48 = vadd.f32 %v8043_v59, %v4828_v23 }
0x1c75   :  { %7020 = vmatpush3.bf16.msra.mxu1 %v7017_v22  ;;  %v4843_v43 = vsel %vm72_vm0, %v4833_v25, -inf }
0x1c76   :  { %4844 = vmax.xlane.f32.xlu1 %v4843_v43  ;;  %v4840_v26 = vsel %vm72_vm0, %v4832_v48, -inf  ;;  %7022 = vmatprep.subr.bf16.mxu1 %v7021_v55 }
0x1c77   :  { %4841 = vmax.xlane.f32.xlu0 %v4840_v26 }
0x1cff   :  { %v4839_v27 = vpop.xlane.xlu1 %4838 }
0x1d00   :  { %v4847_v28 = vsub.f32 %v4831_v12, %v4839_v27  ;;  %v4836_v32 = vpop.xlane.xlu0 %4835 }
0x1d01   :  { %v4846_v29 = vsub.f32 %v4830_v9, %v4836_v32 }
0x1d02   :  { %v4852_v30 = vmul.f32 1.442695, %v4847_v28 }
0x1d03   :  { %v4850_v31 = vmul.f32 1.442695, %v4846_v29  ;;  %v4845_v33 = vpop.xlane.xlu1 %4844 }
0x1d04   :  { %7224 = vpow2.f32 %v4852_v30  ;;  %v4849_v34 = vsub.f32 %v4833_v25, %v4845_v33  ;;  %v4842_v53 = vpop.xlane.xlu0 %4841 }
0x1d05   :  { %7226 = vpow2.f32 %v4850_v31  ;;  %v4848_v36 = vsub.f32 %v4832_v48, %v4842_v53 }
0x1d06   :  { %v4856_v59 = vmul.f32 1.442695, %v4849_v34 }
0x1d07   :  { %v4854_v37 = vmul.f32 1.442695, %v4848_v36 }
0x1d08   :  { %7228 = vpow2.f32 %v4856_v59 }
0x1d09   :  { %7230 = vpow2.f32 %v4854_v37 }
0x1d0e   :  { %v7225_v14 = vpop.eup %7224 }
0x1d0f   :  { %v7227_v16 = vpop.eup %7226  ;;  %v4861_v38 = vsel %vm72_vm0, %v7225_v14, 0.0 }
0x1d10   :  { %4862 = vadd.xlane.f32.xlu1 %v4861_v38  ;;  %v4858_v39 = vsel %vm72_vm0, %v7227_v16, 0.0 }
0x1d11   :  { %4859 = vadd.xlane.f32.xlu0 %v4858_v39  ;;  %v5739_v39 = vld [vmem:[%s8409_s12 + $0x30] sm:$0xff] }
0x1d12   :  { %v7229_v41 = vpop.eup %7228 }
0x1d13   :  { %v7231_v45 = vpop.eup %7230  ;;  %v4867_v47 = vsel %vm72_vm0, %v7229_v41, 0.0 }
0x1d14   :  { %4868 = vadd.xlane.f32.xlu1 %v4867_v47  ;;  %v4864_v15 = vsel %vm72_vm0, %v7231_v45, 0.0 }
0x1d15   :  { %4865 = vadd.xlane.f32.xlu0 %v4864_v15 }
0x1d9d   :  { %v4863_v56 = vpop.xlane.xlu1 %4862 }
0x1d9e   :  { %7232 = vrcp.f32 %v4863_v56  ;;  %v4860_v63 = vpop.xlane.xlu0 %4859 }
0x1d9f   :  { %7234 = vrcp.f32 %v4860_v63 }
0x1da1   :  { %v4869_v51 = vpop.xlane.xlu1 %4868 }
0x1da2   :  { %7236 = vrcp.f32 %v4869_v51  ;;  %v4866_v42 = vpop.xlane.xlu0 %4865 }
0x1da3   :  { %7238 = vrcp.f32 %v4866_v42 }
0x1da8   :  { %v7233_v17 = vpop.eup %7232 }
0x1da9   :  { %v7235_v54 = vpop.eup %7234  ;;  %v4873_v50 = vmul.f32 %v7233_v17, %v7225_v14  ;;  %v5737_v14 = vld [vmem:[%s8409_s12 + $0x20] sm:$0xff] }
0x1daa   :  { %v4871_v40 = vmul.f32 %v7235_v54, %v7227_v16  ;;  %v5738_v16 = vld [vmem:[%s8409_s12 + $0x28] sm:$0xff] }
0x1dab   :  { %v7025_v38 = vpack.c.bf16 %v5738_v16, %v5737_v14 }
0x1dac   :  { %v7237_v49 = vpop.eup %7236  ;;  %6669 = vmatprep.mubr.msk.f32.mxu1 %vm72_vm0, %v4871_v40 }
0x1dad   :  { %v7239_v1 = vpop.eup %7238  ;;  %6670 = vmatmul.mubr.msk.f32.vlgmr.msra.gmra.mrb[72].mxu1 %vm72_vm0, %v4873_v50  ;;  %v4877_v52 = vmul.f32 %v7237_v49, %v7229_v41  ;;  %v5740_v41 = vld [vmem:[%s8409_s12 + $0x38] sm:$0xff]  ;;  %7026 = vmatprep.subr.bf16.mxu0 %v7025_v38  ;;  %v5735_v49 = vld [vmem:[%s8407_s10 + $0x1] ss:$0 sm:$0xff]  ;;  %s7288_s12 = smov [#allocation2]  }
0x1dae   :  { %v4875_v4 = vmul.f32 %v7239_v1, %v7231_v45  ;;  %7024 = vmatpush3.bf16.msra.mxu1 %v7021_v55  ;;  %v7029_v45 = vpack.c.bf16 %v5740_v41, %v5739_v39  ;;  %7028 = vmatpush3.bf16.msra.mxu0 %v7025_v38  ;;  %s5446_s5 = sshll.u32 %s7288_s12, 4  ;;  %s5447_s5 = int_to_ptr.vmem [resolvable:$true] %s5446_s5 }
0x1daf   :  { %s7264_s25 = scalar_lea.vmem %s5447_s5, 32  ;;  %p7269_p1 = scmp.lt.s32.totalorder %s5447_s5, %s5447_s5 }
0x1db0   :  { %6672 = vmatprep.mubr.msk.f32.mxu1 %vm72_vm0, %v4875_v4  ;;  %7030 = vmatprep.subr.bf16.mxu0 %v7029_v45  ;;  %p7265_p0 = scmp.ne.s32.totalorder %s5447_s5, %s7264_s25  ;;  %p7270_p2 = scmp.lt.s32.totalorder %s7264_s25, %s7264_s25 }
0x1db1   :  { %6673 = vmatmul.mubr.msk.f32.gmra.mrb[74].mxu1 %vm72_vm0, %v4877_v52 }
0x1db2   :  { %7032 = vmatpush3.bf16.msra.mxu0 %v7029_v45  ;;  %p7271_p3 = por %p7270_p2, %p7269_p1 }
0x1db4   :  { %p7272_p4 = pnand %p7271_p3, %p7265_p0 }
0x1e80   :  { %v6671_v6 = vpop.f32.mrb[72].mxu1 }
0x1e81   :  { %v4956_v7 = vpop.f32.mrb[73].mxu1 }
0x1e82   :  { %6679 = vmatprep.mubr.msk.f32.mxu1 %vm459_vm3, %v4956_v7 }
0x1e83   :  { %6680 = vmatmul.mubr.msk.f32.vlgmr.msra.gmra.mrb[52].mxu1 %vm459_vm3, %v6671_v6  ;;  %v5736_v6 = vld [vmem:[%s8408_s11 + $0x1] ss:$0 sm:$0xff] }
0x1e84   :  { %v6674_v57 = vpop.f32.mrb[74].mxu1 }
0x1e85   :  { %v4966_v44 = vpop.f32.mrb[75].mxu1 }
0x1e86   :  { %6682 = vmatprep.mubr.msk.f32.mxu1 %vm459_vm3, %v4966_v44 }
0x1e87   :  { %6683 = vmatmul.mubr.msk.f32.gmra.mrb[54].mxu1 %vm459_vm3, %v6674_v57 }
0x1f56   :  { %v6681_v11 = vpop.f32.mrb[52].mxu1 }
0x1f57   :  { %v8299_v0 = vadd.f32 %v6681_v11, %v2956_v62  ;;  %v5056_v2 = vpop.f32.mrb[53].mxu1 }
0x1f58   :  { %v7054_v12 = vadd.f32 %v5056_v2, %v2955_v58 }
0x1f59   :  { %v5084_v13 = vsel %vm72_vm0, %v8299_v0, 0.0 }
0x1f5a   :  { %5085 = vadd.xlane.f32.xlu1 %v5084_v13  ;;  %v6684_v9 = vpop.f32.mrb[54].mxu1  ;;  %v5081_v19 = vsel %vm72_vm0, %v7054_v12, 0.0 }
0x1f5b   :  { %v8306_v21 = vadd.f32 %v6684_v9, %v2958_v18  ;;  %5082 = vadd.xlane.f32.xlu0 %v5081_v19  ;;  %v5066_v60 = vpop.f32.mrb[55].mxu1  ;;  %v5746_v19 = vld [vmem:[%s8411_s14 + $0x40] sm:$0xff] }
0x1f5c   :  { %v7056_v61 = vadd.f32 %v5066_v60, %v2957_v20  ;;  %v5747_v20 = vld [vmem:[%s8411_s14 + $0x48] sm:$0xff] }
0x1f5d   :  { %v5090_v8 = vsel %vm72_vm0, %v8306_v21, 0.0  ;;  %v7033_v60 = vpack.c.bf16 %v5747_v20, %v5746_v19  ;;  %v5758_v20 = vld [vmem:[%s8412_s15 + $0x1] ss:$0 sm:$0xff] }
0x1f5e   :  { %5091 = vadd.xlane.f32.xlu1 %v5090_v8  ;;  %v5087_v22 = vsel %vm72_vm0, %v7056_v61, 0.0  ;;  %v5749_v8 = vld [vmem:[%s8411_s14 + $0x58] sm:$0xff] }
0x1f5f   :  { %5088 = vadd.xlane.f32.xlu0 %v5087_v22  ;;  %7034 = vmatprep.subr.bf16.mxu0 %v7033_v60 }
0x1fe7   :  { %v5086_v23 = vpop.xlane.xlu1 %5085 }
0x1fe8   :  { %v5094_v3 = vmul.f32 0.03125, %v5086_v23  ;;  %v5083_v24 = vpop.xlane.xlu0 %5082  ;;  %v5750_v23 = vld [vmem:[%s8411_s14 + $0x60] sm:$0xff] }
0x1fe9   :  { %v5093_v25 = vmul.f32 0.03125, %v5083_v24 }
0x1fea   :  { %v5098_v48 = vsub.f32 %v8299_v0, %v5094_v3  ;;  %v5751_v3 = vld [vmem:[%s8411_s14 + $0x68] sm:$0xff] }
0x1feb   :  { %v5097_v43 = vsub.f32 %v7054_v12, %v5093_v25  ;;  %v5092_v46 = vpop.xlane.xlu1 %5091  ;;  %v7041_v24 = vpack.c.bf16 %v5751_v3, %v5750_v23  ;;  %v5752_v25 = vld [vmem:[%s8411_s14 + $0x70] sm:$0xff] }
0x1fec   :  { %v5096_v26 = vmul.f32 0.03125, %v5092_v46  ;;  %v5089_v27 = vpop.xlane.xlu0 %5088  ;;  %v5102_v28 = vmul.f32 %v5098_v48, %v5098_v48  ;;  %v5741_v46 = vld [vmem:[%s8410_s13 + $0x1] ss:$0 sm:$0xff] }
0x1fed   :  { %v5095_v32 = vmul.f32 0.03125, %v5089_v27  ;;  %v5101_v29 = vmul.f32 %v5097_v43, %v5097_v43 }
0x1fee   :  { %v5100_v30 = vsub.f32 %v8306_v21, %v5096_v26  ;;  %v5108_v31 = vsel %vm72_vm0, %v5102_v28, 0.0 }
0x1fef   :  { %v5099_v33 = vsub.f32 %v7056_v61, %v5095_v32  ;;  %5109 = vadd.xlane.f32.xlu1 %v5108_v31  ;;  %v5105_v34 = vsel %vm72_vm0, %v5101_v29, 0.0  ;;  %v5748_v61 = vld [vmem:[%s8411_s14 + $0x50] sm:$0xff] }
0x1ff0   :  { %5106 = vadd.xlane.f32.xlu0 %v5105_v34  ;;  %v5104_v53 = vmul.f32 %v5100_v30, %v5100_v30  ;;  %v7037_v22 = vpack.c.bf16 %v5749_v8, %v5748_v61 }
0x1ff1   :  { %v5103_v36 = vmul.f32 %v5099_v33, %v5099_v33 }
0x1ff2   :  { %v5114_v59 = vsel %vm72_vm0, %v5104_v53, 0.0 }
0x1ff3   :  { %5115 = vadd.xlane.f32.xlu1 %v5114_v59  ;;  %v5111_v37 = vsel %vm72_vm0, %v5103_v36, 0.0 }
0x1ff4   :  { %5112 = vadd.xlane.f32.xlu0 %v5111_v37 }
0x207c   :  { %v5110_v47 = vpop.xlane.xlu1 %5109 }
0x207d   :  { %v5118_v15 = vmul.f32 0.03125, %v5110_v47  ;;  %v5107_v5 = vpop.xlane.xlu0 %5106 }
0x207e   :  { %v5117_v35 = vmul.f32 0.03125, %v5107_v5 }
0x207f   :  { %v5122_v55 = vadd.f32 1e-05, %v5118_v15 }
0x2080   :  { %v5121_v56 = vadd.f32 1e-05, %v5117_v35  ;;  %v5116_v63 = vpop.xlane.xlu1 %5115 }
0x2081   :  { %7240 = vrsqrt.f32 %v5122_v55  ;;  %v5120_v51 = vmul.f32 0.03125, %v5116_v63  ;;  %v5113_v42 = vpop.xlane.xlu0 %5112 }
0x2082   :  { %7242 = vrsqrt.f32 %v5121_v56  ;;  %v5119_v17 = vmul.f32 0.03125, %v5113_v42 }
0x2083   :  { %v5124_v54 = vadd.f32 1e-05, %v5120_v51 }
0x2084   :  { %v5123_v40 = vadd.f32 1e-05, %v5119_v17 }
0x2085   :  { %7244 = vrsqrt.f32 %v5124_v54 }
0x2086   :  { %7246 = vrsqrt.f32 %v5123_v40 }
0x208b   :  { %v7241_v50 = vpop.eup %7240 }
0x208c   :  { %v7243_v1 = vpop.eup %7242  ;;  %v5130_v4 = vmul.f32 %v7241_v50, %v5098_v48  ;;  %v5753_v48 = vld [vmem:[%s8411_s14 + $0x78] sm:$0xff] }
0x208d   :  { %v5129_v52 = vmul.f32 %v7243_v1, %v5097_v43  ;;  %v7045_v43 = vpack.c.bf16 %v5753_v48, %v5752_v25 }
0x208e   :  { %v5138_v7 = vmul.f32 %v5735_v49, %v5130_v4 }
0x208f   :  { %v7245_v57 = vpop.eup %7244  ;;  %v5137_v44 = vmul.f32 %v5735_v49, %v5129_v52 }
0x2090   :  { %v7247_v10 = vpop.eup %7246  ;;  %v5132_v62 = vmul.f32 %v7245_v57, %v5100_v30  ;;  %v5146_v2 = vadd.f32 %v5736_v6, %v5138_v7 }
0x2091   :  { %v5145_v11 = vadd.f32 %v5736_v6, %v5137_v44  ;;  %v5131_v58 = vmul.f32 %v7247_v10, %v5099_v33 }
0x2092   :  { %v5140_v12 = vmul.f32 %v5735_v49, %v5132_v62 }
0x2093   :  { %6693 = vmatprep.mubr.msk.f32.mxu0 %vm72_vm0, %v5145_v11  ;;  %v5139_v13 = vmul.f32 %v5735_v49, %v5131_v58 }
0x2094   :  { %6694 = vmatmul.mubr.msk.f32.vlgmr.msra.gmra.mrb[84].mxu0 %vm72_vm0, %v5146_v2  ;;  %v5148_v9 = vadd.f32 %v5736_v6, %v5140_v12 }
0x2095   :  { %v5147_v18 = vadd.f32 %v5736_v6, %v5139_v13  ;;  %7036 = vmatpush3.bf16.msra.mxu0 %v7033_v60 }
0x2096   :  { %7038 = vmatprep.subr.bf16.mxu0 %v7037_v22 }
0x2097   :  { %6696 = vmatprep.mubr.msk.f32.mxu0 %vm72_vm0, %v5147_v18 }
0x2098   :  { %6697 = vmatmul.mubr.msk.f32.gmra.mrb[86].mxu0 %vm72_vm0, %v5148_v9 }
0x2099   :  { %7040 = vmatpush3.bf16.msra.mxu0 %v7037_v22 }
0x209a   :  { %7042 = vmatprep.subr.bf16.mxu0 %v7041_v24 }
0x209d   :  { %7044 = vmatpush3.bf16.msra.mxu0 %v7041_v24 }
0x209e   :  { %7046 = vmatprep.subr.bf16.mxu0 %v7045_v43 }
0x20a1   :  { %7048 = vmatpush3.bf16.msra.mxu0 %v7045_v43 }
0x2167   :  { %v6695_v26 = vpop.f32.mrb[84].mxu0 }
0x2168   :  { %v5243_v27 = vadd.f32 %v6695_v26, %v5741_v46  ;;  %v5237_v28 = vpop.f32.mrb[85].mxu0 }
0x2169   :  { %v5238_v32 = vadd.f32 %v5741_v46, %v5237_v28 }
0x216a   :  { %v5261_v29 = vmul.f32 %v5243_v27, %v5243_v27  ;;  %v5257_v1 = vmul.f32 0.5, %v5243_v27 }
0x216b   :  { %v5260_v30 = vmul.f32 %v5238_v32, %v5238_v32  ;;  %v6698_v31 = vpop.f32.mrb[86].mxu0  ;;  %v5256_v50 = vmul.f32 0.5, %v5238_v32 }
0x216c   :  { %v5265_v33 = vmul.f32 %v5261_v29, %v5243_v27  ;;  %v5253_v34 = vadd.f32 %v6698_v31, %v5741_v46  ;;  %v5247_v53 = vpop.f32.mrb[87].mxu0 }
0x216d   :  { %v5264_v36 = vmul.f32 %v5260_v30, %v5238_v32  ;;  %v5248_v59 = vadd.f32 %v5741_v46, %v5247_v53 }
0x216e   :  { %v5269_v37 = vmul.f32 0.044715, %v5265_v33  ;;  %v5263_v14 = vmul.f32 %v5253_v34, %v5253_v34  ;;  %v5259_v62 = vmul.f32 0.5, %v5253_v34 }
0x216f   :  { %v5268_v16 = vmul.f32 0.044715, %v5264_v36  ;;  %v5262_v38 = vmul.f32 %v5248_v59, %v5248_v59  ;;  %v5258_v44 = vmul.f32 0.5, %v5248_v59 }
0x2170   :  { %v5273_v39 = vadd.f32 %v5269_v37, %v5243_v27  ;;  %v5267_v41 = vmul.f32 %v5263_v14, %v5253_v34  ;;  %v5759_v27 = vld [vmem:[%s8413_s16] ss:$0 sm:$0xff] }
0x2171   :  { %v5272_v45 = vadd.f32 %v5268_v16, %v5238_v32  ;;  %v5266_v47 = vmul.f32 %v5262_v38, %v5248_v59  ;;  %v5760_v32 = vld [vmem:[%s8414_s17] ss:$0 sm:$0xff] }
0x2172   :  { %v5277_v15 = vmul.f32 0.7978846, %v5273_v39  ;;  %v5271_v5 = vmul.f32 0.044715, %v5267_v41 }
0x2173   :  { %v5276_v35 = vmul.f32 0.7978846, %v5272_v45  ;;  %v5270_v55 = vmul.f32 0.044715, %v5266_v47 }
0x2174   :  { %7248 = vtanh.f32 %v5277_v15  ;;  %v5275_v56 = vadd.f32 %v5271_v5, %v5253_v34 }
0x2175   :  { %7250 = vtanh.f32 %v5276_v35  ;;  %v5274_v63 = vadd.f32 %v5270_v55, %v5248_v59 }
0x2176   :  { %v5279_v51 = vmul.f32 0.7978846, %v5275_v56 }
0x2177   :  { %v5278_v42 = vmul.f32 0.7978846, %v5274_v63 }
0x2178   :  { %7252 = vtanh.f32 %v5279_v51 }
0x2179   :  { %7254 = vtanh.f32 %v5278_v42 }
0x217e   :  { %v7249_v17 = vpop.eup %7248 }
0x217f   :  { %v7251_v54 = vpop.eup %7250  ;;  %v5285_v40 = vadd.f32 1.0, %v7249_v17 }
0x2180   :  { %v5284_v49 = vadd.f32 1.0, %v7251_v54 }
0x2181   :  { %v5289_v7 = vmul.f32 %v5285_v40, %v5257_v1 }
0x2182   :  { %v7253_v4 = vpop.eup %7252  ;;  %v5288_v52 = vmul.f32 %v5284_v49, %v5256_v50 }
0x2183   :  { %v7255_v6 = vpop.eup %7254  ;;  %v5287_v57 = vadd.f32 1.0, %v7253_v4 }
0x2184   :  { %6715 = vmatprep.mubr.msk.f32.mxu0 %vm2619_vm4, %v5288_v52  ;;  %v5286_v10 = vadd.f32 1.0, %v7255_v6 }
0x2185   :  { %6716 = vmatmul.mubr.msk.f32.vlgmr.msra.gmra.mrb[88].mxu0 %vm2619_vm4, %v5289_v7  ;;  %v5291_v58 = vmul.f32 %v5287_v57, %v5259_v62 }
0x2186   :  { %v5290_v11 = vmul.f32 %v5286_v10, %v5258_v44 }
0x2188   :  { %6718 = vmatprep.mubr.msk.f32.mxu0 %vm2619_vm4, %v5290_v11 }
0x2189   :  { %6719 = vmatmul.mubr.msk.f32.gmra.mrb[90].mxu0 %vm2619_vm4, %v5291_v58 }
0x2258   :  { %v6717_v2 = vpop.f32.mrb[88].mxu0 }
0x2259   :  { %v5379_v12 = vpop.f32.mrb[89].mxu0  ;;  %v5396_v18 = vadd.f32 %v8299_v0, %v6717_v2 }
0x225b   :  { %v5403_v61 = vadd.f32 %v5758_v20, %v5396_v18 }
0x225c   :  { %v6720_v13 = vpop.f32.mrb[90].mxu0 }
0x225d   :  { %v5397_v9 = vadd.f32 %v8306_v21, %v6720_v13  ;;  %v5388_v19 = vpop.f32.mrb[91].mxu0 }
0x225f   :  { %v5404_v60 = vadd.f32 %v5758_v20, %v5397_v9 }
0x2261   :  { %v5406_v8 = vrot.slane %v5404_v60, 7 }
0x2263   :  { %v5408_v22 = vsel %vm64_vm1, %v5403_v61, %v5406_v8 }
0x2264   :  { %v5412_v23 = vsel %vm5411_vm5, %v5408_v22, 0.0 }
0x2265   :  { %5413 = vadd.xlane.f32.xlu0 %v5412_v23 }
0x22f2   :  { %v5414_v3 = vpop.xlane.xlu0 %5413 }
0x22f3   :  { %v5415_v24 = vmul.f32 0.03125, %v5414_v3 }
0x22f5   :  { %v5416_v25 = vsub.f32 %v5408_v22, %v5415_v24 }
0x22f7   :  { %v5417_v0 = vmul.f32 %v5416_v25, %v5416_v25 }
0x22f9   :  { %v5418_v21 = vsel %vm5411_vm5, %v5417_v0, 0.0 }
0x22fa   :  { %5419 = vadd.xlane.f32.xlu1 %v5418_v21 }
0x2387   :  { %v5420_v48 = vpop.xlane.xlu1 %5419 }
0x2388   :  { %v5421_v43 = vmul.f32 0.03125, %v5420_v48 }
0x238a   :  { %v5422_v46 = vadd.f32 1e-05, %v5421_v43 }
0x238c   :  { %7256 = vrsqrt.f32 %v5422_v46 }
0x2396   :  { %v7257_v26 = vpop.eup %7256 }
0x2397   :  { %v5424_v28 = vmul.f32 %v7257_v26, %v5416_v25 }
0x2399   :  { %v5431_v29 = vmul.f32 %v5759_v27, %v5424_v28 }
0x239b   :  { %v5438_v30 = vadd.f32 %v5760_v32, %v5431_v29 }
0x239d   :  { %5439 = vst.msk [vmem:[#allocation2] sm:$0x3] %vm5411_vm5, %v5438_v30 }
0x239e   :  { %7275 = shalt.err (!%p7272_p4)
}
0x239f   :  { %s7276_s10 = scalar_lea.hbm %s8415_s18, 32 }
0x23a0   :  { %p7277_p5 = scmp.ne.s32.totalorder %s8415_s18, %s7276_s10  ;;  %p7280_p6 = scmp.lt.u32.totalorder %s7276_s10, %s8415_s18 }
0x23a2   :  { %p7282_p7 = pnand %p7280_p6, %p7277_p5 }
0x23a4   :  { %7285 = shalt.err (!%p7282_p7)
}
0x23a5   :  { %5449 = dma.vmem_to_hbm [thread:$0]  %s5447_s5, 32, %s8415_s18, [#allocation3]  }
0x23a6   :  { %7286 = dma.done.wait [#allocation3], 32  }
0x23a7   :  { %7287 = vsyncadd [#allocation3], 4294967264 }
0x23a8   :  { %5453 = vsyncpa [#allocation3], 1 }

</bundles_post_ra>
